<compile_context>
chip_gen: v6e
topology: v6e:2x2x1
jax: 0.10.0
libtpu: 0.0.40
codegen_flags: <defaults>
</compile_context>

<pallas_src>
import functools

import jax
import jax.numpy as jnp
from jax.experimental import pallas as pl
from jax.experimental.pallas import tpu as pltpu


# ----------------------------------------------------------------------------
# Pallas kernel: fused conv (as matmul) + bias + ReLU + 2x2 max-pool
#   x_ref : (1, 2*m_img, k_pad) bf16 patch matrix for one image; first m_img
#           rows are the even conv output columns, last m_img rows the odd ones.
#   w_ref : (k_pad, 128) bf16   (K and Cout zero-padded to 128)
#   b_ref : (1, 128)     f32
#   o_ref : (1, Hp, Wp, 128) bf16 pooled output (lane-dense channels)
# ----------------------------------------------------------------------------
def _conv_pool_kernel(x_ref, w_ref, b_ref, o_ref, *, m_img, hp, wp, wp_pad):
    # One MXU pass over both parities (f32 accumulate).
    d = jnp.dot(x_ref[0], w_ref[...], preferred_element_type=jnp.float32)
    de = d[:m_img]                                               # even conv cols
    do = d[m_img:]                                               # odd  conv cols
    # horizontal 2x pool (even/odd conv columns), then bias + ReLU
    h = jnp.maximum(jnp.maximum(de, do) + b_ref[...], 0.0)      # (Ho*wp_pad, 128)
    # vertical 2x pool: rows are (y, j) with j fastest; pair y = 2*y2, 2*y2+1
    h3 = h.reshape(hp, 2 * wp_pad, 128)                          # sublane-aligned
    v = jnp.maximum(h3[:, :wp_pad, :], h3[:, wp_pad:, :])        # (hp, wp_pad, 128)
    o_ref[0] = v[:, :wp, :].astype(o_ref.dtype)


# ----------------------------------------------------------------------------
# Pallas kernel: fused fc1(+ReLU) -> fc2(+ReLU) -> fc3, intermediates in VMEM.
# ----------------------------------------------------------------------------
def _fc3_kernel(x_ref, w1_ref, b1_ref, w2_ref, b2_ref, w3_ref, b3_ref, o_ref):
    h = jnp.dot(x_ref[...], w1_ref[...], preferred_element_type=jnp.float32)
    h = jnp.maximum(h + b1_ref[...], 0.0).astype(jnp.bfloat16)
    h = jnp.dot(h, w2_ref[...], preferred_element_type=jnp.float32)
    h = jnp.maximum(h + b2_ref[...], 0.0).astype(jnp.bfloat16)
    out = jnp.dot(h, w3_ref[...], preferred_element_type=jnp.float32)
    o_ref[...] = (out + b3_ref[...]).astype(o_ref.dtype)


# ----------------------------------------------------------------------------
# Wrapper glue (cheap XLA layout plumbing; all heavy math is in the kernels).
# ----------------------------------------------------------------------------
# TODO(synk): the overlapping-window patch gather (im2col) stays in plain JAX --
# Pallas BlockSpecs cannot express overlapping windows, and an in-kernel gather
# would multiply MXU passes by k*k at these tiny channel counts.
def _im2col_parity(xp, k, wp_pad, k_pad, parity):
    """xp: (B, H, Wpad, C) bf16, width already padded to 2*wp_pad + k - 1.
    Returns (B, Ho*wp_pad, k_pad) patch matrix for conv output columns of the
    given parity (0 = even x, 1 = odd x), K ordered as (kh, kw, cin)."""
    B, H, _, C = xp.shape
    Ho = H - k + 1
    taps = []
    for dy in range(k):
        for dx in range(k):
            s = dx + parity
            taps.append(xp[:, dy:dy + Ho, s:s + 2 * wp_pad:2, :])
    pad = k_pad - k * k * C
    if pad:
        taps.append(jnp.zeros((B, Ho, wp_pad, pad), xp.dtype))
    cols = jnp.concatenate(taps, axis=-1)                 # (B, Ho, wp_pad, k_pad)
    return cols.reshape(B, Ho * wp_pad, k_pad)


def conv_relu_pool(x_nhwc, w_mat, b_row, *, k=5):
    """x_nhwc: (B, H, W, C); w_mat: (k_pad, 128) bf16; b_row: (1, 128) f32.
    Returns pooled NHWC output with channels padded to 128, dtype bf16."""
    B, H, W, _ = x_nhwc.shape
    Ho, Wo = H - k + 1, W - k + 1
    assert Ho % 2 == 0 and Wo % 2 == 0
    Hp, Wp = Ho // 2, Wo // 2
    wp_pad = ((Wp + 7) // 8) * 8
    wo_pad = 2 * wp_pad
    k_pad = w_mat.shape[0]

    # cast to bf16 and pad the width so all shifted/strided slices stay in bounds
    xp = jnp.pad(x_nhwc.astype(jnp.bfloat16),
                 ((0, 0), (0, 0), (0, wo_pad + k - 1 - W), (0, 0)))
    xe = _im2col_parity(xp, k, wp_pad, k_pad, 0)          # even conv columns
    xo = _im2col_parity(xp, k, wp_pad, k_pad, 1)          # odd conv columns
    m_img = Ho * wp_pad
    x_all = jnp.concatenate([xe, xo], axis=1)             # (B, 2*m_img, k_pad)

    kern = functools.partial(_conv_pool_kernel,
                             m_img=m_img, hp=Hp, wp=Wp, wp_pad=wp_pad)
    return pl.pallas_call(
        kern,
        out_shape=jax.ShapeDtypeStruct((B, Hp, Wp, 128), jnp.bfloat16),
        grid=(B,),
        in_specs=[
            pl.BlockSpec((1, 2 * m_img, k_pad), lambda b: (b, 0, 0)),
            pl.BlockSpec((k_pad, 128), lambda b: (0, 0)),
            pl.BlockSpec((1, 128), lambda b: (0, 0)),
        ],
        out_specs=pl.BlockSpec((1, Hp, Wp, 128), lambda b: (b, 0, 0, 0)),
        compiler_params=pltpu.CompilerParams(
            dimension_semantics=("parallel",),
            vmem_limit_bytes=64 * 1024 * 1024),
    )(x_all, w_mat, b_row)


def fc_stack(x2d, kp):
    """x2d: (B, 2704) features in (y, x, c) order. Returns (B, 256) f32 logits
    (padded; caller slices to num_classes)."""
    B, K = x2d.shape
    K_pad = kp["f1_w"].shape[0]
    N_out = kp["f3_w"].shape[1]
    x = jnp.pad(x2d.astype(jnp.bfloat16), ((0, 0), (0, K_pad - K)))

    tile_b = B
    for cand in (256, 128, 64, 32, 16, 8):
        if B % cand == 0:
            tile_b = cand
            break
    grid = (B // tile_b,)

    return pl.pallas_call(
        _fc3_kernel,
        out_shape=jax.ShapeDtypeStruct((B, N_out), jnp.float32),
        grid=grid,
        in_specs=[
            pl.BlockSpec((tile_b, K_pad), lambda i: (i, 0)),
            pl.BlockSpec((K_pad, 128), lambda i: (0, 0)),
            pl.BlockSpec((1, 128), lambda i: (0, 0)),
            pl.BlockSpec((128, 128), lambda i: (0, 0)),
            pl.BlockSpec((1, 128), lambda i: (0, 0)),
            pl.BlockSpec((128, N_out), lambda i: (0, 0)),
            pl.BlockSpec((1, N_out), lambda i: (0, 0)),
        ],
        out_specs=pl.BlockSpec((tile_b, N_out), lambda i: (i, 0)),
        compiler_params=pltpu.CompilerParams(
            dimension_semantics=("parallel",),
            vmem_limit_bytes=64 * 1024 * 1024),
    )(x, kp["f1_w"], kp["f1_b"], kp["f2_w"], kp["f2_b"], kp["f3_w"], kp["f3_b"])


# ----------------------------------------------------------------------------
# Parameter init (PyTorch-native shapes) + one-time kernel-ready preparation.
# ----------------------------------------------------------------------------
def init_params(key, num_classes=200):
    ks = jax.random.split(key, 10)
    scale = 0.05
    return {
        "conv1_w": scale * jax.random.normal(ks[0], (6, 3, 5, 5), jnp.float32),
        "conv1_b": scale * jax.random.normal(ks[1], (6,), jnp.float32),
        "conv2_w": scale * jax.random.normal(ks[2], (16, 6, 5, 5), jnp.float32),
        "conv2_b": scale * jax.random.normal(ks[3], (16,), jnp.float32),
        "fc1_w": scale * jax.random.normal(ks[4], (120, 16 * 13 * 13), jnp.float32),
        "fc1_b": scale * jax.random.normal(ks[5], (120,), jnp.float32),
        "fc2_w": scale * jax.random.normal(ks[6], (84, 120), jnp.float32),
        "fc2_b": scale * jax.random.normal(ks[7], (84,), jnp.float32),
        "fc3_w": scale * jax.random.normal(ks[8], (num_classes, 84), jnp.float32),
        "fc3_b": scale * jax.random.normal(ks[9], (num_classes,), jnp.float32),
    }


def _pad_to(a, shape):
    return jnp.pad(a, [(0, s - d) for d, s in zip(a.shape, shape)])


def prepare_params(p):
    """Reorder / zero-pad / cast weights once into kernel-ready layout."""
    kp = {}
    # conv weights: (Cout, Cin, kh, kw) -> (kh*kw*Cin, Cout), pad K & N to 128.
    w1 = p["conv1_w"].transpose(2, 3, 1, 0).reshape(25 * 3, 6)
    kp["c1_w"] = _pad_to(w1, (128, 128)).astype(jnp.bfloat16)
    kp["c1_b"] = _pad_to(p["conv1_b"].reshape(1, 6), (1, 128)).astype(jnp.float32)
    w2 = p["conv2_w"].transpose(2, 3, 1, 0).reshape(25 * 6, 16)
    kp["c2_w"] = _pad_to(w2, (256, 128)).astype(jnp.bfloat16)
    kp["c2_b"] = _pad_to(p["conv2_b"].reshape(1, 16), (1, 128)).astype(jnp.float32)
    # fc1: PyTorch flatten is (c, y, x); our NHWC flatten is (y, x, c) -> permute cols.
    fw1 = p["fc1_w"].reshape(120, 16, 13, 13).transpose(2, 3, 1, 0).reshape(2704, 120)
    kp["f1_w"] = _pad_to(fw1, (2816, 128)).astype(jnp.bfloat16)
    kp["f1_b"] = _pad_to(p["fc1_b"].reshape(1, 120), (1, 128)).astype(jnp.float32)
    kp["f2_w"] = _pad_to(p["fc2_w"].T, (128, 128)).astype(jnp.bfloat16)
    kp["f2_b"] = _pad_to(p["fc2_b"].reshape(1, 84), (1, 128)).astype(jnp.float32)
    nc = p["fc3_w"].shape[0]
    ncp = ((nc + 127) // 128) * 128
    kp["f3_w"] = _pad_to(p["fc3_w"].T, (128, ncp)).astype(jnp.bfloat16)
    kp["f3_b"] = _pad_to(p["fc3_b"].reshape(1, nc), (1, ncp)).astype(jnp.float32)
    return kp


# ----------------------------------------------------------------------------
# Forward pass: pool(relu(conv1)) -> pool(relu(conv2)) -> fc1 -> fc2 -> fc3
# ----------------------------------------------------------------------------
def lenet200_forward(kp, x, *, num_classes=200):
    # x: (B, 3, 64, 64) NCHW (PyTorch convention) -> NHWC once at entry.
    x = x.transpose(0, 2, 3, 1)                                     # (B,64,64,3)
    y = conv_relu_pool(x, kp["c1_w"], kp["c1_b"], k=5)              # (B,30,30,128)
    y = y[..., :6]                                                  # (B,30,30,6)
    y = conv_relu_pool(y, kp["c2_w"], kp["c2_b"], k=5)              # (B,13,13,128)
    B = y.shape[0]
    feat = y[..., :16].reshape(B, 13 * 13 * 16)                     # (y, x, c) order
    logits = fc_stack(feat, kp)                                     # (B, 256) f32
    return logits[:, :num_classes]


if __name__ == "__main__":
    key = jax.random.PRNGKey(0)
    pkey, xkey = jax.random.split(key)
    params = init_params(pkey, num_classes=200)
    kparams = prepare_params(params)
    # Spatial size must be 64x64 so the flatten matches fc1's 16*13*13 input.
    x = jax.random.normal(xkey, (2, 3, 64, 64), jnp.float32)

    out = jax.jit(lenet200_forward)(kparams, x)
    out = jax.block_until_ready(out)
    assert out.shape == (2, 200), out.shape
    assert out.dtype == jnp.float32
    print("KERNEL_OK")
</pallas_src>

<mosaic_0001>
module attributes {stable_mosaic.version = 11 : i64} {
  func.func @_conv_pool_kernel(%arg0: i32, %arg1: memref<1x3840x128xbf16, #tpu.memory_space<vmem>>, %arg2: memref<128x128xbf16, #tpu.memory_space<vmem>>, %arg3: memref<1x128xf32, #tpu.memory_space<vmem>>, %arg4: memref<1x30x30x128xbf16, #tpu.memory_space<vmem>>) attributes {dimension_semantics = [#tpu.dimension_semantics<parallel>], iteration_bounds = array<i64: 2>, scalar_prefetch = 0 : i64, scratch_operands = 0 : i64, tpu.core_type = #tpu.core_type<tc>, window_params = [{transform_indices = @transform_0, window_bounds = array<i64: 1, 3840, 128>}, {pipeline_mode = #tpu.pipeline_mode<synchronous>, transform_indices = @transform_1, window_bounds = array<i64: 128, 128>}, {pipeline_mode = #tpu.pipeline_mode<synchronous>, transform_indices = @transform_2, window_bounds = array<i64: 1, 128>}, {transform_indices = @transform_3, window_bounds = array<i64: 1, 30, 30, 128>}]} {
    %c0 = arith.constant 0 : index
    %c0_0 = arith.constant 0 : index
    %c0_1 = arith.constant 0 : index
    %0 = vector.load %arg1[%c0, %c0_0, %c0_1] : memref<1x3840x128xbf16, #tpu.memory_space<vmem>>, vector<1x3840x128xbf16>
    %1 = vector.shape_cast %0 : vector<1x3840x128xbf16> to vector<3840x128xbf16>
    %c0_2 = arith.constant 0 : index
    %c0_3 = arith.constant 0 : index
    %2 = vector.load %arg2[%c0_2, %c0_3] : memref<128x128xbf16, #tpu.memory_space<vmem>>, vector<128x128xbf16>
    %cst = arith.constant dense<0.000000e+00> : vector<3840x128xf32>
    %3 = tpu.matmul %1, %2, %cst {dimension_numbers = #tpu.dot_dimension_numbers<[1], [0], [0], [1], [0, 0, 1, 1], [], []>} : vector<3840x128xbf16>, vector<128x128xbf16>, vector<3840x128xf32> -> vector<3840x128xf32>
    %4 = vector.extract_strided_slice %3 {offsets = [0, 0], sizes = [1920, 128], strides = [1, 1]} : vector<3840x128xf32> to vector<1920x128xf32>
    %5 = vector.extract_strided_slice %3 {offsets = [1920, 0], sizes = [1920, 128], strides = [1, 1]} : vector<3840x128xf32> to vector<1920x128xf32>
    %6 = arith.maximumf %4, %5 : vector<1920x128xf32>
    %c0_4 = arith.constant 0 : index
    %c0_5 = arith.constant 0 : index
    %7 = vector.load %arg3[%c0_4, %c0_5] : memref<1x128xf32, #tpu.memory_space<vmem>>, vector<1x128xf32>
    %8 = vector.broadcast %7 : vector<1x128xf32> to vector<1920x128xf32>
    %9 = arith.addf %6, %8 : vector<1920x128xf32>
    %cst_6 = arith.constant 0.000000e+00 : f32
    %10 = vector.broadcast %cst_6 : f32 to vector<1920x128xf32>
    %11 = arith.maximumf %9, %10 : vector<1920x128xf32>
    %12 = vector.shape_cast %11 : vector<1920x128xf32> to vector<30x64x128xf32>
    %13 = vector.extract_strided_slice %12 {offsets = [0, 0, 0], sizes = [30, 32, 128], strides = [1, 1, 1]} : vector<30x64x128xf32> to vector<30x32x128xf32>
    %14 = vector.extract_strided_slice %12 {offsets = [0, 32, 0], sizes = [30, 32, 128], strides = [1, 1, 1]} : vector<30x64x128xf32> to vector<30x32x128xf32>
    %15 = arith.maximumf %13, %14 : vector<30x32x128xf32>
    %16 = vector.extract_strided_slice %15 {offsets = [0, 0, 0], sizes = [30, 30, 128], strides = [1, 1, 1]} : vector<30x32x128xf32> to vector<30x30x128xf32>
    %17 = arith.truncf %16 : vector<30x30x128xf32> to vector<30x30x128xbf16>
    %c0_7 = arith.constant 0 : index
    %c0_8 = arith.constant 0 : index
    %c0_9 = arith.constant 0 : index
    %c0_10 = arith.constant 0 : index
    %18 = vector.load %arg4[%c0_7, %c0_8, %c0_9, %c0_10] : memref<1x30x30x128xbf16, #tpu.memory_space<vmem>>, vector<1x30x30x128xbf16>
    %19 = vector.shape_cast %18 : vector<1x30x30x128xbf16> to vector<30x30x128xbf16>
    %20 = vector.shape_cast %17 : vector<30x30x128xbf16> to vector<1x30x30x128xbf16>
    tpu.vector_store %arg4[%c0_7, %c0_8, %c0_9, %c0_10], %20 {strides = array<i32>} : memref<1x30x30x128xbf16, #tpu.memory_space<vmem>>, vector<1x30x30x128xbf16>,
    return
  }
  func.func @transform_0(%arg0: i32) -> (i32, i32, i32) {
    %c0_i32 = arith.constant 0 : i32
    %c0_i32_0 = arith.constant 0 : i32
    %c0_i32_1 = arith.constant 0 : i32
    return %arg0, %c0_i32, %c0_i32_0 : i32, i32, i32
  }
  func.func @transform_1(%arg0: i32) -> (i32, i32) {
    %c0_i32 = arith.constant 0 : i32
    %c0_i32_0 = arith.constant 0 : i32
    %c0_i32_1 = arith.constant 0 : i32
    return %c0_i32, %c0_i32_0 : i32, i32
  }
  func.func @transform_2(%arg0: i32) -> (i32, i32) {
    %c0_i32 = arith.constant 0 : i32
    %c0_i32_0 = arith.constant 0 : i32
    %c0_i32_1 = arith.constant 0 : i32
    return %c0_i32, %c0_i32_0 : i32, i32
  }
  func.func @transform_3(%arg0: i32) -> (i32, i32, i32, i32) {
    %c0_i32 = arith.constant 0 : i32
    %c0_i32_0 = arith.constant 0 : i32
    %c0_i32_1 = arith.constant 0 : i32
    %c0_i32_2 = arith.constant 0 : i32
    return %arg0, %c0_i32, %c0_i32_0, %c0_i32_1 : i32, i32, i32, i32
  }
}

module attributes {stable_mosaic.version = 11 : i64} {
  func.func @_conv_pool_kernel(%arg0: i32, %arg1: memref<1x832x256xbf16, #tpu.memory_space<vmem>>, %arg2: memref<256x128xbf16, #tpu.memory_space<vmem>>, %arg3: memref<1x128xf32, #tpu.memory_space<vmem>>, %arg4: memref<1x13x13x128xbf16, #tpu.memory_space<vmem>>) attributes {dimension_semantics = [#tpu.dimension_semantics<parallel>], iteration_bounds = array<i64: 2>, scalar_prefetch = 0 : i64, scratch_operands = 0 : i64, tpu.core_type = #tpu.core_type<tc>, window_params = [{transform_indices = @transform_0, window_bounds = array<i64: 1, 832, 256>}, {pipeline_mode = #tpu.pipeline_mode<synchronous>, transform_indices = @transform_1, window_bounds = array<i64: 256, 128>}, {pipeline_mode = #tpu.pipeline_mode<synchronous>, transform_indices = @transform_2, window_bounds = array<i64: 1, 128>}, {transform_indices = @transform_3, window_bounds = array<i64: 1, 13, 13, 128>}]} {
    %c0 = arith.constant 0 : index
    %c0_0 = arith.constant 0 : index
    %c0_1 = arith.constant 0 : index
    %0 = vector.load %arg1[%c0, %c0_0, %c0_1] : memref<1x832x256xbf16, #tpu.memory_space<vmem>>, vector<1x832x256xbf16>
    %1 = vector.shape_cast %0 : vector<1x832x256xbf16> to vector<832x256xbf16>
    %c0_2 = arith.constant 0 : index
    %c0_3 = arith.constant 0 : index
    %2 = vector.load %arg2[%c0_2, %c0_3] : memref<256x128xbf16, #tpu.memory_space<vmem>>, vector<256x128xbf16>
    %cst = arith.constant dense<0.000000e+00> : vector<832x128xf32>
    %3 = tpu.matmul %1, %2, %cst {dimension_numbers = #tpu.dot_dimension_numbers<[1], [0], [0], [1], [0, 0, 1, 1], [], []>} : vector<832x256xbf16>, vector<256x128xbf16>, vector<832x128xf32> -> vector<832x128xf32>
    %4 = vector.extract_strided_slice %3 {offsets = [0, 0], sizes = [416, 128], strides = [1, 1]} : vector<832x128xf32> to vector<416x128xf32>
    %5 = vector.extract_strided_slice %3 {offsets = [416, 0], sizes = [416, 128], strides = [1, 1]} : vector<832x128xf32> to vector<416x128xf32>
    %6 = arith.maximumf %4, %5 : vector<416x128xf32>
    %c0_4 = arith.constant 0 : index
    %c0_5 = arith.constant 0 : index
    %7 = vector.load %arg3[%c0_4, %c0_5] : memref<1x128xf32, #tpu.memory_space<vmem>>, vector<1x128xf32>
    %8 = vector.broadcast %7 : vector<1x128xf32> to vector<416x128xf32>
    %9 = arith.addf %6, %8 : vector<416x128xf32>
    %cst_6 = arith.constant 0.000000e+00 : f32
    %10 = vector.broadcast %cst_6 : f32 to vector<416x128xf32>
    %11 = arith.maximumf %9, %10 : vector<416x128xf32>
    %12 = vector.shape_cast %11 : vector<416x128xf32> to vector<13x32x128xf32>
    %13 = vector.extract_strided_slice %12 {offsets = [0, 0, 0], sizes = [13, 16, 128], strides = [1, 1, 1]} : vector<13x32x128xf32> to vector<13x16x128xf32>
    %14 = vector.extract_strided_slice %12 {offsets = [0, 16, 0], sizes = [13, 16, 128], strides = [1, 1, 1]} : vector<13x32x128xf32> to vector<13x16x128xf32>
    %15 = arith.maximumf %13, %14 : vector<13x16x128xf32>
    %16 = vector.extract_strided_slice %15 {offsets = [0, 0, 0], sizes = [13, 13, 128], strides = [1, 1, 1]} : vector<13x16x128xf32> to vector<13x13x128xf32>
    %17 = arith.truncf %16 : vector<13x13x128xf32> to vector<13x13x128xbf16>
    %c0_7 = arith.constant 0 : index
    %c0_8 = arith.constant 0 : index
    %c0_9 = arith.constant 0 : index
    %c0_10 = arith.constant 0 : index
    %18 = vector.load %arg4[%c0_7, %c0_8, %c0_9, %c0_10] : memref<1x13x13x128xbf16, #tpu.memory_space<vmem>>, vector<1x13x13x128xbf16>
    %19 = vector.shape_cast %18 : vector<1x13x13x128xbf16> to vector<13x13x128xbf16>
    %20 = vector.shape_cast %17 : vector<13x13x128xbf16> to vector<1x13x13x128xbf16>
    tpu.vector_store %arg4[%c0_7, %c0_8, %c0_9, %c0_10], %20 {strides = array<i32>} : memref<1x13x13x128xbf16, #tpu.memory_space<vmem>>, vector<1x13x13x128xbf16>,
    return
  }
  func.func @transform_0(%arg0: i32) -> (i32, i32, i32) {
    %c0_i32 = arith.constant 0 : i32
    %c0_i32_0 = arith.constant 0 : i32
    %c0_i32_1 = arith.constant 0 : i32
    return %arg0, %c0_i32, %c0_i32_0 : i32, i32, i32
  }
  func.func @transform_1(%arg0: i32) -> (i32, i32) {
    %c0_i32 = arith.constant 0 : i32
    %c0_i32_0 = arith.constant 0 : i32
    %c0_i32_1 = arith.constant 0 : i32
    return %c0_i32, %c0_i32_0 : i32, i32
  }
  func.func @transform_2(%arg0: i32) -> (i32, i32) {
    %c0_i32 = arith.constant 0 : i32
    %c0_i32_0 = arith.constant 0 : i32
    %c0_i32_1 = arith.constant 0 : i32
    return %c0_i32, %c0_i32_0 : i32, i32
  }
  func.func @transform_3(%arg0: i32) -> (i32, i32, i32, i32) {
    %c0_i32 = arith.constant 0 : i32
    %c0_i32_0 = arith.constant 0 : i32
    %c0_i32_1 = arith.constant 0 : i32
    %c0_i32_2 = arith.constant 0 : i32
    return %arg0, %c0_i32, %c0_i32_0, %c0_i32_1 : i32, i32, i32, i32
  }
}

module attributes {stable_mosaic.version = 11 : i64} {
  func.func @_fc3_kernel(%arg0: i32, %arg1: memref<2x2816xbf16, #tpu.memory_space<vmem>>, %arg2: memref<2816x128xbf16, #tpu.memory_space<vmem>>, %arg3: memref<1x128xf32, #tpu.memory_space<vmem>>, %arg4: memref<128x128xbf16, #tpu.memory_space<vmem>>, %arg5: memref<1x128xf32, #tpu.memory_space<vmem>>, %arg6: memref<128x256xbf16, #tpu.memory_space<vmem>>, %arg7: memref<1x256xf32, #tpu.memory_space<vmem>>, %arg8: memref<2x256xf32, #tpu.memory_space<vmem>>) attributes {dimension_semantics = [#tpu.dimension_semantics<parallel>], iteration_bounds = array<i64: 1>, scalar_prefetch = 0 : i64, scratch_operands = 0 : i64, tpu.core_type = #tpu.core_type<tc>, window_params = [{transform_indices = @transform_0, window_bounds = array<i64: 2, 2816>}, {pipeline_mode = #tpu.pipeline_mode<synchronous>, transform_indices = @transform_1, window_bounds = array<i64: 2816, 128>}, {pipeline_mode = #tpu.pipeline_mode<synchronous>, transform_indices = @transform_2, window_bounds = array<i64: 1, 128>}, {pipeline_mode = #tpu.pipeline_mode<synchronous>, transform_indices = @transform_3, window_bounds = array<i64: 128, 128>}, {pipeline_mode = #tpu.pipeline_mode<synchronous>, transform_indices = @transform_4, window_bounds = array<i64: 1, 128>}, {pipeline_mode = #tpu.pipeline_mode<synchronous>, transform_indices = @transform_5, window_bounds = array<i64: 128, 256>}, {pipeline_mode = #tpu.pipeline_mode<synchronous>, transform_indices = @transform_6, window_bounds = array<i64: 1, 256>}, {transform_indices = @transform_7, window_bounds = array<i64: 2, 256>}]} {
    %c0 = arith.constant 0 : index
    %c0_0 = arith.constant 0 : index
    %0 = vector.load %arg1[%c0, %c0_0] : memref<2x2816xbf16, #tpu.memory_space<vmem>>, vector<2x2816xbf16>
    %c0_1 = arith.constant 0 : index
    %c0_2 = arith.constant 0 : index
    %1 = vector.load %arg2[%c0_1, %c0_2] : memref<2816x128xbf16, #tpu.memory_space<vmem>>, vector<2816x128xbf16>
    %cst = arith.constant dense<0.000000e+00> : vector<2x128xf32>
    %2 = tpu.matmul %0, %1, %cst {dimension_numbers = #tpu.dot_dimension_numbers<[1], [0], [0], [1], [0, 0, 1, 1], [], []>} : vector<2x2816xbf16>, vector<2816x128xbf16>, vector<2x128xf32> -> vector<2x128xf32>
    %c0_3 = arith.constant 0 : index
    %c0_4 = arith.constant 0 : index
    %3 = vector.load %arg3[%c0_3, %c0_4] : memref<1x128xf32, #tpu.memory_space<vmem>>, vector<1x128xf32>
    %4 = vector.broadcast %3 : vector<1x128xf32> to vector<2x128xf32>
    %5 = arith.addf %2, %4 : vector<2x128xf32>
    %cst_5 = arith.constant 0.000000e+00 : f32
    %6 = vector.broadcast %cst_5 : f32 to vector<2x128xf32>
    %7 = arith.maximumf %5, %6 : vector<2x128xf32>
    %8 = arith.truncf %7 : vector<2x128xf32> to vector<2x128xbf16>
    %c0_6 = arith.constant 0 : index
    %c0_7 = arith.constant 0 : index
    %9 = vector.load %arg4[%c0_6, %c0_7] : memref<128x128xbf16, #tpu.memory_space<vmem>>, vector<128x128xbf16>
    %cst_8 = arith.constant dense<0.000000e+00> : vector<2x128xf32>
    %10 = tpu.matmul %8, %9, %cst_8 {dimension_numbers = #tpu.dot_dimension_numbers<[1], [0], [0], [1], [0, 0, 1, 1], [], []>} : vector<2x128xbf16>, vector<128x128xbf16>, vector<2x128xf32> -> vector<2x128xf32>
    %c0_9 = arith.constant 0 : index
    %c0_10 = arith.constant 0 : index
    %11 = vector.load %arg5[%c0_9, %c0_10] : memref<1x128xf32, #tpu.memory_space<vmem>>, vector<1x128xf32>
    %12 = vector.broadcast %11 : vector<1x128xf32> to vector<2x128xf32>
    %13 = arith.addf %10, %12 : vector<2x128xf32>
    %cst_11 = arith.constant 0.000000e+00 : f32
    %14 = vector.broadcast %cst_11 : f32 to vector<2x128xf32>
    %15 = arith.maximumf %13, %14 : vector<2x128xf32>
    %16 = arith.truncf %15 : vector<2x128xf32> to vector<2x128xbf16>
    %c0_12 = arith.constant 0 : index
    %c0_13 = arith.constant 0 : index
    %17 = vector.load %arg6[%c0_12, %c0_13] : memref<128x256xbf16, #tpu.memory_space<vmem>>, vector<128x256xbf16>
    %cst_14 = arith.constant dense<0.000000e+00> : vector<2x256xf32>
    %18 = tpu.matmul %16, %17, %cst_14 {dimension_numbers = #tpu.dot_dimension_numbers<[1], [0], [0], [1], [0, 0, 1, 1], [], []>} : vector<2x128xbf16>, vector<128x256xbf16>, vector<2x256xf32> -> vector<2x256xf32>
    %c0_15 = arith.constant 0 : index
    %c0_16 = arith.constant 0 : index
    %19 = vector.load %arg7[%c0_15, %c0_16] : memref<1x256xf32, #tpu.memory_space<vmem>>, vector<1x256xf32>
    %20 = vector.broadcast %19 : vector<1x256xf32> to vector<2x256xf32>
    %21 = arith.addf %18, %20 : vector<2x256xf32>
    %c0_17 = arith.constant 0 : index
    %c0_18 = arith.constant 0 : index
    %22 = vector.load %arg8[%c0_17, %c0_18] : memref<2x256xf32, #tpu.memory_space<vmem>>, vector<2x256xf32>
    tpu.vector_store %arg8[%c0_17, %c0_18], %21 {strides = array<i32>} : memref<2x256xf32, #tpu.memory_space<vmem>>, vector<2x256xf32>,
    return
  }
  func.func @transform_0(%arg0: i32) -> (i32, i32) {
    %c0_i32 = arith.constant 0 : i32
    %c0_i32_0 = arith.constant 0 : i32
    return %arg0, %c0_i32 : i32, i32
  }
  func.func @transform_1(%arg0: i32) -> (i32, i32) {
    %c0_i32 = arith.constant 0 : i32
    %c0_i32_0 = arith.constant 0 : i32
    %c0_i32_1 = arith.constant 0 : i32
    return %c0_i32, %c0_i32_0 : i32, i32
  }
  func.func @transform_2(%arg0: i32) -> (i32, i32) {
    %c0_i32 = arith.constant 0 : i32
    %c0_i32_0 = arith.constant 0 : i32
    %c0_i32_1 = arith.constant 0 : i32
    return %c0_i32, %c0_i32_0 : i32, i32
  }
  func.func @transform_3(%arg0: i32) -> (i32, i32) {
    %c0_i32 = arith.constant 0 : i32
    %c0_i32_0 = arith.constant 0 : i32
    %c0_i32_1 = arith.constant 0 : i32
    return %c0_i32, %c0_i32_0 : i32, i32
  }
  func.func @transform_4(%arg0: i32) -> (i32, i32) {
    %c0_i32 = arith.constant 0 : i32
    %c0_i32_0 = arith.constant 0 : i32
    %c0_i32_1 = arith.constant 0 : i32
    return %c0_i32, %c0_i32_0 : i32, i32
  }
  func.func @transform_5(%arg0: i32) -> (i32, i32) {
    %c0_i32 = arith.constant 0 : i32
    %c0_i32_0 = arith.constant 0 : i32
    %c0_i32_1 = arith.constant 0 : i32
    return %c0_i32, %c0_i32_0 : i32, i32
  }
  func.func @transform_6(%arg0: i32) -> (i32, i32) {
    %c0_i32 = arith.constant 0 : i32
    %c0_i32_0 = arith.constant 0 : i32
    %c0_i32_1 = arith.constant 0 : i32
    return %c0_i32, %c0_i32_0 : i32, i32
  }
  func.func @transform_7(%arg0: i32) -> (i32, i32) {
    %c0_i32 = arith.constant 0 : i32
    %c0_i32_0 = arith.constant 0 : i32
    return %arg0, %c0_i32 : i32, i32
  }
}

</mosaic_0001>

<bundles_post_ra>
// kernel: lenet200_forward.3
= control target key start
LH: loop header
LB: loop body
LE: loop exit
PB: predicated region body
PF: predicated region fallthrough
CT: control target
= control target key end

     0   :  { %s7337_s12 = smov 0   ;;  %s7976_s0 = inlined_call_operand.vmem [shape: bf16[2,3840,128], index: 0, kind: input, shape index: {}]   ;;  %s7977_s1 = inlined_call_operand.vmem [shape: bf16[128,128], index: 1, kind: input, shape index: {}]   ;;  %s7978_s2 = inlined_call_operand.vmem [shape: f32[1,128], index: 2, kind: input, shape index: {}]   ;;  %s7979_s3 = inlined_call_operand.vmem [shape: bf16[2,30,30,128], index: 3, kind: output, shape index: {}]  }
   0x1 LB: > { %s5611_s13 = sadd.s32 4294967295, %s7315_s12   ;;  %p5615_p0 = scmp.ge.s32.totalorder %s7315_s12, 1  ;;  %s7315_s12 = sphi %s7337_s12, %s13_s12  }
   0x2   : > { %p137_p1 = scmp.lt.s32.totalorder %s7315_s12, 3 }
   0x4   : > { %p138_p2 = pnand %p5615_p0, %p137_p1 }
   0x5   : > { %p161_p3 = scmp.lt.s32.totalorder (!%p138_p2), %s5611_s13, 1 }
   0x6   : > { %141 = sbr.rel (%p138_p2) target bundleno = 726 (0x2d6), region = 32 }
   0xb   : > { %v7058_v0 = vld [vmem:[%s7977_s1 + $0x38] sm:$0xff]   ;;  %v7059_v1 = vld [vmem:[%s7977_s1 + $0x30] sm:$0xff]   ;;  %s7981_s13 = smov (!%p161_p3, %s5611_s13), 1  ;;  %v7060_v2 = vld [vmem:[%s7977_s1 + $0x28] sm:$0xff]  }
   0xc   : > { %6536 = vmatprep.subr.bf16.mxu0 %v7058_v0  ;;  %7032 = vmatprep.subr.bf16.mxu1 %v7058_v0  ;;  %s7048_s20 = smul.u32 1920, %s7981_s13  ;;  %v7061_v3 = vld [vmem:[%s7977_s1 + $0x20] sm:$0xff]   ;;  %v7062_v6 = vld [vmem:[%s7977_s1 + $0x18] sm:$0xff]   ;;  %v7063_v7 = vld [vmem:[%s7977_s1 + $0x10] sm:$0xff]  }
   0xd   : > { %6537 = vmatpush3.bf16.msra.mxu0 %v7058_v0  ;;  %7040 = vmatpush3.bf16.msra.mxu1 %v7058_v0  ;;  %v7064_v8 = vld [vmem:[%s7977_s1 + $0x8] sm:$0xff]   ;;  %v7065_v9 = vld [vmem:[%s7977_s1] sm:$0xff]   ;;  %s7049_s9 = smul.u32 480, %s7981_s13 }
   0xe   : > { %6538 = vmatprep.subr.bf16.mxu0 %v7059_v1  ;;  %7033 = vmatprep.subr.bf16.mxu1 %v7059_v1  ;;  %s7360_s23 = scalar_lea.vmem %s7976_s0, %s7048_s20 }
   0xf   : > { %v7066_v4 = vld [vmem:[%s7360_s23] sm:$0xff]   ;;  %v7068_v10 = vld [vmem:[%s7360_s23 + $0x8] sm:$0xff]   ;;  %v7070_v12 = vld [vmem:[%s7360_s23 + $0x10] sm:$0xff]   ;;  %s7503_s13 = scalar_lea.vmem %s7979_s3, %s7049_s9 }
  0x10   : > { %v7067_v5 = vld [vmem:[%s7360_s23 + $0x3c0] sm:$0xff]   ;;  %6552 = vmatprep.mubr.bf16.mxu0 %v7066_v4  ;;  %v7069_v11 = vld [vmem:[%s7360_s23 + $0x3c8] sm:$0xff]   ;;  %v7071_v13 = vld [vmem:[%s7360_s23 + $0x3d0] sm:$0xff]  }
  0x11   : > { %6539 = vmatpush3.bf16.msra.mxu0 %v7059_v1  ;;  %7041 = vmatpush3.bf16.msra.mxu1 %v7059_v1  ;;  %v7072_v14 = vld [vmem:[%s7360_s23 + $0x18] sm:$0xff]   ;;  %v7074_v16 = vld [vmem:[%s7360_s23 + $0x20] sm:$0xff]   ;;  %v7076_v18 = vld [vmem:[%s7360_s23 + $0x28] sm:$0xff]  }
  0x12   : > { %6540 = vmatprep.subr.bf16.mxu0 %v7060_v2  ;;  %7034 = vmatprep.subr.bf16.mxu1 %v7060_v2  ;;  %v7073_v15 = vld [vmem:[%s7360_s23 + $0x3d8] sm:$0xff]   ;;  %v7075_v17 = vld [vmem:[%s7360_s23 + $0x3e0] sm:$0xff]   ;;  %v7077_v19 = vld [vmem:[%s7360_s23 + $0x3e8] sm:$0xff]  }
  0x13   : > { %6792 = vmatprep.mubr.bf16.mxu1 %v7067_v5  ;;  %v7078_v20 = vld [vmem:[%s7360_s23 + $0x30] sm:$0xff]   ;;  %v7080_v22 = vld [vmem:[%s7360_s23 + $0x38] sm:$0xff]   ;;  %v7082_v24 = vld [vmem:[%s7360_s23 + $0x40] sm:$0xff]  }
  0x14   : > { %v7079_v21 = vld [vmem:[%s7360_s23 + $0x3f0] sm:$0xff]   ;;  %v7081_v23 = vld [vmem:[%s7360_s23 + $0x3f8] sm:$0xff]   ;;  %v7083_v25 = vld [vmem:[%s7360_s23 + $0x400] sm:$0xff]  }
  0x15   : > { %6541 = vmatpush3.bf16.msra.mxu0 %v7060_v2  ;;  %7042 = vmatpush3.bf16.msra.mxu1 %v7060_v2  ;;  %v7084_v26 = vld [vmem:[%s7360_s23 + $0x48] sm:$0xff]   ;;  %v7086_v28 = vld [vmem:[%s7360_s23 + $0x50] sm:$0xff]   ;;  %v7088_v30 = vld [vmem:[%s7360_s23 + $0x58] sm:$0xff]  }
  0x16   : > { %6542 = vmatprep.subr.bf16.mxu0 %v7061_v3  ;;  %7035 = vmatprep.subr.bf16.mxu1 %v7061_v3  ;;  %v7085_v27 = vld [vmem:[%s7360_s23 + $0x408] sm:$0xff]   ;;  %v7087_v29 = vld [vmem:[%s7360_s23 + $0x410] sm:$0xff]   ;;  %v7089_v31 = vld [vmem:[%s7360_s23 + $0x418] sm:$0xff]  }
  0x17   : > { %v7090_v32 = vld [vmem:[%s7360_s23 + $0x60] sm:$0xff]   ;;  %v7092_v34 = vld [vmem:[%s7360_s23 + $0x68] sm:$0xff]   ;;  %v7094_v36 = vld [vmem:[%s7360_s23 + $0x70] sm:$0xff]  }
  0x18   : > { %v7091_v33 = vld [vmem:[%s7360_s23 + $0x420] sm:$0xff]   ;;  %v7093_v35 = vld [vmem:[%s7360_s23 + $0x428] sm:$0xff]   ;;  %v7095_v37 = vld [vmem:[%s7360_s23 + $0x430] sm:$0xff]  }
  0x19   : > { %6543 = vmatpush3.bf16.msra.mxu0 %v7061_v3  ;;  %7043 = vmatpush3.bf16.msra.mxu1 %v7061_v3  ;;  %v7096_v38 = vld [vmem:[%s7360_s23 + $0x78] sm:$0xff]   ;;  %v7098_v40 = vld [vmem:[%s7360_s23 + $0x80] sm:$0xff]   ;;  %v7100_v42 = vld [vmem:[%s7360_s23 + $0x88] sm:$0xff]  }
  0x1a   : > { %6544 = vmatprep.subr.bf16.mxu0 %v7062_v6  ;;  %7036 = vmatprep.subr.bf16.mxu1 %v7062_v6  ;;  %v7097_v39 = vld [vmem:[%s7360_s23 + $0x438] sm:$0xff]   ;;  %v7099_v41 = vld [vmem:[%s7360_s23 + $0x440] sm:$0xff]   ;;  %v7101_v43 = vld [vmem:[%s7360_s23 + $0x448] sm:$0xff]  }
  0x1b   : > { %v7102_v44 = vld [vmem:[%s7360_s23 + $0x90] sm:$0xff]   ;;  %v7104_v46 = vld [vmem:[%s7360_s23 + $0x98] sm:$0xff]   ;;  %v7106_v48 = vld [vmem:[%s7360_s23 + $0xa0] sm:$0xff]  }
  0x1c   : > { %v7103_v45 = vld [vmem:[%s7360_s23 + $0x450] sm:$0xff]   ;;  %v7105_v47 = vld [vmem:[%s7360_s23 + $0x458] sm:$0xff]   ;;  %v7107_v49 = vld [vmem:[%s7360_s23 + $0x460] sm:$0xff]  }
  0x1d   : > { %6545 = vmatpush3.bf16.msra.mxu0 %v7062_v6  ;;  %7044 = vmatpush3.bf16.msra.mxu1 %v7062_v6  ;;  %v7108_v50 = vld [vmem:[%s7360_s23 + $0xa8] sm:$0xff]   ;;  %v7110_v52 = vld [vmem:[%s7360_s23 + $0xb0] sm:$0xff]   ;;  %v7112_v54 = vld [vmem:[%s7360_s23 + $0xb8] sm:$0xff]  }
  0x1e   : > { %6546 = vmatprep.subr.bf16.mxu0 %v7063_v7  ;;  %7037 = vmatprep.subr.bf16.mxu1 %v7063_v7  ;;  %v7109_v51 = vld [vmem:[%s7360_s23 + $0x468] sm:$0xff]   ;;  %v7111_v53 = vld [vmem:[%s7360_s23 + $0x470] sm:$0xff]   ;;  %v7113_v55 = vld [vmem:[%s7360_s23 + $0x478] sm:$0xff]  }
  0x1f   : > { %v7114_v56 = vld [vmem:[%s7360_s23 + $0xc0] sm:$0xff]   ;;  %v7116_v58 = vld [vmem:[%s7360_s23 + $0xc8] sm:$0xff]   ;;  %v7118_v60 = vld [vmem:[%s7360_s23 + $0xd0] sm:$0xff]  }
  0x20   : > { %v7115_v57 = vld [vmem:[%s7360_s23 + $0x480] sm:$0xff]   ;;  %v7117_v59 = vld [vmem:[%s7360_s23 + $0x488] sm:$0xff]   ;;  %v7119_v61 = vld [vmem:[%s7360_s23 + $0x490] sm:$0xff]  }
  0x21   : > { %6547 = vmatpush3.bf16.msra.mxu0 %v7063_v7  ;;  %7045 = vmatpush3.bf16.msra.mxu1 %v7063_v7  ;;  %v7120_v62 = vld [vmem:[%s7360_s23 + $0xd8] sm:$0xff]   ;;  %v7122_v0 = vld [vmem:[%s7360_s23 + $0xe0] sm:$0xff]   ;;  %v7124_v2 = vld [vmem:[%s7360_s23 + $0xe8] sm:$0xff]  }
  0x22   : > { %6548 = vmatprep.subr.bf16.mxu0 %v7064_v8  ;;  %7038 = vmatprep.subr.bf16.mxu1 %v7064_v8  ;;  %v7121_v63 = vld [vmem:[%s7360_s23 + $0x498] sm:$0xff]   ;;  %v7123_v1 = vld [vmem:[%s7360_s23 + $0x4a0] sm:$0xff]   ;;  %v7125_v3 = vld [vmem:[%s7360_s23 + $0x4a8] sm:$0xff]  }
  0x23   : > { %v7126_v4 = vld [vmem:[%s7360_s23 + $0xf0] sm:$0xff]   ;;  %v7128_v6 = vld [vmem:[%s7360_s23 + $0xf8] sm:$0xff]  }
  0x24   : > { %v7127_v5 = vld [vmem:[%s7360_s23 + $0x4b0] sm:$0xff]   ;;  %v7129_v7 = vld [vmem:[%s7360_s23 + $0x4b8] sm:$0xff]  }
  0x25   : > { %6549 = vmatpush3.bf16.msra.mxu0 %v7064_v8  ;;  %7046 = vmatpush3.bf16.msra.mxu1 %v7064_v8  ;;  %v7130_v8 = vld [vmem:[%s7360_s23 + $0x100] sm:$0xff]  }
  0x26   : > { %6550 = vmatprep.subr.bf16.mxu0 %v7065_v9  ;;  %7039 = vmatprep.subr.bf16.mxu1 %v7065_v9 }
  0x29   : > { %6551 = vmatpush3.bf16.msra.mxu0 %v7065_v9  ;;  %7047 = vmatpush3.bf16.msra.mxu1 %v7065_v9  ;;  %v7131_v9 = vld [vmem:[%s7360_s23 + $0x4c0] sm:$0xff]  }
  0x2c   : > { %6553 = vmatmul.mubr.bf16.vlgmr.msra.gmra.mxu0 %v7068_v10  ;;  %6793 = vmatmul.mubr.bf16.vlgmr.msra.gmra.mxu1 %v7069_v11  ;;  %v7132_v10 = vld [vmem:[%s7360_s23 + $0x108] sm:$0xff]  }
  0x2d   : > { %6556 = vmatprep.mubr.bf16.mxu0 %v7070_v12  ;;  %6796 = vmatprep.mubr.bf16.mxu1 %v7071_v13  ;;  %v7133_v11 = vld [vmem:[%s7360_s23 + $0x4c8] sm:$0xff]   ;;  %v7134_v12 = vld [vmem:[%s7360_s23 + $0x110] sm:$0xff]  }
  0x2e   : > { %v7135_v13 = vld [vmem:[%s7360_s23 + $0x4d0] sm:$0xff]  }
  0x34   : > { %6557 = vmatmul.mubr.bf16.gmra.mxu0 %v7072_v14  ;;  %6797 = vmatmul.mubr.bf16.gmra.mxu1 %v7073_v15  ;;  %v7136_v14 = vld [vmem:[%s7360_s23 + $0x118] sm:$0xff]  }
  0x35   : > { %6560 = vmatprep.mubr.bf16.mxu0 %v7074_v16  ;;  %6800 = vmatprep.mubr.bf16.mxu1 %v7075_v17  ;;  %v7137_v15 = vld [vmem:[%s7360_s23 + $0x4d8] sm:$0xff]   ;;  %v7138_v16 = vld [vmem:[%s7360_s23 + $0x120] sm:$0xff]  }
  0x36   : > { %v7139_v17 = vld [vmem:[%s7360_s23 + $0x4e0] sm:$0xff]  }
  0x3c   : > { %6561 = vmatmul.mubr.bf16.gmra.mxu0 %v7076_v18  ;;  %6801 = vmatmul.mubr.bf16.gmra.mxu1 %v7077_v19  ;;  %v7140_v18 = vld [vmem:[%s7360_s23 + $0x128] sm:$0xff]  }
  0x3d   : > { %6564 = vmatprep.mubr.bf16.mxu0 %v7078_v20  ;;  %6804 = vmatprep.mubr.bf16.mxu1 %v7079_v21  ;;  %v7141_v19 = vld [vmem:[%s7360_s23 + $0x4e8] sm:$0xff]   ;;  %v7142_v20 = vld [vmem:[%s7360_s23 + $0x130] sm:$0xff]  }
  0x3e   : > { %v7143_v21 = vld [vmem:[%s7360_s23 + $0x4f0] sm:$0xff]  }
  0x44   : > { %6565 = vmatmul.mubr.bf16.gmra.mxu0 %v7080_v22  ;;  %6805 = vmatmul.mubr.bf16.gmra.mxu1 %v7081_v23  ;;  %v7144_v22 = vld [vmem:[%s7360_s23 + $0x138] sm:$0xff]  }
  0x45   : > { %6568 = vmatprep.mubr.bf16.mxu0 %v7082_v24  ;;  %6808 = vmatprep.mubr.bf16.mxu1 %v7083_v25  ;;  %v7145_v23 = vld [vmem:[%s7360_s23 + $0x4f8] sm:$0xff]   ;;  %v7146_v24 = vld [vmem:[%s7360_s23 + $0x140] sm:$0xff]  }
  0x46   : > { %v7147_v25 = vld [vmem:[%s7360_s23 + $0x500] sm:$0xff]  }
  0x4c   : > { %6569 = vmatmul.mubr.bf16.gmra.mxu0 %v7084_v26  ;;  %6809 = vmatmul.mubr.bf16.gmra.mxu1 %v7085_v27  ;;  %v7148_v26 = vld [vmem:[%s7360_s23 + $0x148] sm:$0xff]  }
  0x4d   : > { %6572 = vmatprep.mubr.bf16.mxu0 %v7086_v28  ;;  %6812 = vmatprep.mubr.bf16.mxu1 %v7087_v29  ;;  %v7149_v27 = vld [vmem:[%s7360_s23 + $0x508] sm:$0xff]   ;;  %v7150_v28 = vld [vmem:[%s7360_s23 + $0x150] sm:$0xff]  }
  0x4e   : > { %v7151_v29 = vld [vmem:[%s7360_s23 + $0x510] sm:$0xff]  }
  0x54   : > { %6573 = vmatmul.mubr.bf16.gmra.mxu0 %v7088_v30  ;;  %6813 = vmatmul.mubr.bf16.gmra.mxu1 %v7089_v31  ;;  %v7152_v30 = vld [vmem:[%s7360_s23 + $0x158] sm:$0xff]  }
  0x55   : > { %6576 = vmatprep.mubr.bf16.mxu0 %v7090_v32  ;;  %6816 = vmatprep.mubr.bf16.mxu1 %v7091_v33  ;;  %v7153_v31 = vld [vmem:[%s7360_s23 + $0x518] sm:$0xff]   ;;  %v7154_v32 = vld [vmem:[%s7360_s23 + $0x160] sm:$0xff]  }
  0x56   : > { %v7155_v33 = vld [vmem:[%s7360_s23 + $0x520] sm:$0xff]  }
  0x5c   : > { %6577 = vmatmul.mubr.bf16.gmra.mxu0 %v7092_v34  ;;  %6817 = vmatmul.mubr.bf16.gmra.mxu1 %v7093_v35  ;;  %v7156_v34 = vld [vmem:[%s7360_s23 + $0x168] sm:$0xff]  }
  0x5d   : > { %6580 = vmatprep.mubr.bf16.mxu0 %v7094_v36  ;;  %6820 = vmatprep.mubr.bf16.mxu1 %v7095_v37  ;;  %v7157_v35 = vld [vmem:[%s7360_s23 + $0x528] sm:$0xff]   ;;  %v7158_v36 = vld [vmem:[%s7360_s23 + $0x170] sm:$0xff]  }
  0x5e   : > { %v7159_v37 = vld [vmem:[%s7360_s23 + $0x530] sm:$0xff]  }
  0x64   : > { %6581 = vmatmul.mubr.bf16.gmra.mxu0 %v7096_v38  ;;  %6821 = vmatmul.mubr.bf16.gmra.mxu1 %v7097_v39  ;;  %v7160_v38 = vld [vmem:[%s7360_s23 + $0x178] sm:$0xff]  }
  0x65   : > { %6584 = vmatprep.mubr.bf16.mxu0 %v7098_v40  ;;  %6824 = vmatprep.mubr.bf16.mxu1 %v7099_v41  ;;  %v7161_v39 = vld [vmem:[%s7360_s23 + $0x538] sm:$0xff]   ;;  %v7162_v40 = vld [vmem:[%s7360_s23 + $0x180] sm:$0xff]  }
  0x66   : > { %v7163_v41 = vld [vmem:[%s7360_s23 + $0x540] sm:$0xff]  }
  0x6c   : > { %6585 = vmatmul.mubr.bf16.gmra.mxu0 %v7100_v42  ;;  %6825 = vmatmul.mubr.bf16.gmra.mxu1 %v7101_v43  ;;  %v7164_v42 = vld [vmem:[%s7360_s23 + $0x188] sm:$0xff]  }
  0x6d   : > { %6588 = vmatprep.mubr.bf16.mxu0 %v7102_v44  ;;  %6828 = vmatprep.mubr.bf16.mxu1 %v7103_v45  ;;  %v7165_v43 = vld [vmem:[%s7360_s23 + $0x548] sm:$0xff]   ;;  %v7166_v44 = vld [vmem:[%s7360_s23 + $0x190] sm:$0xff]  }
  0x6e   : > { %v7167_v45 = vld [vmem:[%s7360_s23 + $0x550] sm:$0xff]  }
  0x74   : > { %6589 = vmatmul.mubr.bf16.gmra.mxu0 %v7104_v46  ;;  %6829 = vmatmul.mubr.bf16.gmra.mxu1 %v7105_v47 }
  0x75   : > { %6592 = vmatprep.mubr.bf16.mxu0 %v7106_v48  ;;  %6832 = vmatprep.mubr.bf16.mxu1 %v7107_v49 }
  0x7c   : > { %6593 = vmatmul.mubr.bf16.gmra.mxu0 %v7108_v50  ;;  %6833 = vmatmul.mubr.bf16.gmra.mxu1 %v7109_v51 }
  0x7d   : > { %6596 = vmatprep.mubr.bf16.mxu0 %v7110_v52  ;;  %6836 = vmatprep.mubr.bf16.mxu1 %v7111_v53  ;;  %v7168_v52 = vld [vmem:[%s7360_s23 + $0x198] sm:$0xff]  }
  0x7e   : > { %v7169_v53 = vld [vmem:[%s7360_s23 + $0x558] sm:$0xff]  }
  0x84   : > { %6597 = vmatmul.mubr.bf16.gmra.mxu0 %v7112_v54  ;;  %6837 = vmatmul.mubr.bf16.gmra.mxu1 %v7113_v55  ;;  %v7170_v55 = vld [vmem:[%s7360_s23 + $0x1a0] sm:$0xff]  }
  0x85   : > { %6600 = vmatprep.mubr.bf16.mxu0 %v7114_v56  ;;  %6840 = vmatprep.mubr.bf16.mxu1 %v7115_v57  ;;  %v7171_v56 = vld [vmem:[%s7360_s23 + $0x560] sm:$0xff]  }
  0x86   : > { %v7486_v57 = vld [vmem:[%s7978_s2] ss:$0 sm:$0xff] }
  0x8c   : > { %6601 = vmatmul.mubr.bf16.gmra.mxu0 %v7116_v58  ;;  %6841 = vmatmul.mubr.bf16.gmra.mxu1 %v7117_v59 }
  0x8d   : > { %6604 = vmatprep.mubr.bf16.mxu0 %v7118_v60  ;;  %6844 = vmatprep.mubr.bf16.mxu1 %v7119_v61 }
  0x94   : > { %6605 = vmatmul.mubr.bf16.gmra.mxu0 %v7120_v62  ;;  %6845 = vmatmul.mubr.bf16.gmra.mxu1 %v7121_v63 }
  0x95   : > { %6608 = vmatprep.mubr.bf16.mxu0 %v7122_v0  ;;  %6848 = vmatprep.mubr.bf16.mxu1 %v7123_v1 }
  0x9c   : > { %6609 = vmatmul.mubr.bf16.gmra.mxu0 %v7124_v2  ;;  %6849 = vmatmul.mubr.bf16.gmra.mxu1 %v7125_v3 }
  0x9d   : > { %6612 = vmatprep.mubr.bf16.mxu0 %v7126_v4  ;;  %6852 = vmatprep.mubr.bf16.mxu1 %v7127_v5 }
  0xa4   : > { %6613 = vmatmul.mubr.bf16.gmra.mxu0 %v7128_v6  ;;  %6853 = vmatmul.mubr.bf16.gmra.mxu1 %v7129_v7 }
  0xa5   : > { %6616 = vmatprep.mubr.bf16.mxu0 %v7130_v8  ;;  %6856 = vmatprep.mubr.bf16.mxu1 %v7131_v9 }
  0xac   : > { %6617 = vmatmul.mubr.bf16.gmra.mxu0 %v7132_v10  ;;  %6857 = vmatmul.mubr.bf16.gmra.mxu1 %v7133_v11  ;;  %v7172_v10 = vld [vmem:[%s7360_s23 + $0x1a8] sm:$0xff]  }
  0xad   : > { %6620 = vmatprep.mubr.bf16.mxu0 %v7134_v12  ;;  %6860 = vmatprep.mubr.bf16.mxu1 %v7135_v13  ;;  %v7173_v11 = vld [vmem:[%s7360_s23 + $0x568] sm:$0xff]  }
  0xb4   : > { %6621 = vmatmul.mubr.bf16.gmra.mxu0 %v7136_v14  ;;  %6861 = vmatmul.mubr.bf16.gmra.mxu1 %v7137_v15 }
  0xb5   : > { %6624 = vmatprep.mubr.bf16.mxu0 %v7138_v16  ;;  %6864 = vmatprep.mubr.bf16.mxu1 %v7139_v17  ;;  %v7174_v16 = vld [vmem:[%s7360_s23 + $0x1b0] sm:$0xff]  }
  0xb6   : > { %v7175_v17 = vld [vmem:[%s7360_s23 + $0x570] sm:$0xff]  }
  0xbc   : > { %6625 = vmatmul.mubr.bf16.gmra.mxu0 %v7140_v18  ;;  %6865 = vmatmul.mubr.bf16.gmra.mxu1 %v7141_v19 }
  0xbd   : > { %6628 = vmatprep.mubr.bf16.mxu0 %v7142_v20  ;;  %6868 = vmatprep.mubr.bf16.mxu1 %v7143_v21 }
  0xc4   : > { %6629 = vmatmul.mubr.bf16.gmra.mxu0 %v7144_v22  ;;  %6869 = vmatmul.mubr.bf16.gmra.mxu1 %v7145_v23 }
  0xc5   : > { %6632 = vmatprep.mubr.bf16.mxu0 %v7146_v24  ;;  %6872 = vmatprep.mubr.bf16.mxu1 %v7147_v25 }
  0xcc   : > { %6633 = vmatmul.mubr.bf16.gmra.mxu0 %v7148_v26  ;;  %6873 = vmatmul.mubr.bf16.gmra.mxu1 %v7149_v27 }
  0xcd   : > { %6636 = vmatprep.mubr.bf16.mxu0 %v7150_v28  ;;  %6876 = vmatprep.mubr.bf16.mxu1 %v7151_v29 }
  0xd4   : > { %6637 = vmatmul.mubr.bf16.gmra.mxu0 %v7152_v30  ;;  %6877 = vmatmul.mubr.bf16.gmra.mxu1 %v7153_v31 }
  0xd5   : > { %6640 = vmatprep.mubr.bf16.mxu0 %v7154_v32  ;;  %6880 = vmatprep.mubr.bf16.mxu1 %v7155_v33 }
  0xdc   : > { %6641 = vmatmul.mubr.bf16.gmra.mxu0 %v7156_v34  ;;  %6881 = vmatmul.mubr.bf16.gmra.mxu1 %v7157_v35 }
  0xdd   : > { %6644 = vmatprep.mubr.bf16.mxu0 %v7158_v36  ;;  %6884 = vmatprep.mubr.bf16.mxu1 %v7159_v37 }
  0xe4   : > { %6645 = vmatmul.mubr.bf16.gmra.mxu0 %v7160_v38  ;;  %6885 = vmatmul.mubr.bf16.gmra.mxu1 %v7161_v39 }
  0xe5   : > { %6648 = vmatprep.mubr.bf16.mxu0 %v7162_v40  ;;  %6888 = vmatprep.mubr.bf16.mxu1 %v7163_v41  ;;  %v7176_v40 = vld [vmem:[%s7360_s23 + $0x1b8] sm:$0xff]  }
  0xe6   : > { %v7177_v41 = vld [vmem:[%s7360_s23 + $0x578] sm:$0xff]  }
  0xec   : > { %v6554_v46 = vpop.f32.mrf.mxu0  ;;  %6649 = vmatmul.mubr.bf16.gmra.mxu0 %v7164_v42  ;;  %v6794_v47 = vpop.f32.mrf.mxu1  ;;  %6889 = vmatmul.mubr.bf16.gmra.mxu1 %v7165_v43 }
  0xed   : > { %6652 = vmatprep.mubr.bf16.mxu0 %v7166_v44  ;;  %6892 = vmatprep.mubr.bf16.mxu1 %v7167_v45  ;;  %v4111_v54 = vmax.f32 %v6554_v46, %v6794_v47  ;;  %v7178_v46 = vld [vmem:[%s7360_s23 + $0x1c0] sm:$0xff]  }
  0xee   : > { %v2190_v48 = vpop.f32.mrf.mxu0  ;;  %v3150_v49 = vpop.f32.mrf.mxu1  ;;  %v7179_v47 = vld [vmem:[%s7360_s23 + $0x580] sm:$0xff]  }
  0xef   : > { %v4358_v63 = vadd.f32 %v7486_v57, %v4111_v54  ;;  %v4109_v1 = vmax.f32 %v2190_v48, %v3150_v49 }
  0xf0   : > { %v6555_v50 = vpop.f32.mrf.mxu0  ;;  %v6795_v51 = vpop.f32.mrf.mxu1 }
  0xf1   : > { %v4112_v60 = vmax.f32 %v6555_v50, %v6795_v51  ;;  %v4598_v12 = vmax.f32 %v4358_v63, 0.0  ;;  %v4356_v18 = vadd.f32 %v7486_v57, %v4109_v1 }
  0xf2   : > { %v2193_v58 = vpop.f32.mrf.mxu0  ;;  %v3153_v59 = vpop.f32.mrf.mxu1 }
  0xf3   : > { %v4110_v4 = vmax.f32 %v2193_v58, %v3153_v59  ;;  %v4359_v7 = vadd.f32 %v7486_v57, %v4112_v60  ;;  %v4596_v34 = vmax.f32 %v4356_v18, 0.0 }
  0xf4   : > { %v6558_v61 = vpop.f32.mrf.mxu0  ;;  %6653 = vmatmul.mubr.bf16.gmra.mxu0 %v7168_v52  ;;  %v6798_v62 = vpop.f32.mrf.mxu1  ;;  %6893 = vmatmul.mubr.bf16.gmra.mxu1 %v7169_v53 }
  0xf5   : > { %v4115_v0 = vmax.f32 %v6558_v61, %v6798_v62  ;;  %6656 = vmatprep.mubr.bf16.mxu0 %v7170_v55  ;;  %6896 = vmatprep.mubr.bf16.mxu1 %v7171_v56  ;;  %v4357_v21 = vadd.f32 %v7486_v57, %v4110_v4  ;;  %v4599_v25 = vmax.f32 %v4359_v7, 0.0 }
  0xf6   : > { %v2206_v2 = vpop.f32.mrf.mxu0  ;;  %v3166_v3 = vpop.f32.mrf.mxu1 }
  0xf7   : > { %v4362_v5 = vadd.f32 %v7486_v57, %v4115_v0  ;;  %v4113_v6 = vmax.f32 %v2206_v2, %v3166_v3  ;;  %v4597_v35 = vmax.f32 %v4357_v21, 0.0  ;;  %v7180_v2 = vld [vmem:[%s7360_s23 + $0x1c8] sm:$0xff]  }
  0xf8   : > { %v6559_v8 = vpop.f32.mrf.mxu0  ;;  %v6799_v9 = vpop.f32.mrf.mxu1  ;;  %v7181_v3 = vld [vmem:[%s7360_s23 + $0x588] sm:$0xff]  }
  0xf9   : > { %v4602_v13 = vmax.f32 %v4362_v5, 0.0  ;;  %v4360_v14 = vadd.f32 %v7486_v57, %v4113_v6  ;;  %v4116_v15 = vmax.f32 %v6559_v8, %v6799_v9  ;;  %v7182_v8 = vld [vmem:[%s7360_s23 + $0x1d0] sm:$0xff]  }
  0xfa   : > { %v2209_v19 = vpop.f32.mrf.mxu0  ;;  %v3169_v20 = vpop.f32.mrf.mxu1  ;;  %v7183_v9 = vld [vmem:[%s7360_s23 + $0x590] sm:$0xff]  }
  0xfb   : > { %v4838_v22 = vmax.f32 %v4598_v12, %v4602_v13  ;;  %v4363_v23 = vadd.f32 %v7486_v57, %v4116_v15  ;;  %v4114_v24 = vmax.f32 %v2209_v19, %v3169_v20  ;;  %v4600_v29 = vmax.f32 %v4360_v14, 0.0 }
  0xfc   : > { %v6562_v26 = vpop.f32.mrf.mxu0  ;;  %6657 = vmatmul.mubr.bf16.gmra.mxu0 %v7172_v10  ;;  %v6802_v27 = vpop.f32.mrf.mxu1  ;;  %6897 = vmatmul.mubr.bf16.gmra.mxu1 %v7173_v11 }
  0xfd   : > { %v5991_v28 = vpack.c.bf16 %v4838_v22, %v4838_v22  ;;  %v4603_v30 = vmax.f32 %v4363_v23, 0.0  ;;  %v4361_v31 = vadd.f32 %v7486_v57, %v4114_v24  ;;  %6660 = vmatprep.mubr.bf16.mxu0 %v7174_v16  ;;  %6900 = vmatprep.mubr.bf16.mxu1 %v7175_v17  ;;  %v4836_v42 = vmax.f32 %v4596_v34, %v4600_v29 }
  0xfe   : > { %v2222_v32 = vpop.f32.mrf.mxu0  ;;  %v3182_v33 = vpop.f32.mrf.mxu1  ;;  %v4119_v45 = vmax.f32 %v6562_v26, %v6802_v27 }
  0xff   : > { %5438 = vst [vmem:[%s7503_s13 + $0x8] sm:$0xf] %v5991_v28  ;;  %v4839_v36 = vmax.f32 %v4599_v25, %v4603_v30  ;;  %v4601_v37 = vmax.f32 %v4361_v31, 0.0  ;;  %v4117_v56 = vmax.f32 %v2222_v32, %v3182_v33  ;;  %v7184_v32 = vld [vmem:[%s7360_s23 + $0x1d8] sm:$0xff]  }
 0x100   : > { %v6563_v38 = vpop.f32.mrf.mxu0  ;;  %v6803_v39 = vpop.f32.mrf.mxu1  ;;  %v4366_v54 = vadd.f32 %v7486_v57, %v4119_v45  ;;  %v7185_v33 = vld [vmem:[%s7360_s23 + $0x598] sm:$0xff]  }
 0x101   : > { %v5992_v43 = vpack.c.bf16 %v4839_v36, %v4839_v36  ;;  %v4837_v44 = vmax.f32 %v4597_v35, %v4601_v37  ;;  %v4120_v51 = vmax.f32 %v6563_v38, %v6803_v39  ;;  %v4364_v10 = vadd.f32 %v7486_v57, %v4117_v56  ;;  %v7186_v38 = vld [vmem:[%s7360_s23 + $0x1e0] sm:$0xff]  }
 0x102   : > { %v2225_v48 = vpop.f32.mrf.mxu0  ;;  %v3185_v49 = vpop.f32.mrf.mxu1  ;;  %v4606_v4 = vmax.f32 %v4366_v54, 0.0  ;;  %v7187_v39 = vld [vmem:[%s7360_s23 + $0x5a0] sm:$0xff]  }
 0x103   : > { %5439 = vst [vmem:[%s7503_s13 + $0xc] sm:$0x7] %v5992_v43  ;;  %v6112_v50 = vpack.c.bf16 %v4837_v44, %v4836_v42  ;;  %v4118_v60 = vmax.f32 %v2225_v48, %v3185_v49  ;;  %v4367_v63 = vadd.f32 %v7486_v57, %v4120_v51  ;;  %v4604_v26 = vmax.f32 %v4364_v10, 0.0 }
 0x104   : > { %v6566_v52 = vpop.f32.mrf.mxu0  ;;  %6661 = vmatmul.mubr.bf16.gmra.mxu0 %v7176_v40  ;;  %v6806_v53 = vpop.f32.mrf.mxu1  ;;  %6901 = vmatmul.mubr.bf16.gmra.mxu1 %v7177_v41 }
 0x105   : > { %6113 = vst [vmem:[%s7503_s13] sm:$0xff] %v6112_v50   ;;  %v4123_v55 = vmax.f32 %v6566_v52, %v6806_v53  ;;  %6664 = vmatprep.mubr.bf16.mxu0 %v7178_v46  ;;  %6904 = vmatprep.mubr.bf16.mxu1 %v7179_v47  ;;  %v4365_v13 = vadd.f32 %v7486_v57, %v4118_v60  ;;  %v4607_v17 = vmax.f32 %v4367_v63, 0.0 }
 0x106   : > { %v2238_v58 = vpop.f32.mrf.mxu0  ;;  %v3198_v59 = vpop.f32.mrf.mxu1 }
 0x107   : > { %v4370_v61 = vadd.f32 %v7486_v57, %v4123_v55  ;;  %v4121_v62 = vmax.f32 %v2238_v58, %v3198_v59  ;;  %v4605_v27 = vmax.f32 %v4365_v13, 0.0  ;;  %v7188_v58 = vld [vmem:[%s7360_s23 + $0x1e8] sm:$0xff]  }
 0x108   : > { %v6567_v0 = vpop.f32.mrf.mxu0  ;;  %v6807_v1 = vpop.f32.mrf.mxu1  ;;  %v7189_v59 = vld [vmem:[%s7360_s23 + $0x5a8] sm:$0xff]  }
 0x109   : > { %v4610_v5 = vmax.f32 %v4370_v61, 0.0  ;;  %v4368_v6 = vadd.f32 %v7486_v57, %v4121_v62  ;;  %v4124_v7 = vmax.f32 %v6567_v0, %v6807_v1  ;;  %v7190_v0 = vld [vmem:[%s7360_s23 + $0x1f0] sm:$0xff]  }
 0x10a   : > { %v2241_v11 = vpop.f32.mrf.mxu0  ;;  %v3201_v12 = vpop.f32.mrf.mxu1  ;;  %v7191_v1 = vld [vmem:[%s7360_s23 + $0x5b0] sm:$0xff]  }
 0x10b   : > { %v4842_v14 = vmax.f32 %v4606_v4, %v4610_v5  ;;  %v4371_v15 = vadd.f32 %v7486_v57, %v4124_v7  ;;  %v4122_v16 = vmax.f32 %v2241_v11, %v3201_v12  ;;  %v4608_v21 = vmax.f32 %v4368_v6, 0.0 }
 0x10c   : > { %v6570_v18 = vpop.f32.mrf.mxu0  ;;  %6665 = vmatmul.mubr.bf16.gmra.mxu0 %v7180_v2  ;;  %v6810_v19 = vpop.f32.mrf.mxu1  ;;  %6905 = vmatmul.mubr.bf16.gmra.mxu1 %v7181_v3 }
 0x10d   : > { %v5995_v20 = vpack.c.bf16 %v4842_v14, %v4842_v14  ;;  %v4611_v22 = vmax.f32 %v4371_v15, 0.0  ;;  %v4369_v23 = vadd.f32 %v7486_v57, %v4122_v16  ;;  %6668 = vmatprep.mubr.bf16.mxu0 %v7182_v8  ;;  %6908 = vmatprep.mubr.bf16.mxu1 %v7183_v9  ;;  %v4840_v34 = vmax.f32 %v4604_v26, %v4608_v21 }
 0x10e   : > { %v2254_v24 = vpop.f32.mrf.mxu0  ;;  %v3214_v25 = vpop.f32.mrf.mxu1  ;;  %v4127_v37 = vmax.f32 %v6570_v18, %v6810_v19 }
 0x10f   : > { %5442 = vst [vmem:[%s7503_s13 + $0x18] sm:$0xf] %v5995_v20  ;;  %v4843_v28 = vmax.f32 %v4607_v17, %v4611_v22  ;;  %v4609_v29 = vmax.f32 %v4369_v23, 0.0  ;;  %v4125_v48 = vmax.f32 %v2254_v24, %v3214_v25  ;;  %v7192_v24 = vld [vmem:[%s7360_s23 + $0x1f8] sm:$0xff]  }
 0x110   : > { %v6571_v30 = vpop.f32.mrf.mxu0  ;;  %v6811_v31 = vpop.f32.mrf.mxu1  ;;  %v4374_v46 = vadd.f32 %v7486_v57, %v4127_v37  ;;  %v7193_v25 = vld [vmem:[%s7360_s23 + $0x5b8] sm:$0xff]  }
 0x111   : > { %v5996_v35 = vpack.c.bf16 %v4843_v28, %v4843_v28  ;;  %v4841_v36 = vmax.f32 %v4605_v27, %v4609_v29  ;;  %v4128_v43 = vmax.f32 %v6571_v30, %v6811_v31  ;;  %v4372_v2 = vadd.f32 %v7486_v57, %v4125_v48  ;;  %v7194_v30 = vld [vmem:[%s7360_s23 + $0x200] sm:$0xff]  }
 0x112   : > { %v2257_v40 = vpop.f32.mrf.mxu0  ;;  %v3217_v41 = vpop.f32.mrf.mxu1  ;;  %v4614_v60 = vmax.f32 %v4374_v46, 0.0  ;;  %v7195_v31 = vld [vmem:[%s7360_s23 + $0x5c0] sm:$0xff]  }
 0x113   : > { %5443 = vst [vmem:[%s7503_s13 + $0x1c] sm:$0x7] %v5996_v35  ;;  %v6117_v42 = vpack.c.bf16 %v4841_v36, %v4840_v34  ;;  %v4126_v51 = vmax.f32 %v2257_v40, %v3217_v41  ;;  %v4375_v54 = vadd.f32 %v7486_v57, %v4128_v43  ;;  %v4612_v18 = vmax.f32 %v4372_v2, 0.0 }
 0x114   : > { %v6574_v44 = vpop.f32.mrf.mxu0  ;;  %6669 = vmatmul.mubr.bf16.gmra.mxu0 %v7184_v32  ;;  %v6814_v45 = vpop.f32.mrf.mxu1  ;;  %6909 = vmatmul.mubr.bf16.gmra.mxu1 %v7185_v33 }
 0x115   : > { %6259 = vst [vmem:[%s7503_s13 + $0x10] sm:$0xff] %v6117_v42   ;;  %v4131_v47 = vmax.f32 %v6574_v44, %v6814_v45  ;;  %6672 = vmatprep.mubr.bf16.mxu0 %v7186_v38  ;;  %6912 = vmatprep.mubr.bf16.mxu1 %v7187_v39  ;;  %v4373_v5 = vadd.f32 %v7486_v57, %v4126_v51  ;;  %v4615_v9 = vmax.f32 %v4375_v54, 0.0 }
 0x116   : > { %v2270_v49 = vpop.f32.mrf.mxu0  ;;  %v3230_v50 = vpop.f32.mrf.mxu1 }
 0x117   : > { %v4378_v52 = vadd.f32 %v7486_v57, %v4131_v47  ;;  %v4129_v53 = vmax.f32 %v2270_v49, %v3230_v50  ;;  %v4613_v19 = vmax.f32 %v4373_v5, 0.0  ;;  %v7196_v49 = vld [vmem:[%s7360_s23 + $0x208] sm:$0xff]  }
 0x118   : > { %v6575_v55 = vpop.f32.mrf.mxu0  ;;  %v6815_v56 = vpop.f32.mrf.mxu1  ;;  %v7197_v50 = vld [vmem:[%s7360_s23 + $0x5c8] sm:$0xff]  }
 0x119   : > { %v4618_v61 = vmax.f32 %v4378_v52, 0.0  ;;  %v4376_v62 = vadd.f32 %v7486_v57, %v4129_v53  ;;  %v4132_v63 = vmax.f32 %v6575_v55, %v6815_v56  ;;  %v7198_v55 = vld [vmem:[%s7360_s23 + $0x210] sm:$0xff]  }
 0x11a   : > { %v2273_v3 = vpop.f32.mrf.mxu0  ;;  %v3233_v4 = vpop.f32.mrf.mxu1  ;;  %v7199_v56 = vld [vmem:[%s7360_s23 + $0x5d0] sm:$0xff]  }
 0x11b   : > { %v4846_v6 = vmax.f32 %v4614_v60, %v4618_v61  ;;  %v4379_v7 = vadd.f32 %v7486_v57, %v4132_v63  ;;  %v4130_v8 = vmax.f32 %v2273_v3, %v3233_v4  ;;  %v4616_v13 = vmax.f32 %v4376_v62, 0.0 }
 0x11c   : > { %v6578_v10 = vpop.f32.mrf.mxu0  ;;  %6673 = vmatmul.mubr.bf16.gmra.mxu0 %v7188_v58  ;;  %v6818_v11 = vpop.f32.mrf.mxu1  ;;  %6913 = vmatmul.mubr.bf16.gmra.mxu1 %v7189_v59 }
 0x11d   : > { %v5999_v12 = vpack.c.bf16 %v4846_v6, %v4846_v6  ;;  %v4619_v14 = vmax.f32 %v4379_v7, 0.0  ;;  %v4377_v15 = vadd.f32 %v7486_v57, %v4130_v8  ;;  %6676 = vmatprep.mubr.bf16.mxu0 %v7190_v0  ;;  %6916 = vmatprep.mubr.bf16.mxu1 %v7191_v1  ;;  %v4844_v26 = vmax.f32 %v4612_v18, %v4616_v13 }
 0x11e   : > { %v2286_v16 = vpop.f32.mrf.mxu0  ;;  %v3246_v17 = vpop.f32.mrf.mxu1  ;;  %v4135_v29 = vmax.f32 %v6578_v10, %v6818_v11 }
 0x11f   : > { %5446 = vst [vmem:[%s7503_s13 + $0x28] sm:$0xf] %v5999_v12  ;;  %v4847_v20 = vmax.f32 %v4615_v9, %v4619_v14  ;;  %v4617_v21 = vmax.f32 %v4377_v15, 0.0  ;;  %v4133_v40 = vmax.f32 %v2286_v16, %v3246_v17  ;;  %v7200_v16 = vld [vmem:[%s7360_s23 + $0x218] sm:$0xff]  }
 0x120   : > { %v6579_v22 = vpop.f32.mrf.mxu0  ;;  %v6819_v23 = vpop.f32.mrf.mxu1  ;;  %v4382_v38 = vadd.f32 %v7486_v57, %v4135_v29  ;;  %v7201_v17 = vld [vmem:[%s7360_s23 + $0x5d8] sm:$0xff]  }
 0x121   : > { %v6000_v27 = vpack.c.bf16 %v4847_v20, %v4847_v20  ;;  %v4845_v28 = vmax.f32 %v4613_v19, %v4617_v21  ;;  %v4136_v35 = vmax.f32 %v6579_v22, %v6819_v23  ;;  %v4380_v58 = vadd.f32 %v7486_v57, %v4133_v40  ;;  %v7202_v22 = vld [vmem:[%s7360_s23 + $0x220] sm:$0xff]  }
 0x122   : > { %v2289_v32 = vpop.f32.mrf.mxu0  ;;  %v3249_v33 = vpop.f32.mrf.mxu1  ;;  %v4622_v51 = vmax.f32 %v4382_v38, 0.0  ;;  %v7203_v23 = vld [vmem:[%s7360_s23 + $0x5e0] sm:$0xff]  }
 0x123   : > { %5447 = vst [vmem:[%s7503_s13 + $0x2c] sm:$0x7] %v6000_v27  ;;  %v6122_v34 = vpack.c.bf16 %v4845_v28, %v4844_v26  ;;  %v4134_v43 = vmax.f32 %v2289_v32, %v3249_v33  ;;  %v4383_v46 = vadd.f32 %v7486_v57, %v4136_v35  ;;  %v4620_v10 = vmax.f32 %v4380_v58, 0.0 }
 0x124   : > { %v6582_v36 = vpop.f32.mrf.mxu0  ;;  %6677 = vmatmul.mubr.bf16.gmra.mxu0 %v7192_v24  ;;  %v6822_v37 = vpop.f32.mrf.mxu1  ;;  %6917 = vmatmul.mubr.bf16.gmra.mxu1 %v7193_v25 }
 0x125   : > { %6260 = vst [vmem:[%s7503_s13 + $0x20] sm:$0xff] %v6122_v34   ;;  %v4139_v39 = vmax.f32 %v6582_v36, %v6822_v37  ;;  %6680 = vmatprep.mubr.bf16.mxu0 %v7194_v30  ;;  %6920 = vmatprep.mubr.bf16.mxu1 %v7195_v31  ;;  %v4381_v61 = vadd.f32 %v7486_v57, %v4134_v43  ;;  %v4623_v1 = vmax.f32 %v4383_v46, 0.0 }
 0x126   : > { %v2302_v41 = vpop.f32.mrf.mxu0  ;;  %v3262_v42 = vpop.f32.mrf.mxu1 }
 0x127   : > { %v4386_v44 = vadd.f32 %v7486_v57, %v4139_v39  ;;  %v4137_v45 = vmax.f32 %v2302_v41, %v3262_v42  ;;  %v4621_v11 = vmax.f32 %v4381_v61, 0.0  ;;  %v7204_v41 = vld [vmem:[%s7360_s23 + $0x228] sm:$0xff]  }
 0x128   : > { %v6583_v47 = vpop.f32.mrf.mxu0  ;;  %v6823_v48 = vpop.f32.mrf.mxu1  ;;  %v7205_v42 = vld [vmem:[%s7360_s23 + $0x5e8] sm:$0xff]  }
 0x129   : > { %v4626_v52 = vmax.f32 %v4386_v44, 0.0  ;;  %v4384_v53 = vadd.f32 %v7486_v57, %v4137_v45  ;;  %v4140_v54 = vmax.f32 %v6583_v47, %v6823_v48  ;;  %v7206_v47 = vld [vmem:[%s7360_s23 + $0x230] sm:$0xff]  }
 0x12a   : > { %v2305_v59 = vpop.f32.mrf.mxu0  ;;  %v3265_v60 = vpop.f32.mrf.mxu1  ;;  %v7207_v48 = vld [vmem:[%s7360_s23 + $0x5f0] sm:$0xff]  }
 0x12b   : > { %v4850_v62 = vmax.f32 %v4622_v51, %v4626_v52  ;;  %v4387_v63 = vadd.f32 %v7486_v57, %v4140_v54  ;;  %v4138_v0 = vmax.f32 %v2305_v59, %v3265_v60  ;;  %v4624_v5 = vmax.f32 %v4384_v53, 0.0 }
 0x12c   : > { %v6586_v2 = vpop.f32.mrf.mxu0  ;;  %6681 = vmatmul.mubr.bf16.gmra.mxu0 %v7196_v49  ;;  %v6826_v3 = vpop.f32.mrf.mxu1  ;;  %6921 = vmatmul.mubr.bf16.gmra.mxu1 %v7197_v50 }
 0x12d   : > { %v6003_v4 = vpack.c.bf16 %v4850_v62, %v4850_v62  ;;  %v4627_v6 = vmax.f32 %v4387_v63, 0.0  ;;  %v4385_v7 = vadd.f32 %v7486_v57, %v4138_v0  ;;  %6684 = vmatprep.mubr.bf16.mxu0 %v7198_v55  ;;  %6924 = vmatprep.mubr.bf16.mxu1 %v7199_v56  ;;  %v4848_v18 = vmax.f32 %v4620_v10, %v4624_v5 }
 0x12e   : > { %v2318_v8 = vpop.f32.mrf.mxu0  ;;  %v3278_v9 = vpop.f32.mrf.mxu1  ;;  %v4143_v21 = vmax.f32 %v6586_v2, %v6826_v3 }
 0x12f   : > { %5450 = vst [vmem:[%s7503_s13 + $0x38] sm:$0xf] %v6003_v4  ;;  %v4851_v12 = vmax.f32 %v4623_v1, %v4627_v6  ;;  %v4625_v13 = vmax.f32 %v4385_v7, 0.0  ;;  %v4141_v32 = vmax.f32 %v2318_v8, %v3278_v9  ;;  %v7208_v8 = vld [vmem:[%s7360_s23 + $0x238] sm:$0xff]  }
 0x130   : > { %v6587_v14 = vpop.f32.mrf.mxu0  ;;  %v6827_v15 = vpop.f32.mrf.mxu1  ;;  %v4390_v30 = vadd.f32 %v7486_v57, %v4143_v21  ;;  %v7209_v9 = vld [vmem:[%s7360_s23 + $0x5f8] sm:$0xff]  }
 0x131   : > { %v6004_v19 = vpack.c.bf16 %v4851_v12, %v4851_v12  ;;  %v4849_v20 = vmax.f32 %v4621_v11, %v4625_v13  ;;  %v4144_v27 = vmax.f32 %v6587_v14, %v6827_v15  ;;  %v4388_v49 = vadd.f32 %v7486_v57, %v4141_v32  ;;  %v7210_v14 = vld [vmem:[%s7360_s23 + $0x240] sm:$0xff]  }
 0x132   : > { %v2321_v24 = vpop.f32.mrf.mxu0  ;;  %v3281_v25 = vpop.f32.mrf.mxu1  ;;  %v4630_v43 = vmax.f32 %v4390_v30, 0.0  ;;  %v7211_v15 = vld [vmem:[%s7360_s23 + $0x600] sm:$0xff]  }
 0x133   : > { %5451 = vst [vmem:[%s7503_s13 + $0x3c] sm:$0x7] %v6004_v19  ;;  %v6127_v26 = vpack.c.bf16 %v4849_v20, %v4848_v18  ;;  %v4142_v35 = vmax.f32 %v2321_v24, %v3281_v25  ;;  %v4391_v38 = vadd.f32 %v7486_v57, %v4144_v27  ;;  %v4628_v2 = vmax.f32 %v4388_v49, 0.0 }
 0x134   : > { %v6590_v28 = vpop.f32.mrf.mxu0  ;;  %6685 = vmatmul.mubr.bf16.gmra.mxu0 %v7200_v16  ;;  %v6830_v29 = vpop.f32.mrf.mxu1  ;;  %6925 = vmatmul.mubr.bf16.gmra.mxu1 %v7201_v17 }
 0x135   : > { %6261 = vst [vmem:[%s7503_s13 + $0x30] sm:$0xff] %v6127_v26   ;;  %v4147_v31 = vmax.f32 %v6590_v28, %v6830_v29  ;;  %6688 = vmatprep.mubr.bf16.mxu0 %v7202_v22  ;;  %6928 = vmatprep.mubr.bf16.mxu1 %v7203_v23  ;;  %v4389_v52 = vadd.f32 %v7486_v57, %v4142_v35  ;;  %v4631_v56 = vmax.f32 %v4391_v38, 0.0 }
 0x136   : > { %v2334_v33 = vpop.f32.mrf.mxu0  ;;  %v3294_v34 = vpop.f32.mrf.mxu1 }
 0x137   : > { %v4394_v36 = vadd.f32 %v7486_v57, %v4147_v31  ;;  %v4145_v37 = vmax.f32 %v2334_v33, %v3294_v34  ;;  %v4629_v3 = vmax.f32 %v4389_v52, 0.0  ;;  %v7212_v33 = vld [vmem:[%s7360_s23 + $0x248] sm:$0xff]  }
 0x138   : > { %v6591_v39 = vpop.f32.mrf.mxu0  ;;  %v6831_v40 = vpop.f32.mrf.mxu1  ;;  %v7213_v34 = vld [vmem:[%s7360_s23 + $0x608] sm:$0xff]  }
 0x139   : > { %v4634_v44 = vmax.f32 %v4394_v36, 0.0  ;;  %v4392_v45 = vadd.f32 %v7486_v57, %v4145_v37  ;;  %v4148_v46 = vmax.f32 %v6591_v39, %v6831_v40  ;;  %v7214_v39 = vld [vmem:[%s7360_s23 + $0x250] sm:$0xff]  }
 0x13a   : > { %v2337_v50 = vpop.f32.mrf.mxu0  ;;  %v3297_v51 = vpop.f32.mrf.mxu1  ;;  %v7215_v40 = vld [vmem:[%s7360_s23 + $0x610] sm:$0xff]  }
 0x13b   : > { %v4854_v53 = vmax.f32 %v4630_v43, %v4634_v44  ;;  %v4395_v54 = vadd.f32 %v7486_v57, %v4148_v46  ;;  %v4146_v55 = vmax.f32 %v2337_v50, %v3297_v51  ;;  %v4632_v61 = vmax.f32 %v4392_v45, 0.0 }
 0x13c   : > { %v6594_v58 = vpop.f32.mrf.mxu0  ;;  %6689 = vmatmul.mubr.bf16.gmra.mxu0 %v7204_v41  ;;  %v6834_v59 = vpop.f32.mrf.mxu1  ;;  %6929 = vmatmul.mubr.bf16.gmra.mxu1 %v7205_v42 }
 0x13d   : > { %v6007_v60 = vpack.c.bf16 %v4854_v53, %v4854_v53  ;;  %v4635_v62 = vmax.f32 %v4395_v54, 0.0  ;;  %v4393_v63 = vadd.f32 %v7486_v57, %v4146_v55  ;;  %6692 = vmatprep.mubr.bf16.mxu0 %v7206_v47  ;;  %6932 = vmatprep.mubr.bf16.mxu1 %v7207_v48  ;;  %v4852_v10 = vmax.f32 %v4628_v2, %v4632_v61 }
 0x13e   : > { %v2350_v0 = vpop.f32.mrf.mxu0  ;;  %v3310_v1 = vpop.f32.mrf.mxu1  ;;  %v4151_v13 = vmax.f32 %v6594_v58, %v6834_v59 }
 0x13f   : > { %5454 = vst [vmem:[%s7503_s13 + $0x48] sm:$0xf] %v6007_v60  ;;  %v4855_v4 = vmax.f32 %v4631_v56, %v4635_v62  ;;  %v4633_v5 = vmax.f32 %v4393_v63, 0.0  ;;  %v4149_v24 = vmax.f32 %v2350_v0, %v3310_v1  ;;  %v7216_v0 = vld [vmem:[%s7360_s23 + $0x258] sm:$0xff]  }
 0x140   : > { %v6595_v6 = vpop.f32.mrf.mxu0  ;;  %v6835_v7 = vpop.f32.mrf.mxu1  ;;  %v4398_v22 = vadd.f32 %v7486_v57, %v4151_v13  ;;  %v7217_v1 = vld [vmem:[%s7360_s23 + $0x618] sm:$0xff]  }
 0x141   : > { %v6008_v11 = vpack.c.bf16 %v4855_v4, %v4855_v4  ;;  %v4853_v12 = vmax.f32 %v4629_v3, %v4633_v5  ;;  %v4152_v19 = vmax.f32 %v6595_v6, %v6835_v7  ;;  %v4396_v41 = vadd.f32 %v7486_v57, %v4149_v24  ;;  %v7218_v6 = vld [vmem:[%s7360_s23 + $0x260] sm:$0xff]  }
 0x142   : > { %v2353_v16 = vpop.f32.mrf.mxu0  ;;  %v3313_v17 = vpop.f32.mrf.mxu1  ;;  %v4638_v35 = vmax.f32 %v4398_v22, 0.0  ;;  %v7219_v7 = vld [vmem:[%s7360_s23 + $0x620] sm:$0xff]  }
 0x143   : > { %5455 = vst [vmem:[%s7503_s13 + $0x4c] sm:$0x7] %v6008_v11  ;;  %v6132_v18 = vpack.c.bf16 %v4853_v12, %v4852_v10  ;;  %v4150_v27 = vmax.f32 %v2353_v16, %v3313_v17  ;;  %v4399_v30 = vadd.f32 %v7486_v57, %v4152_v19  ;;  %v4636_v58 = vmax.f32 %v4396_v41, 0.0 }
 0x144   : > { %v6598_v20 = vpop.f32.mrf.mxu0  ;;  %6693 = vmatmul.mubr.bf16.gmra.mxu0 %v7208_v8  ;;  %v6838_v21 = vpop.f32.mrf.mxu1  ;;  %6933 = vmatmul.mubr.bf16.gmra.mxu1 %v7209_v9 }
 0x145   : > { %6262 = vst [vmem:[%s7503_s13 + $0x40] sm:$0xff] %v6132_v18   ;;  %v4155_v23 = vmax.f32 %v6598_v20, %v6838_v21  ;;  %6696 = vmatprep.mubr.bf16.mxu0 %v7210_v14  ;;  %6936 = vmatprep.mubr.bf16.mxu1 %v7211_v15  ;;  %v4397_v44 = vadd.f32 %v7486_v57, %v4150_v27  ;;  %v4639_v48 = vmax.f32 %v4399_v30, 0.0 }
 0x146   : > { %v2366_v25 = vpop.f32.mrf.mxu0  ;;  %v3326_v26 = vpop.f32.mrf.mxu1 }
 0x147   : > { %v4402_v28 = vadd.f32 %v7486_v57, %v4155_v23  ;;  %v4153_v29 = vmax.f32 %v2366_v25, %v3326_v26  ;;  %v4637_v59 = vmax.f32 %v4397_v44, 0.0  ;;  %v7220_v25 = vld [vmem:[%s7360_s23 + $0x268] sm:$0xff]  }
 0x148   : > { %v6599_v31 = vpop.f32.mrf.mxu0  ;;  %v6839_v32 = vpop.f32.mrf.mxu1  ;;  %v7221_v26 = vld [vmem:[%s7360_s23 + $0x628] sm:$0xff]  }
 0x149   : > { %v4642_v36 = vmax.f32 %v4402_v28, 0.0  ;;  %v4400_v37 = vadd.f32 %v7486_v57, %v4153_v29  ;;  %v4156_v38 = vmax.f32 %v6599_v31, %v6839_v32  ;;  %v7222_v31 = vld [vmem:[%s7360_s23 + $0x270] sm:$0xff]  }
 0x14a   : > { %v2369_v42 = vpop.f32.mrf.mxu0  ;;  %v3329_v43 = vpop.f32.mrf.mxu1  ;;  %v7223_v32 = vld [vmem:[%s7360_s23 + $0x630] sm:$0xff]  }
 0x14b   : > { %v4858_v45 = vmax.f32 %v4638_v35, %v4642_v36  ;;  %v4403_v46 = vadd.f32 %v7486_v57, %v4156_v38  ;;  %v4154_v47 = vmax.f32 %v2369_v42, %v3329_v43  ;;  %v4640_v52 = vmax.f32 %v4400_v37, 0.0 }
 0x14c   : > { %v6602_v49 = vpop.f32.mrf.mxu0  ;;  %6697 = vmatmul.mubr.bf16.gmra.mxu0 %v7212_v33  ;;  %v6842_v50 = vpop.f32.mrf.mxu1  ;;  %6937 = vmatmul.mubr.bf16.gmra.mxu1 %v7213_v34 }
 0x14d   : > { %v6011_v51 = vpack.c.bf16 %v4858_v45, %v4858_v45  ;;  %v4643_v53 = vmax.f32 %v4403_v46, 0.0  ;;  %v4401_v54 = vadd.f32 %v7486_v57, %v4154_v47  ;;  %6700 = vmatprep.mubr.bf16.mxu0 %v7214_v39  ;;  %6940 = vmatprep.mubr.bf16.mxu1 %v7215_v40  ;;  %v4856_v2 = vmax.f32 %v4636_v58, %v4640_v52 }
 0x14e   : > { %v2382_v55 = vpop.f32.mrf.mxu0  ;;  %v3342_v56 = vpop.f32.mrf.mxu1  ;;  %v4159_v5 = vmax.f32 %v6602_v49, %v6842_v50 }
 0x14f   : > { %5458 = vst [vmem:[%s7503_s13 + $0x58] sm:$0xf] %v6011_v51  ;;  %v4859_v60 = vmax.f32 %v4639_v48, %v4643_v53  ;;  %v4641_v61 = vmax.f32 %v4401_v54, 0.0  ;;  %v4157_v16 = vmax.f32 %v2382_v55, %v3342_v56  ;;  %v7224_v55 = vld [vmem:[%s7360_s23 + $0x278] sm:$0xff]  }
 0x150   : > { %v6603_v62 = vpop.f32.mrf.mxu0  ;;  %v6843_v63 = vpop.f32.mrf.mxu1  ;;  %v4406_v14 = vadd.f32 %v7486_v57, %v4159_v5  ;;  %v7225_v56 = vld [vmem:[%s7360_s23 + $0x638] sm:$0xff]  }
 0x151   : > { %v6012_v3 = vpack.c.bf16 %v4859_v60, %v4859_v60  ;;  %v4857_v4 = vmax.f32 %v4637_v59, %v4641_v61  ;;  %v4160_v11 = vmax.f32 %v6603_v62, %v6843_v63  ;;  %v4404_v33 = vadd.f32 %v7486_v57, %v4157_v16  ;;  %v7226_v62 = vld [vmem:[%s7360_s23 + $0x280] sm:$0xff]  }
 0x152   : > { %v2385_v8 = vpop.f32.mrf.mxu0  ;;  %v3345_v9 = vpop.f32.mrf.mxu1  ;;  %v4646_v27 = vmax.f32 %v4406_v14, 0.0  ;;  %v7227_v63 = vld [vmem:[%s7360_s23 + $0x640] sm:$0xff]  }
 0x153   : > { %5459 = vst [vmem:[%s7503_s13 + $0x5c] sm:$0x7] %v6012_v3  ;;  %v6137_v10 = vpack.c.bf16 %v4857_v4, %v4856_v2  ;;  %v4158_v19 = vmax.f32 %v2385_v8, %v3345_v9  ;;  %v4407_v22 = vadd.f32 %v7486_v57, %v4160_v11  ;;  %v4644_v49 = vmax.f32 %v4404_v33, 0.0 }
 0x154   : > { %v6606_v12 = vpop.f32.mrf.mxu0  ;;  %6701 = vmatmul.mubr.bf16.gmra.mxu0 %v7216_v0  ;;  %v6846_v13 = vpop.f32.mrf.mxu1  ;;  %6941 = vmatmul.mubr.bf16.gmra.mxu1 %v7217_v1 }
 0x155   : > { %6263 = vst [vmem:[%s7503_s13 + $0x50] sm:$0xff] %v6137_v10   ;;  %v4163_v15 = vmax.f32 %v6606_v12, %v6846_v13  ;;  %6704 = vmatprep.mubr.bf16.mxu0 %v7218_v6  ;;  %6944 = vmatprep.mubr.bf16.mxu1 %v7219_v7  ;;  %v4405_v36 = vadd.f32 %v7486_v57, %v4158_v19  ;;  %v4647_v40 = vmax.f32 %v4407_v22, 0.0 }
 0x156   : > { %v2398_v17 = vpop.f32.mrf.mxu0  ;;  %v3358_v18 = vpop.f32.mrf.mxu1 }
 0x157   : > { %v4410_v20 = vadd.f32 %v7486_v57, %v4163_v15  ;;  %v4161_v21 = vmax.f32 %v2398_v17, %v3358_v18  ;;  %v4645_v50 = vmax.f32 %v4405_v36, 0.0  ;;  %v7228_v17 = vld [vmem:[%s7360_s23 + $0x288] sm:$0xff]  }
 0x158   : > { %v6607_v23 = vpop.f32.mrf.mxu0  ;;  %v6847_v24 = vpop.f32.mrf.mxu1  ;;  %v7229_v18 = vld [vmem:[%s7360_s23 + $0x648] sm:$0xff]  }
 0x159   : > { %v4650_v28 = vmax.f32 %v4410_v20, 0.0  ;;  %v4408_v29 = vadd.f32 %v7486_v57, %v4161_v21  ;;  %v4164_v30 = vmax.f32 %v6607_v23, %v6847_v24  ;;  %v7230_v23 = vld [vmem:[%s7360_s23 + $0x290] sm:$0xff]  }
 0x15a   : > { %v2401_v34 = vpop.f32.mrf.mxu0  ;;  %v3361_v35 = vpop.f32.mrf.mxu1  ;;  %v7231_v24 = vld [vmem:[%s7360_s23 + $0x650] sm:$0xff]  }
 0x15b   : > { %v4862_v37 = vmax.f32 %v4646_v27, %v4650_v28  ;;  %v4411_v38 = vadd.f32 %v7486_v57, %v4164_v30  ;;  %v4162_v39 = vmax.f32 %v2401_v34, %v3361_v35  ;;  %v4648_v44 = vmax.f32 %v4408_v29, 0.0 }
 0x15c   : > { %v6610_v41 = vpop.f32.mrf.mxu0  ;;  %6705 = vmatmul.mubr.bf16.gmra.mxu0 %v7220_v25  ;;  %v6850_v42 = vpop.f32.mrf.mxu1  ;;  %6945 = vmatmul.mubr.bf16.gmra.mxu1 %v7221_v26 }
 0x15d   : > { %v6015_v43 = vpack.c.bf16 %v4862_v37, %v4862_v37  ;;  %v4651_v45 = vmax.f32 %v4411_v38, 0.0  ;;  %v4409_v46 = vadd.f32 %v7486_v57, %v4162_v39  ;;  %6708 = vmatprep.mubr.bf16.mxu0 %v7222_v31  ;;  %6948 = vmatprep.mubr.bf16.mxu1 %v7223_v32  ;;  %v4860_v58 = vmax.f32 %v4644_v49, %v4648_v44 }
 0x15e   : > { %v2414_v47 = vpop.f32.mrf.mxu0  ;;  %v3374_v48 = vpop.f32.mrf.mxu1  ;;  %v4167_v61 = vmax.f32 %v6610_v41, %v6850_v42 }
 0x15f   : > { %5462 = vst [vmem:[%s7503_s13 + $0x68] sm:$0xf] %v6015_v43  ;;  %v4863_v51 = vmax.f32 %v4647_v40, %v4651_v45  ;;  %v4649_v52 = vmax.f32 %v4409_v46, 0.0  ;;  %v4165_v8 = vmax.f32 %v2414_v47, %v3374_v48  ;;  %v7232_v47 = vld [vmem:[%s7360_s23 + $0x298] sm:$0xff]  }
 0x160   : > { %v6611_v53 = vpop.f32.mrf.mxu0  ;;  %v6851_v54 = vpop.f32.mrf.mxu1  ;;  %v4414_v6 = vadd.f32 %v7486_v57, %v4167_v61  ;;  %v7233_v48 = vld [vmem:[%s7360_s23 + $0x658] sm:$0xff]   ;;  %v7649_v61 = vld [vmem:[%s7978_s2] ss:$0 sm:$0xff] }
 0x161   : > { %v6016_v59 = vpack.c.bf16 %v4863_v51, %v4863_v51  ;;  %v4861_v60 = vmax.f32 %v4645_v50, %v4649_v52  ;;  %v4168_v3 = vmax.f32 %v6611_v53, %v6851_v54  ;;  %v4412_v25 = vadd.f32 %v7486_v57, %v4165_v8  ;;  %v7234_v52 = vld [vmem:[%s7360_s23 + $0x2a0] sm:$0xff]  }
 0x162   : > { %v2417_v0 = vpop.f32.mrf.mxu0  ;;  %v3377_v1 = vpop.f32.mrf.mxu1  ;;  %v4654_v19 = vmax.f32 %v4414_v6, 0.0  ;;  %v7235_v53 = vld [vmem:[%s7360_s23 + $0x660] sm:$0xff]  }
 0x163   : > { %5463 = vst [vmem:[%s7503_s13 + $0x6c] sm:$0x7] %v6016_v59  ;;  %v6142_v2 = vpack.c.bf16 %v4861_v60, %v4860_v58  ;;  %v4166_v11 = vmax.f32 %v2417_v0, %v3377_v1  ;;  %v4415_v14 = vadd.f32 %v7486_v57, %v4168_v3  ;;  %v4652_v41 = vmax.f32 %v4412_v25, 0.0 }
 0x164   : > { %v6614_v4 = vpop.f32.mrf.mxu0  ;;  %6709 = vmatmul.mubr.bf16.gmra.mxu0 %v7224_v55  ;;  %v6854_v5 = vpop.f32.mrf.mxu1  ;;  %6949 = vmatmul.mubr.bf16.gmra.mxu1 %v7225_v56 }
 0x165   : > { %6264 = vst [vmem:[%s7503_s13 + $0x60] sm:$0xff] %v6142_v2   ;;  %v4171_v7 = vmax.f32 %v6614_v4, %v6854_v5  ;;  %6712 = vmatprep.mubr.bf16.mxu0 %v7226_v62  ;;  %6952 = vmatprep.mubr.bf16.mxu1 %v7227_v63  ;;  %v4413_v28 = vadd.f32 %v7486_v57, %v4166_v11  ;;  %v4655_v32 = vmax.f32 %v4415_v14, 0.0 }
 0x166   : > { %v2430_v9 = vpop.f32.mrf.mxu0  ;;  %v3390_v10 = vpop.f32.mrf.mxu1 }
 0x167   : > { %v4418_v12 = vadd.f32 %v7486_v57, %v4171_v7  ;;  %v4169_v13 = vmax.f32 %v2430_v9, %v3390_v10  ;;  %v4653_v42 = vmax.f32 %v4413_v28, 0.0  ;;  %v7236_v9 = vld [vmem:[%s7360_s23 + $0x2a8] sm:$0xff]  }
 0x168   : > { %v6615_v15 = vpop.f32.mrf.mxu0  ;;  %v6855_v16 = vpop.f32.mrf.mxu1  ;;  %v7237_v10 = vld [vmem:[%s7360_s23 + $0x668] sm:$0xff]  }
 0x169   : > { %v4658_v20 = vmax.f32 %v4418_v12, 0.0  ;;  %v4416_v21 = vadd.f32 %v7486_v57, %v4169_v13  ;;  %v4172_v22 = vmax.f32 %v6615_v15, %v6855_v16  ;;  %v7238_v15 = vld [vmem:[%s7360_s23 + $0x2b0] sm:$0xff]  }
 0x16a   : > { %v2433_v26 = vpop.f32.mrf.mxu0  ;;  %v3393_v27 = vpop.f32.mrf.mxu1  ;;  %v7239_v16 = vld [vmem:[%s7360_s23 + $0x670] sm:$0xff]  }
 0x16b   : > { %v4866_v29 = vmax.f32 %v4654_v19, %v4658_v20  ;;  %v4419_v30 = vadd.f32 %v7486_v57, %v4172_v22  ;;  %v4170_v31 = vmax.f32 %v2433_v26, %v3393_v27  ;;  %v4656_v36 = vmax.f32 %v4416_v21, 0.0 }
 0x16c   : > { %v6618_v33 = vpop.f32.mrf.mxu0  ;;  %6713 = vmatmul.mubr.bf16.gmra.mxu0 %v7228_v17  ;;  %v6858_v34 = vpop.f32.mrf.mxu1  ;;  %6953 = vmatmul.mubr.bf16.gmra.mxu1 %v7229_v18 }
 0x16d   : > { %v6019_v35 = vpack.c.bf16 %v4866_v29, %v4866_v29  ;;  %v4659_v37 = vmax.f32 %v4419_v30, 0.0  ;;  %v4417_v38 = vadd.f32 %v7486_v57, %v4170_v31  ;;  %6716 = vmatprep.mubr.bf16.mxu0 %v7230_v23  ;;  %6956 = vmatprep.mubr.bf16.mxu1 %v7231_v24  ;;  %v4864_v49 = vmax.f32 %v4652_v41, %v4656_v36 }
 0x16e   : > { %v2446_v39 = vpop.f32.mrf.mxu0  ;;  %v3406_v40 = vpop.f32.mrf.mxu1  ;;  %v4175_v51 = vmax.f32 %v6618_v33, %v6858_v34 }
 0x16f   : > { %5466 = vst [vmem:[%s7503_s13 + $0x78] sm:$0xf] %v6019_v35  ;;  %v4867_v43 = vmax.f32 %v4655_v32, %v4659_v37  ;;  %v4657_v44 = vmax.f32 %v4417_v38, 0.0  ;;  %v4173_v0 = vmax.f32 %v2446_v39, %v3406_v40  ;;  %v7240_v39 = vld [vmem:[%s7360_s23 + $0x2b8] sm:$0xff]  }
 0x170   : > { %v6619_v45 = vpop.f32.mrf.mxu0  ;;  %v6859_v46 = vpop.f32.mrf.mxu1  ;;  %v4422_v62 = vadd.f32 %v7649_v61, %v4175_v51  ;;  %v7241_v40 = vld [vmem:[%s7360_s23 + $0x678] sm:$0xff]  }
 0x171   : > { %v6020_v50 = vpack.c.bf16 %v4867_v43, %v4867_v43  ;;  %v4865_v57 = vmax.f32 %v4653_v42, %v4657_v44  ;;  %v4176_v58 = vmax.f32 %v6619_v45, %v6859_v46  ;;  %v4420_v17 = vadd.f32 %v7649_v61, %v4173_v0  ;;  %v7242_v45 = vld [vmem:[%s7360_s23 + $0x2c0] sm:$0xff]  }
 0x172   : > { %v2449_v54 = vpop.f32.mrf.mxu0  ;;  %v3409_v55 = vpop.f32.mrf.mxu1  ;;  %v4662_v11 = vmax.f32 %v4422_v62, 0.0  ;;  %v7243_v46 = vld [vmem:[%s7360_s23 + $0x680] sm:$0xff]  }
 0x173   : > { %5467 = vst [vmem:[%s7503_s13 + $0x7c] sm:$0x7] %v6020_v50  ;;  %v6147_v56 = vpack.c.bf16 %v4865_v57, %v4864_v49  ;;  %v4174_v3 = vmax.f32 %v2449_v54, %v3409_v55  ;;  %v4423_v6 = vadd.f32 %v7649_v61, %v4176_v58  ;;  %v4660_v33 = vmax.f32 %v4420_v17, 0.0 }
 0x174   : > { %v6622_v59 = vpop.f32.mrf.mxu0  ;;  %6717 = vmatmul.mubr.bf16.gmra.mxu0 %v7232_v47  ;;  %v6862_v60 = vpop.f32.mrf.mxu1  ;;  %6957 = vmatmul.mubr.bf16.gmra.mxu1 %v7233_v48 }
 0x175   : > { %6265 = vst [vmem:[%s7503_s13 + $0x70] sm:$0xff] %v6147_v56   ;;  %v4179_v63 = vmax.f32 %v6622_v59, %v6862_v60  ;;  %6720 = vmatprep.mubr.bf16.mxu0 %v7234_v52  ;;  %6960 = vmatprep.mubr.bf16.mxu1 %v7235_v53  ;;  %v4421_v20 = vadd.f32 %v7649_v61, %v4174_v3  ;;  %v4663_v24 = vmax.f32 %v4423_v6, 0.0 }
 0x176   : > { %v2462_v1 = vpop.f32.mrf.mxu0  ;;  %v3422_v2 = vpop.f32.mrf.mxu1 }
 0x177   : > { %v4426_v4 = vadd.f32 %v7649_v61, %v4179_v63  ;;  %v4177_v5 = vmax.f32 %v2462_v1, %v3422_v2  ;;  %v4661_v34 = vmax.f32 %v4421_v20, 0.0  ;;  %v7244_v1 = vld [vmem:[%s7360_s23 + $0x2c8] sm:$0xff]  }
 0x178   : > { %v6623_v7 = vpop.f32.mrf.mxu0  ;;  %v6863_v8 = vpop.f32.mrf.mxu1  ;;  %v7245_v2 = vld [vmem:[%s7360_s23 + $0x688] sm:$0xff]  }
 0x179   : > { %v4666_v12 = vmax.f32 %v4426_v4, 0.0  ;;  %v4424_v13 = vadd.f32 %v7649_v61, %v4177_v5  ;;  %v4180_v14 = vmax.f32 %v6623_v7, %v6863_v8  ;;  %v7246_v7 = vld [vmem:[%s7360_s23 + $0x2d0] sm:$0xff]  }
 0x17a   : > { %v2465_v18 = vpop.f32.mrf.mxu0  ;;  %v3425_v19 = vpop.f32.mrf.mxu1  ;;  %v7247_v8 = vld [vmem:[%s7360_s23 + $0x690] sm:$0xff]  }
 0x17b   : > { %v4870_v21 = vmax.f32 %v4662_v11, %v4666_v12  ;;  %v4427_v22 = vadd.f32 %v7649_v61, %v4180_v14  ;;  %v4178_v23 = vmax.f32 %v2465_v18, %v3425_v19  ;;  %v4664_v28 = vmax.f32 %v4424_v13, 0.0 }
 0x17c   : > { %v6626_v25 = vpop.f32.mrf.mxu0  ;;  %6721 = vmatmul.mubr.bf16.gmra.mxu0 %v7236_v9  ;;  %v6866_v26 = vpop.f32.mrf.mxu1  ;;  %6961 = vmatmul.mubr.bf16.gmra.mxu1 %v7237_v10 }
 0x17d   : > { %v6023_v27 = vpack.c.bf16 %v4870_v21, %v4870_v21  ;;  %v4667_v29 = vmax.f32 %v4427_v22, 0.0  ;;  %v4425_v30 = vadd.f32 %v7649_v61, %v4178_v23  ;;  %6724 = vmatprep.mubr.bf16.mxu0 %v7238_v15  ;;  %6964 = vmatprep.mubr.bf16.mxu1 %v7239_v16  ;;  %v4868_v41 = vmax.f32 %v4660_v33, %v4664_v28 }
 0x17e   : > { %v2478_v31 = vpop.f32.mrf.mxu0  ;;  %v3438_v32 = vpop.f32.mrf.mxu1  ;;  %v4183_v44 = vmax.f32 %v6626_v25, %v6866_v26 }
 0x17f   : > { %5470 = vst [vmem:[%s7503_s13 + $0x88] sm:$0xf] %v6023_v27  ;;  %v4871_v35 = vmax.f32 %v4663_v24, %v4667_v29  ;;  %v4665_v36 = vmax.f32 %v4425_v30, 0.0  ;;  %v4181_v54 = vmax.f32 %v2478_v31, %v3438_v32  ;;  %v7248_v31 = vld [vmem:[%s7360_s23 + $0x2d8] sm:$0xff]  }
 0x180   : > { %v6627_v37 = vpop.f32.mrf.mxu0  ;;  %v6867_v38 = vpop.f32.mrf.mxu1  ;;  %v4430_v52 = vadd.f32 %v7649_v61, %v4183_v44  ;;  %v7249_v32 = vld [vmem:[%s7360_s23 + $0x698] sm:$0xff]  }
 0x181   : > { %v6024_v42 = vpack.c.bf16 %v4871_v35, %v4871_v35  ;;  %v4869_v43 = vmax.f32 %v4661_v34, %v4665_v36  ;;  %v4184_v50 = vmax.f32 %v6627_v37, %v6867_v38  ;;  %v4428_v9 = vadd.f32 %v7649_v61, %v4181_v54  ;;  %v7250_v37 = vld [vmem:[%s7360_s23 + $0x2e0] sm:$0xff]  }
 0x182   : > { %v2481_v47 = vpop.f32.mrf.mxu0  ;;  %v3441_v48 = vpop.f32.mrf.mxu1  ;;  %v4670_v3 = vmax.f32 %v4430_v52, 0.0  ;;  %v7251_v38 = vld [vmem:[%s7360_s23 + $0x6a0] sm:$0xff]  }
 0x183   : > { %5471 = vst [vmem:[%s7503_s13 + $0x8c] sm:$0x7] %v6024_v42  ;;  %v6152_v49 = vpack.c.bf16 %v4869_v43, %v4868_v41  ;;  %v4182_v58 = vmax.f32 %v2481_v47, %v3441_v48  ;;  %v4431_v62 = vadd.f32 %v7649_v61, %v4184_v50  ;;  %v4668_v25 = vmax.f32 %v4428_v9, 0.0 }
 0x184   : > { %v6630_v57 = vpop.f32.mrf.mxu0  ;;  %6725 = vmatmul.mubr.bf16.gmra.mxu0 %v7240_v39  ;;  %v6870_v51 = vpop.f32.mrf.mxu1  ;;  %6965 = vmatmul.mubr.bf16.gmra.mxu1 %v7241_v40 }
 0x185   : > { %6266 = vst [vmem:[%s7503_s13 + $0x80] sm:$0xff] %v6152_v49   ;;  %v4187_v53 = vmax.f32 %v6630_v57, %v6870_v51  ;;  %6728 = vmatprep.mubr.bf16.mxu0 %v7242_v45  ;;  %6968 = vmatprep.mubr.bf16.mxu1 %v7243_v46  ;;  %v4429_v12 = vadd.f32 %v7649_v61, %v4182_v58  ;;  %v4671_v16 = vmax.f32 %v4431_v62, 0.0 }
 0x186   : > { %v2494_v55 = vpop.f32.mrf.mxu0  ;;  %v3454_v56 = vpop.f32.mrf.mxu1 }
 0x187   : > { %v4434_v59 = vadd.f32 %v7649_v61, %v4187_v53  ;;  %v4185_v60 = vmax.f32 %v2494_v55, %v3454_v56  ;;  %v4669_v26 = vmax.f32 %v4429_v12, 0.0  ;;  %v7252_v55 = vld [vmem:[%s7360_s23 + $0x2e8] sm:$0xff]  }
 0x188   : > { %v6631_v63 = vpop.f32.mrf.mxu0  ;;  %v6871_v0 = vpop.f32.mrf.mxu1  ;;  %v7253_v56 = vld [vmem:[%s7360_s23 + $0x6a8] sm:$0xff]  }
 0x189   : > { %v4674_v4 = vmax.f32 %v4434_v59, 0.0  ;;  %v4432_v5 = vadd.f32 %v7649_v61, %v4185_v60  ;;  %v4188_v6 = vmax.f32 %v6631_v63, %v6871_v0  ;;  %v7254_v63 = vld [vmem:[%s7360_s23 + $0x2f0] sm:$0xff]  }
 0x18a   : > { %v2497_v10 = vpop.f32.mrf.mxu0  ;;  %v3457_v11 = vpop.f32.mrf.mxu1  ;;  %v7255_v0 = vld [vmem:[%s7360_s23 + $0x6b0] sm:$0xff]  }
 0x18b   : > { %v4874_v13 = vmax.f32 %v4670_v3, %v4674_v4  ;;  %v4435_v14 = vadd.f32 %v7649_v61, %v4188_v6  ;;  %v4186_v15 = vmax.f32 %v2497_v10, %v3457_v11  ;;  %v4672_v20 = vmax.f32 %v4432_v5, 0.0 }
 0x18c   : > { %v6634_v17 = vpop.f32.mrf.mxu0  ;;  %6729 = vmatmul.mubr.bf16.gmra.mxu0 %v7244_v1  ;;  %v6874_v18 = vpop.f32.mrf.mxu1  ;;  %6969 = vmatmul.mubr.bf16.gmra.mxu1 %v7245_v2 }
 0x18d   : > { %v6027_v19 = vpack.c.bf16 %v4874_v13, %v4874_v13  ;;  %v4675_v21 = vmax.f32 %v4435_v14, 0.0  ;;  %v4433_v22 = vadd.f32 %v7649_v61, %v4186_v15  ;;  %6732 = vmatprep.mubr.bf16.mxu0 %v7246_v7  ;;  %6972 = vmatprep.mubr.bf16.mxu1 %v7247_v8  ;;  %v4872_v33 = vmax.f32 %v4668_v25, %v4672_v20 }
 0x18e   : > { %v2510_v23 = vpop.f32.mrf.mxu0  ;;  %v3470_v24 = vpop.f32.mrf.mxu1  ;;  %v4191_v36 = vmax.f32 %v6634_v17, %v6874_v18 }
 0x18f   : > { %5474 = vst [vmem:[%s7503_s13 + $0x98] sm:$0xf] %v6027_v19  ;;  %v4875_v27 = vmax.f32 %v4671_v16, %v4675_v21  ;;  %v4673_v28 = vmax.f32 %v4433_v22, 0.0  ;;  %v4189_v47 = vmax.f32 %v2510_v23, %v3470_v24  ;;  %v7256_v23 = vld [vmem:[%s7360_s23 + $0x2f8] sm:$0xff]  }
 0x190   : > { %v6635_v29 = vpop.f32.mrf.mxu0  ;;  %v6875_v30 = vpop.f32.mrf.mxu1  ;;  %v4438_v45 = vadd.f32 %v7649_v61, %v4191_v36  ;;  %v7257_v24 = vld [vmem:[%s7360_s23 + $0x6b8] sm:$0xff]  }
 0x191   : > { %v6028_v34 = vpack.c.bf16 %v4875_v27, %v4875_v27  ;;  %v4873_v35 = vmax.f32 %v4669_v26, %v4673_v28  ;;  %v4192_v42 = vmax.f32 %v6635_v29, %v6875_v30  ;;  %v4436_v1 = vadd.f32 %v7649_v61, %v4189_v47  ;;  %v7258_v29 = vld [vmem:[%s7360_s23 + $0x300] sm:$0xff]  }
 0x192   : > { %v2513_v39 = vpop.f32.mrf.mxu0  ;;  %v3473_v40 = vpop.f32.mrf.mxu1  ;;  %v4678_v58 = vmax.f32 %v4438_v45, 0.0  ;;  %v7259_v30 = vld [vmem:[%s7360_s23 + $0x6c0] sm:$0xff]  }
 0x193   : > { %5475 = vst [vmem:[%s7503_s13 + $0x9c] sm:$0x7] %v6028_v34  ;;  %v6157_v41 = vpack.c.bf16 %v4873_v35, %v4872_v33  ;;  %v4190_v50 = vmax.f32 %v2513_v39, %v3473_v40  ;;  %v4439_v52 = vadd.f32 %v7649_v61, %v4192_v42  ;;  %v4676_v17 = vmax.f32 %v4436_v1, 0.0 }
 0x194   : > { %v6638_v43 = vpop.f32.mrf.mxu0  ;;  %6733 = vmatmul.mubr.bf16.gmra.mxu0 %v7248_v31  ;;  %v6878_v44 = vpop.f32.mrf.mxu1  ;;  %6973 = vmatmul.mubr.bf16.gmra.mxu1 %v7249_v32 }
 0x195   : > { %6267 = vst [vmem:[%s7503_s13 + $0x90] sm:$0xff] %v6157_v41   ;;  %v4195_v46 = vmax.f32 %v6638_v43, %v6878_v44  ;;  %6736 = vmatprep.mubr.bf16.mxu0 %v7250_v37  ;;  %6976 = vmatprep.mubr.bf16.mxu1 %v7251_v38  ;;  %v4437_v4 = vadd.f32 %v7649_v61, %v4190_v50  ;;  %v4679_v8 = vmax.f32 %v4439_v52, 0.0 }
 0x196   : > { %v2526_v48 = vpop.f32.mrf.mxu0  ;;  %v3486_v49 = vpop.f32.mrf.mxu1 }
 0x197   : > { %v4442_v57 = vadd.f32 %v7649_v61, %v4195_v46  ;;  %v4193_v51 = vmax.f32 %v2526_v48, %v3486_v49  ;;  %v4677_v18 = vmax.f32 %v4437_v4, 0.0  ;;  %v7260_v48 = vld [vmem:[%s7360_s23 + $0x308] sm:$0xff]  }
 0x198   : > { %v6639_v53 = vpop.f32.mrf.mxu0  ;;  %v6879_v54 = vpop.f32.mrf.mxu1  ;;  %v7261_v49 = vld [vmem:[%s7360_s23 + $0x6c8] sm:$0xff]  }
 0x199   : > { %v4682_v59 = vmax.f32 %v4442_v57, 0.0  ;;  %v4440_v60 = vadd.f32 %v7649_v61, %v4193_v51  ;;  %v4196_v62 = vmax.f32 %v6639_v53, %v6879_v54  ;;  %v7262_v53 = vld [vmem:[%s7360_s23 + $0x310] sm:$0xff]  }
 0x19a   : > { %v2529_v2 = vpop.f32.mrf.mxu0  ;;  %v3489_v3 = vpop.f32.mrf.mxu1  ;;  %v7263_v54 = vld [vmem:[%s7360_s23 + $0x6d0] sm:$0xff]  }
 0x19b   : > { %v4878_v5 = vmax.f32 %v4678_v58, %v4682_v59  ;;  %v4443_v6 = vadd.f32 %v7649_v61, %v4196_v62  ;;  %v4194_v7 = vmax.f32 %v2529_v2, %v3489_v3  ;;  %v4680_v12 = vmax.f32 %v4440_v60, 0.0 }
 0x19c   : > { %v6642_v9 = vpop.f32.mrf.mxu0  ;;  %6737 = vmatmul.mubr.bf16.gmra.mxu0 %v7252_v55  ;;  %v6882_v10 = vpop.f32.mrf.mxu1  ;;  %6977 = vmatmul.mubr.bf16.gmra.mxu1 %v7253_v56 }
 0x19d   : > { %v6031_v11 = vpack.c.bf16 %v4878_v5, %v4878_v5  ;;  %v4683_v13 = vmax.f32 %v4443_v6, 0.0  ;;  %v4441_v14 = vadd.f32 %v7649_v61, %v4194_v7  ;;  %6740 = vmatprep.mubr.bf16.mxu0 %v7254_v63  ;;  %6980 = vmatprep.mubr.bf16.mxu1 %v7255_v0  ;;  %v4876_v25 = vmax.f32 %v4676_v17, %v4680_v12 }
 0x19e   : > { %v2542_v15 = vpop.f32.mrf.mxu0  ;;  %v3502_v16 = vpop.f32.mrf.mxu1  ;;  %v4199_v28 = vmax.f32 %v6642_v9, %v6882_v10 }
 0x19f   : > { %5478 = vst [vmem:[%s7503_s13 + $0xa8] sm:$0xf] %v6031_v11  ;;  %v4879_v19 = vmax.f32 %v4679_v8, %v4683_v13  ;;  %v4681_v20 = vmax.f32 %v4441_v14, 0.0  ;;  %v4197_v39 = vmax.f32 %v2542_v15, %v3502_v16  ;;  %v7264_v15 = vld [vmem:[%s7360_s23 + $0x318] sm:$0xff]  }
 0x1a0   : > { %v6643_v21 = vpop.f32.mrf.mxu0  ;;  %v6883_v22 = vpop.f32.mrf.mxu1  ;;  %v4446_v37 = vadd.f32 %v7649_v61, %v4199_v28  ;;  %v7265_v16 = vld [vmem:[%s7360_s23 + $0x6d8] sm:$0xff]  }
 0x1a1   : > { %v6032_v26 = vpack.c.bf16 %v4879_v19, %v4879_v19  ;;  %v4877_v27 = vmax.f32 %v4677_v18, %v4681_v20  ;;  %v4200_v34 = vmax.f32 %v6643_v21, %v6883_v22  ;;  %v4444_v55 = vadd.f32 %v7649_v61, %v4197_v39  ;;  %v7266_v21 = vld [vmem:[%s7360_s23 + $0x320] sm:$0xff]  }
 0x1a2   : > { %v2545_v31 = vpop.f32.mrf.mxu0  ;;  %v3505_v32 = vpop.f32.mrf.mxu1  ;;  %v4686_v50 = vmax.f32 %v4446_v37, 0.0  ;;  %v7267_v22 = vld [vmem:[%s7360_s23 + $0x6e0] sm:$0xff]  }
 0x1a3   : > { %5479 = vst [vmem:[%s7503_s13 + $0xac] sm:$0x7] %v6032_v26  ;;  %v6162_v33 = vpack.c.bf16 %v4877_v27, %v4876_v25  ;;  %v4198_v42 = vmax.f32 %v2545_v31, %v3505_v32  ;;  %v4447_v45 = vadd.f32 %v7649_v61, %v4200_v34  ;;  %v4684_v9 = vmax.f32 %v4444_v55, 0.0 }
 0x1a4   : > { %v6646_v35 = vpop.f32.mrf.mxu0  ;;  %6741 = vmatmul.mubr.bf16.gmra.mxu0 %v7256_v23  ;;  %v6886_v36 = vpop.f32.mrf.mxu1  ;;  %6981 = vmatmul.mubr.bf16.gmra.mxu1 %v7257_v24 }
 0x1a5   : > { %6268 = vst [vmem:[%s7503_s13 + $0xa0] sm:$0xff] %v6162_v33   ;;  %v4203_v38 = vmax.f32 %v6646_v35, %v6886_v36  ;;  %6744 = vmatprep.mubr.bf16.mxu0 %v7258_v29  ;;  %6984 = vmatprep.mubr.bf16.mxu1 %v7259_v30  ;;  %v4445_v59 = vadd.f32 %v7649_v61, %v4198_v42  ;;  %v4687_v0 = vmax.f32 %v4447_v45, 0.0 }
 0x1a6   : > { %v2558_v40 = vpop.f32.mrf.mxu0  ;;  %v3518_v41 = vpop.f32.mrf.mxu1 }
 0x1a7   : > { %v4450_v43 = vadd.f32 %v7649_v61, %v4203_v38  ;;  %v4201_v44 = vmax.f32 %v2558_v40, %v3518_v41  ;;  %v4685_v10 = vmax.f32 %v4445_v59, 0.0  ;;  %v7268_v40 = vld [vmem:[%s7360_s23 + $0x328] sm:$0xff]  }
 0x1a8   : > { %v6647_v46 = vpop.f32.mrf.mxu0  ;;  %v6887_v47 = vpop.f32.mrf.mxu1  ;;  %v7269_v41 = vld [vmem:[%s7360_s23 + $0x6e8] sm:$0xff]  }
 0x1a9   : > { %v4690_v57 = vmax.f32 %v4450_v43, 0.0  ;;  %v4448_v51 = vadd.f32 %v7649_v61, %v4201_v44  ;;  %v4204_v52 = vmax.f32 %v6647_v46, %v6887_v47  ;;  %v7270_v46 = vld [vmem:[%s7360_s23 + $0x330] sm:$0xff]  }
 0x1aa   : > { %v2561_v56 = vpop.f32.mrf.mxu0  ;;  %v3521_v58 = vpop.f32.mrf.mxu1  ;;  %v7271_v47 = vld [vmem:[%s7360_s23 + $0x6f0] sm:$0xff]  }
 0x1ab   : > { %v4882_v60 = vmax.f32 %v4686_v50, %v4690_v57  ;;  %v4451_v62 = vadd.f32 %v7649_v61, %v4204_v52  ;;  %v4202_v63 = vmax.f32 %v2561_v56, %v3521_v58  ;;  %v4688_v4 = vmax.f32 %v4448_v51, 0.0 }
 0x1ac   : > { %v6650_v1 = vpop.f32.mrf.mxu0  ;;  %6745 = vmatmul.mubr.bf16.gmra.mxu0 %v7260_v48  ;;  %v6890_v2 = vpop.f32.mrf.mxu1  ;;  %6985 = vmatmul.mubr.bf16.gmra.mxu1 %v7261_v49 }
 0x1ad   : > { %v6035_v3 = vpack.c.bf16 %v4882_v60, %v4882_v60  ;;  %v4691_v5 = vmax.f32 %v4451_v62, 0.0  ;;  %v4449_v6 = vadd.f32 %v7649_v61, %v4202_v63  ;;  %6748 = vmatprep.mubr.bf16.mxu0 %v7262_v53  ;;  %6988 = vmatprep.mubr.bf16.mxu1 %v7263_v54  ;;  %v4880_v17 = vmax.f32 %v4684_v9, %v4688_v4 }
 0x1ae   : > { %v2574_v7 = vpop.f32.mrf.mxu0  ;;  %v3534_v8 = vpop.f32.mrf.mxu1  ;;  %v4207_v20 = vmax.f32 %v6650_v1, %v6890_v2 }
 0x1af   : > { %5482 = vst [vmem:[%s7503_s13 + $0xb8] sm:$0xf] %v6035_v3  ;;  %v4883_v11 = vmax.f32 %v4687_v0, %v4691_v5  ;;  %v4689_v12 = vmax.f32 %v4449_v6, 0.0  ;;  %v4205_v31 = vmax.f32 %v2574_v7, %v3534_v8  ;;  %v7272_v7 = vld [vmem:[%s7360_s23 + $0x338] sm:$0xff]  }
 0x1b0   : > { %v6651_v13 = vpop.f32.mrf.mxu0  ;;  %v6891_v14 = vpop.f32.mrf.mxu1  ;;  %v4454_v29 = vadd.f32 %v7649_v61, %v4207_v20  ;;  %v7273_v8 = vld [vmem:[%s7360_s23 + $0x6f8] sm:$0xff]  }
 0x1b1   : > { %v6036_v18 = vpack.c.bf16 %v4883_v11, %v4883_v11  ;;  %v4881_v19 = vmax.f32 %v4685_v10, %v4689_v12  ;;  %v4208_v26 = vmax.f32 %v6651_v13, %v6891_v14  ;;  %v4452_v48 = vadd.f32 %v7649_v61, %v4205_v31  ;;  %v7274_v13 = vld [vmem:[%s7360_s23 + $0x340] sm:$0xff]  }
 0x1b2   : > { %v2577_v23 = vpop.f32.mrf.mxu0  ;;  %v3537_v24 = vpop.f32.mrf.mxu1  ;;  %v4694_v42 = vmax.f32 %v4454_v29, 0.0  ;;  %v7275_v14 = vld [vmem:[%s7360_s23 + $0x700] sm:$0xff]  }
 0x1b3   : > { %5483 = vst [vmem:[%s7503_s13 + $0xbc] sm:$0x7] %v6036_v18  ;;  %v6167_v25 = vpack.c.bf16 %v4881_v19, %v4880_v17  ;;  %v4206_v34 = vmax.f32 %v2577_v23, %v3537_v24  ;;  %v4455_v37 = vadd.f32 %v7649_v61, %v4208_v26  ;;  %v4692_v1 = vmax.f32 %v4452_v48, 0.0 }
 0x1b4   : > { %v6654_v27 = vpop.f32.mrf.mxu0  ;;  %6749 = vmatmul.mubr.bf16.gmra.mxu0 %v7264_v15  ;;  %v6894_v28 = vpop.f32.mrf.mxu1  ;;  %6989 = vmatmul.mubr.bf16.gmra.mxu1 %v7265_v16 }
 0x1b5   : > { %6269 = vst [vmem:[%s7503_s13 + $0xb0] sm:$0xff] %v6167_v25   ;;  %v4211_v30 = vmax.f32 %v6654_v27, %v6894_v28  ;;  %6752 = vmatprep.mubr.bf16.mxu0 %v7266_v21  ;;  %6992 = vmatprep.mubr.bf16.mxu1 %v7267_v22  ;;  %v4453_v57 = vadd.f32 %v7649_v61, %v4206_v34  ;;  %v4695_v54 = vmax.f32 %v4455_v37, 0.0 }
 0x1b6   : > { %v2590_v32 = vpop.f32.mrf.mxu0  ;;  %v3550_v33 = vpop.f32.mrf.mxu1 }
 0x1b7   : > { %v4458_v35 = vadd.f32 %v7649_v61, %v4211_v30  ;;  %v4209_v36 = vmax.f32 %v2590_v32, %v3550_v33  ;;  %v4693_v2 = vmax.f32 %v4453_v57, 0.0  ;;  %v7276_v32 = vld [vmem:[%s7360_s23 + $0x348] sm:$0xff]  }
 0x1b8   : > { %v6655_v38 = vpop.f32.mrf.mxu0  ;;  %v6895_v39 = vpop.f32.mrf.mxu1  ;;  %v7277_v33 = vld [vmem:[%s7360_s23 + $0x708] sm:$0xff]  }
 0x1b9   : > { %v4698_v43 = vmax.f32 %v4458_v35, 0.0  ;;  %v4456_v44 = vadd.f32 %v7649_v61, %v4209_v36  ;;  %v4212_v45 = vmax.f32 %v6655_v38, %v6895_v39  ;;  %v7278_v38 = vld [vmem:[%s7360_s23 + $0x350] sm:$0xff]  }
 0x1ba   : > { %v2593_v49 = vpop.f32.mrf.mxu0  ;;  %v3553_v50 = vpop.f32.mrf.mxu1  ;;  %v7279_v39 = vld [vmem:[%s7360_s23 + $0x710] sm:$0xff]  }
 0x1bb   : > { %v4886_v51 = vmax.f32 %v4694_v42, %v4698_v43  ;;  %v4459_v52 = vadd.f32 %v7649_v61, %v4212_v45  ;;  %v4210_v53 = vmax.f32 %v2593_v49, %v3553_v50  ;;  %v4696_v59 = vmax.f32 %v4456_v44, 0.0 }
 0x1bc   : > { %v6658_v55 = vpop.f32.mrf.mxu0  ;;  %6753 = vmatmul.mubr.bf16.gmra.mxu0 %v7268_v40  ;;  %v6898_v56 = vpop.f32.mrf.mxu1  ;;  %6993 = vmatmul.mubr.bf16.gmra.mxu1 %v7269_v41 }
 0x1bd   : > { %v6039_v58 = vpack.c.bf16 %v4886_v51, %v4886_v51  ;;  %v4699_v60 = vmax.f32 %v4459_v52, 0.0  ;;  %v4457_v62 = vadd.f32 %v7649_v61, %v4210_v53  ;;  %6756 = vmatprep.mubr.bf16.mxu0 %v7270_v46  ;;  %6996 = vmatprep.mubr.bf16.mxu1 %v7271_v47  ;;  %v4884_v9 = vmax.f32 %v4692_v1, %v4696_v59 }
 0x1be   : > { %v2606_v63 = vpop.f32.mrf.mxu0  ;;  %v3566_v0 = vpop.f32.mrf.mxu1  ;;  %v4215_v12 = vmax.f32 %v6658_v55, %v6898_v56 }
 0x1bf   : > { %5486 = vst [vmem:[%s7503_s13 + $0xc8] sm:$0xf] %v6039_v58  ;;  %v4887_v3 = vmax.f32 %v4695_v54, %v4699_v60  ;;  %v4697_v4 = vmax.f32 %v4457_v62, 0.0  ;;  %v4213_v23 = vmax.f32 %v2606_v63, %v3566_v0  ;;  %v7280_v63 = vld [vmem:[%s7360_s23 + $0x358] sm:$0xff]  }
 0x1c0   : > { %v6659_v5 = vpop.f32.mrf.mxu0  ;;  %v6899_v6 = vpop.f32.mrf.mxu1  ;;  %v4462_v21 = vadd.f32 %v7649_v61, %v4215_v12  ;;  %v7281_v0 = vld [vmem:[%s7360_s23 + $0x718] sm:$0xff]  }
 0x1c1   : > { %v6040_v10 = vpack.c.bf16 %v4887_v3, %v4887_v3  ;;  %v4885_v11 = vmax.f32 %v4693_v2, %v4697_v4  ;;  %v4216_v18 = vmax.f32 %v6659_v5, %v6899_v6  ;;  %v4460_v40 = vadd.f32 %v7649_v61, %v4213_v23  ;;  %v7282_v5 = vld [vmem:[%s7360_s23 + $0x360] sm:$0xff]  }
 0x1c2   : > { %v2609_v15 = vpop.f32.mrf.mxu0  ;;  %v3569_v16 = vpop.f32.mrf.mxu1  ;;  %v4702_v34 = vmax.f32 %v4462_v21, 0.0  ;;  %v7283_v6 = vld [vmem:[%s7360_s23 + $0x720] sm:$0xff]  }
 0x1c3   : > { %5487 = vst [vmem:[%s7503_s13 + $0xcc] sm:$0x7] %v6040_v10  ;;  %v6172_v17 = vpack.c.bf16 %v4885_v11, %v4884_v9  ;;  %v4214_v26 = vmax.f32 %v2609_v15, %v3569_v16  ;;  %v4463_v29 = vadd.f32 %v7649_v61, %v4216_v18  ;;  %v4700_v55 = vmax.f32 %v4460_v40, 0.0 }
 0x1c4   : > { %v6662_v19 = vpop.f32.mrf.mxu0  ;;  %6757 = vmatmul.mubr.bf16.gmra.mxu0 %v7272_v7  ;;  %v6902_v20 = vpop.f32.mrf.mxu1  ;;  %6997 = vmatmul.mubr.bf16.gmra.mxu1 %v7273_v8 }
 0x1c5   : > { %6270 = vst [vmem:[%s7503_s13 + $0xc0] sm:$0xff] %v6172_v17   ;;  %v4219_v22 = vmax.f32 %v6662_v19, %v6902_v20  ;;  %6760 = vmatprep.mubr.bf16.mxu0 %v7274_v13  ;;  %7000 = vmatprep.mubr.bf16.mxu1 %v7275_v14  ;;  %v4461_v43 = vadd.f32 %v7649_v61, %v4214_v26  ;;  %v4703_v47 = vmax.f32 %v4463_v29, 0.0 }
 0x1c6   : > { %v2622_v24 = vpop.f32.mrf.mxu0  ;;  %v3582_v25 = vpop.f32.mrf.mxu1 }
 0x1c7   : > { %v4466_v27 = vadd.f32 %v7649_v61, %v4219_v22  ;;  %v4217_v28 = vmax.f32 %v2622_v24, %v3582_v25  ;;  %v4701_v56 = vmax.f32 %v4461_v43, 0.0  ;;  %v7284_v24 = vld [vmem:[%s7360_s23 + $0x368] sm:$0xff]  }
 0x1c8   : > { %v6663_v30 = vpop.f32.mrf.mxu0  ;;  %v6903_v31 = vpop.f32.mrf.mxu1  ;;  %v7285_v25 = vld [vmem:[%s7360_s23 + $0x728] sm:$0xff]  }
 0x1c9   : > { %v4706_v35 = vmax.f32 %v4466_v27, 0.0  ;;  %v4464_v36 = vadd.f32 %v7649_v61, %v4217_v28  ;;  %v4220_v37 = vmax.f32 %v6663_v30, %v6903_v31  ;;  %v7286_v30 = vld [vmem:[%s7360_s23 + $0x370] sm:$0xff]  }
 0x1ca   : > { %v2625_v41 = vpop.f32.mrf.mxu0  ;;  %v3585_v42 = vpop.f32.mrf.mxu1  ;;  %v7287_v31 = vld [vmem:[%s7360_s23 + $0x730] sm:$0xff]  }
 0x1cb   : > { %v4890_v44 = vmax.f32 %v4702_v34, %v4706_v35  ;;  %v4467_v45 = vadd.f32 %v7649_v61, %v4220_v37  ;;  %v4218_v46 = vmax.f32 %v2625_v41, %v3585_v42  ;;  %v4704_v57 = vmax.f32 %v4464_v36, 0.0 }
 0x1cc   : > { %v6666_v48 = vpop.f32.mrf.mxu0  ;;  %6761 = vmatmul.mubr.bf16.gmra.mxu0 %v7276_v32  ;;  %v6906_v49 = vpop.f32.mrf.mxu1  ;;  %7001 = vmatmul.mubr.bf16.gmra.mxu1 %v7277_v33 }
 0x1cd   : > { %v6043_v50 = vpack.c.bf16 %v4890_v44, %v4890_v44  ;;  %v4707_v51 = vmax.f32 %v4467_v45, 0.0  ;;  %v4465_v52 = vadd.f32 %v7649_v61, %v4218_v46  ;;  %6764 = vmatprep.mubr.bf16.mxu0 %v7278_v38  ;;  %7004 = vmatprep.mubr.bf16.mxu1 %v7279_v39  ;;  %v4888_v1 = vmax.f32 %v4700_v55, %v4704_v57 }
 0x1ce   : > { %v2638_v53 = vpop.f32.mrf.mxu0  ;;  %v3598_v54 = vpop.f32.mrf.mxu1  ;;  %v4223_v4 = vmax.f32 %v6666_v48, %v6906_v49 }
 0x1cf   : > { %5490 = vst [vmem:[%s7503_s13 + $0xd8] sm:$0xf] %v6043_v50  ;;  %v4891_v58 = vmax.f32 %v4703_v47, %v4707_v51  ;;  %v4705_v59 = vmax.f32 %v4465_v52, 0.0  ;;  %v4221_v15 = vmax.f32 %v2638_v53, %v3598_v54  ;;  %v7288_v53 = vld [vmem:[%s7360_s23 + $0x378] sm:$0xff]  }
 0x1d0   : > { %v6667_v60 = vpop.f32.mrf.mxu0  ;;  %v6907_v62 = vpop.f32.mrf.mxu1  ;;  %v4470_v13 = vadd.f32 %v7649_v61, %v4223_v4  ;;  %v7289_v54 = vld [vmem:[%s7360_s23 + $0x738] sm:$0xff]  }
 0x1d1   : > { %v6044_v2 = vpack.c.bf16 %v4891_v58, %v4891_v58  ;;  %v4889_v3 = vmax.f32 %v4701_v56, %v4705_v59  ;;  %v4224_v10 = vmax.f32 %v6667_v60, %v6907_v62  ;;  %v4468_v32 = vadd.f32 %v7649_v61, %v4221_v15  ;;  %v7290_v60 = vld [vmem:[%s7360_s23 + $0x380] sm:$0xff]  }
 0x1d2   : > { %v2641_v7 = vpop.f32.mrf.mxu0  ;;  %v3601_v8 = vpop.f32.mrf.mxu1  ;;  %v4710_v26 = vmax.f32 %v4470_v13, 0.0  ;;  %v7291_v62 = vld [vmem:[%s7360_s23 + $0x740] sm:$0xff]  }
 0x1d3   : > { %5491 = vst [vmem:[%s7503_s13 + $0xdc] sm:$0x7] %v6044_v2  ;;  %v6177_v9 = vpack.c.bf16 %v4889_v3, %v4888_v1  ;;  %v4222_v18 = vmax.f32 %v2641_v7, %v3601_v8  ;;  %v4471_v21 = vadd.f32 %v7649_v61, %v4224_v10  ;;  %v4708_v48 = vmax.f32 %v4468_v32, 0.0 }
 0x1d4   : > { %v6670_v11 = vpop.f32.mrf.mxu0  ;;  %6765 = vmatmul.mubr.bf16.gmra.mxu0 %v7280_v63  ;;  %v6910_v12 = vpop.f32.mrf.mxu1  ;;  %7005 = vmatmul.mubr.bf16.gmra.mxu1 %v7281_v0 }
 0x1d5   : > { %6271 = vst [vmem:[%s7503_s13 + $0xd0] sm:$0xff] %v6177_v9   ;;  %v4227_v14 = vmax.f32 %v6670_v11, %v6910_v12  ;;  %6768 = vmatprep.mubr.bf16.mxu0 %v7282_v5  ;;  %7008 = vmatprep.mubr.bf16.mxu1 %v7283_v6  ;;  %v4469_v35 = vadd.f32 %v7649_v61, %v4222_v18  ;;  %v4711_v39 = vmax.f32 %v4471_v21, 0.0 }
 0x1d6   : > { %v2654_v16 = vpop.f32.mrf.mxu0  ;;  %v3614_v17 = vpop.f32.mrf.mxu1 }
 0x1d7   : > { %v4474_v19 = vadd.f32 %v7649_v61, %v4227_v14  ;;  %v4225_v20 = vmax.f32 %v2654_v16, %v3614_v17  ;;  %v4709_v49 = vmax.f32 %v4469_v35, 0.0  ;;  %v7292_v16 = vld [vmem:[%s7360_s23 + $0x388] sm:$0xff]  }
 0x1d8   : > { %v6671_v22 = vpop.f32.mrf.mxu0  ;;  %v6911_v23 = vpop.f32.mrf.mxu1  ;;  %v7293_v17 = vld [vmem:[%s7360_s23 + $0x748] sm:$0xff]  }
 0x1d9   : > { %v4714_v27 = vmax.f32 %v4474_v19, 0.0  ;;  %v4472_v28 = vadd.f32 %v7649_v61, %v4225_v20  ;;  %v4228_v29 = vmax.f32 %v6671_v22, %v6911_v23  ;;  %v7294_v22 = vld [vmem:[%s7360_s23 + $0x390] sm:$0xff]  }
 0x1da   : > { %v2657_v33 = vpop.f32.mrf.mxu0  ;;  %v3617_v34 = vpop.f32.mrf.mxu1  ;;  %v7295_v23 = vld [vmem:[%s7360_s23 + $0x750] sm:$0xff]  }
 0x1db   : > { %v4894_v36 = vmax.f32 %v4710_v26, %v4714_v27  ;;  %v4475_v37 = vadd.f32 %v7649_v61, %v4228_v29  ;;  %v4226_v38 = vmax.f32 %v2657_v33, %v3617_v34  ;;  %v4712_v43 = vmax.f32 %v4472_v28, 0.0 }
 0x1dc   : > { %v6674_v40 = vpop.f32.mrf.mxu0  ;;  %6769 = vmatmul.mubr.bf16.gmra.mxu0 %v7284_v24  ;;  %v6914_v41 = vpop.f32.mrf.mxu1  ;;  %7009 = vmatmul.mubr.bf16.gmra.mxu1 %v7285_v25 }
 0x1dd   : > { %v6047_v42 = vpack.c.bf16 %v4894_v36, %v4894_v36  ;;  %v4715_v44 = vmax.f32 %v4475_v37, 0.0  ;;  %v4473_v45 = vadd.f32 %v7649_v61, %v4226_v38  ;;  %6772 = vmatprep.mubr.bf16.mxu0 %v7286_v30  ;;  %7012 = vmatprep.mubr.bf16.mxu1 %v7287_v31  ;;  %v4892_v55 = vmax.f32 %v4708_v48, %v4712_v43 }
 0x1de   : > { %v2670_v46 = vpop.f32.mrf.mxu0  ;;  %v3630_v47 = vpop.f32.mrf.mxu1  ;;  %v4231_v59 = vmax.f32 %v6674_v40, %v6914_v41 }
 0x1df   : > { %5494 = vst [vmem:[%s7503_s13 + $0xe8] sm:$0xf] %v6047_v42  ;;  %v4895_v50 = vmax.f32 %v4711_v39, %v4715_v44  ;;  %v4713_v57 = vmax.f32 %v4473_v45, 0.0  ;;  %v4229_v7 = vmax.f32 %v2670_v46, %v3630_v47  ;;  %v7296_v46 = vld [vmem:[%s7360_s23 + $0x398] sm:$0xff]  }
 0x1e0   : > { %v6675_v51 = vpop.f32.mrf.mxu0  ;;  %v6915_v52 = vpop.f32.mrf.mxu1  ;;  %v4478_v5 = vadd.f32 %v7649_v61, %v4231_v59  ;;  %v7297_v47 = vld [vmem:[%s7360_s23 + $0x758] sm:$0xff]   ;;  %v7806_v59 = vld [vmem:[%s7978_s2] ss:$0 sm:$0xff] }
 0x1e1   : > { %v6048_v56 = vpack.c.bf16 %v4895_v50, %v4895_v50  ;;  %v4893_v58 = vmax.f32 %v4709_v49, %v4713_v57  ;;  %v4232_v2 = vmax.f32 %v6675_v51, %v6915_v52  ;;  %v4476_v24 = vadd.f32 %v7649_v61, %v4229_v7  ;;  %v7298_v57 = vld [vmem:[%s7360_s23 + $0x3a0] sm:$0xff]  }
 0x1e2   : > { %v2673_v63 = vpop.f32.mrf.mxu0  ;;  %v3633_v0 = vpop.f32.mrf.mxu1  ;;  %v4718_v18 = vmax.f32 %v4478_v5, 0.0  ;;  %v7299_v51 = vld [vmem:[%s7360_s23 + $0x760] sm:$0xff]  }
 0x1e3   : > { %5495 = vst [vmem:[%s7503_s13 + $0xec] sm:$0x7] %v6048_v56  ;;  %v6182_v1 = vpack.c.bf16 %v4893_v58, %v4892_v55  ;;  %v4230_v10 = vmax.f32 %v2673_v63, %v3633_v0  ;;  %v4479_v13 = vadd.f32 %v7649_v61, %v4232_v2  ;;  %v4716_v40 = vmax.f32 %v4476_v24, 0.0 }
 0x1e4   : > { %v6678_v3 = vpop.f32.mrf.mxu0  ;;  %6773 = vmatmul.mubr.bf16.gmra.mxu0 %v7288_v53  ;;  %v6918_v4 = vpop.f32.mrf.mxu1  ;;  %7013 = vmatmul.mubr.bf16.gmra.mxu1 %v7289_v54 }
 0x1e5   : > { %6272 = vst [vmem:[%s7503_s13 + $0xe0] sm:$0xff] %v6182_v1   ;;  %v4235_v6 = vmax.f32 %v6678_v3, %v6918_v4  ;;  %6776 = vmatprep.mubr.bf16.mxu0 %v7290_v60  ;;  %7016 = vmatprep.mubr.bf16.mxu1 %v7291_v62  ;;  %v4477_v27 = vadd.f32 %v7649_v61, %v4230_v10  ;;  %v4719_v31 = vmax.f32 %v4479_v13, 0.0 }
 0x1e6   : > { %v2686_v8 = vpop.f32.mrf.mxu0  ;;  %v3646_v9 = vpop.f32.mrf.mxu1 }
 0x1e7   : > { %v4482_v11 = vadd.f32 %v7649_v61, %v4235_v6  ;;  %v4233_v12 = vmax.f32 %v2686_v8, %v3646_v9  ;;  %v4717_v41 = vmax.f32 %v4477_v27, 0.0  ;;  %v7300_v8 = vld [vmem:[%s7360_s23 + $0x3a8] sm:$0xff]  }
 0x1e8   : > { %v6679_v14 = vpop.f32.mrf.mxu0  ;;  %v6919_v15 = vpop.f32.mrf.mxu1  ;;  %v7301_v9 = vld [vmem:[%s7360_s23 + $0x768] sm:$0xff]  }
 0x1e9   : > { %v4722_v19 = vmax.f32 %v4482_v11, 0.0  ;;  %v4480_v20 = vadd.f32 %v7649_v61, %v4233_v12  ;;  %v4236_v21 = vmax.f32 %v6679_v14, %v6919_v15  ;;  %v7302_v14 = vld [vmem:[%s7360_s23 + $0x3b0] sm:$0xff]  }
 0x1ea   : > { %v2689_v25 = vpop.f32.mrf.mxu0  ;;  %v3649_v26 = vpop.f32.mrf.mxu1  ;;  %v7303_v15 = vld [vmem:[%s7360_s23 + $0x770] sm:$0xff]  }
 0x1eb   : > { %v4898_v28 = vmax.f32 %v4718_v18, %v4722_v19  ;;  %v4483_v29 = vadd.f32 %v7649_v61, %v4236_v21  ;;  %v4234_v30 = vmax.f32 %v2689_v25, %v3649_v26  ;;  %v4720_v35 = vmax.f32 %v4480_v20, 0.0 }
 0x1ec   : > { %v6682_v32 = vpop.f32.mrf.mxu0  ;;  %6777 = vmatmul.mubr.bf16.gmra.mxu0 %v7292_v16  ;;  %v6922_v33 = vpop.f32.mrf.mxu1  ;;  %7017 = vmatmul.mubr.bf16.gmra.mxu1 %v7293_v17 }
 0x1ed   : > { %v6051_v34 = vpack.c.bf16 %v4898_v28, %v4898_v28  ;;  %v4723_v36 = vmax.f32 %v4483_v29, 0.0  ;;  %v4481_v37 = vadd.f32 %v7649_v61, %v4234_v30  ;;  %6780 = vmatprep.mubr.bf16.mxu0 %v7294_v22  ;;  %7020 = vmatprep.mubr.bf16.mxu1 %v7295_v23  ;;  %v4896_v48 = vmax.f32 %v4716_v40, %v4720_v35 }
 0x1ee   : > { %v2702_v38 = vpop.f32.mrf.mxu0  ;;  %v3662_v39 = vpop.f32.mrf.mxu1  ;;  %v4239_v50 = vmax.f32 %v6682_v32, %v6922_v33 }
 0x1ef   : > { %5498 = vst [vmem:[%s7503_s13 + $0xf8] sm:$0xf] %v6051_v34  ;;  %v4899_v42 = vmax.f32 %v4719_v31, %v4723_v36  ;;  %v4721_v43 = vmax.f32 %v4481_v37, 0.0  ;;  %v4237_v63 = vmax.f32 %v2702_v38, %v3662_v39  ;;  %v7304_v38 = vld [vmem:[%s7360_s23 + $0x3b8] sm:$0xff]  }
 0x1f0   : > { %v6683_v44 = vpop.f32.mrf.mxu0  ;;  %v6923_v45 = vpop.f32.mrf.mxu1  ;;  %v4486_v60 = vadd.f32 %v7806_v59, %v4239_v50  ;;  %v7305_v39 = vld [vmem:[%s7360_s23 + $0x778] sm:$0xff]  }
 0x1f1   : > { %v6052_v49 = vpack.c.bf16 %v4899_v42, %v4899_v42  ;;  %v4897_v61 = vmax.f32 %v4717_v41, %v4721_v43  ;;  %v4240_v55 = vmax.f32 %v6683_v44, %v6923_v45  ;;  %v4484_v16 = vadd.f32 %v7806_v59, %v4237_v63 }
 0x1f2   : > { %v2705_v52 = vpop.f32.mrf.mxu0  ;;  %v3665_v53 = vpop.f32.mrf.mxu1  ;;  %v4726_v10 = vmax.f32 %v4486_v60, 0.0 }
 0x1f3   : > { %5499 = vst [vmem:[%s7503_s13 + $0xfc] sm:$0x7] %v6052_v49  ;;  %v6187_v54 = vpack.c.bf16 %v4897_v61, %v4896_v48  ;;  %v4238_v2 = vmax.f32 %v2705_v52, %v3665_v53  ;;  %v4487_v5 = vadd.f32 %v7806_v59, %v4240_v55  ;;  %v4724_v32 = vmax.f32 %v4484_v16, 0.0 }
 0x1f4   : > { %v6686_v56 = vpop.f32.mrf.mxu0  ;;  %6781 = vmatmul.mubr.bf16.gmra.mxu0 %v7296_v46  ;;  %v6926_v58 = vpop.f32.mrf.mxu1  ;;  %7021 = vmatmul.mubr.bf16.gmra.mxu1 %v7297_v47 }
 0x1f5   : > { %6273 = vst [vmem:[%s7503_s13 + $0xf0] sm:$0xff] %v6187_v54   ;;  %v4243_v62 = vmax.f32 %v6686_v56, %v6926_v58  ;;  %6784 = vmatprep.mubr.bf16.mxu0 %v7298_v57  ;;  %7024 = vmatprep.mubr.bf16.mxu1 %v7299_v51  ;;  %v4485_v19 = vadd.f32 %v7806_v59, %v4238_v2  ;;  %v4727_v23 = vmax.f32 %v4487_v5, 0.0 }
 0x1f6   : > { %v2718_v0 = vpop.f32.mrf.mxu0  ;;  %v3678_v1 = vpop.f32.mrf.mxu1 }
 0x1f7   : > { %v4490_v3 = vadd.f32 %v7806_v59, %v4243_v62  ;;  %v4241_v4 = vmax.f32 %v2718_v0, %v3678_v1  ;;  %v4725_v33 = vmax.f32 %v4485_v19, 0.0 }
 0x1f8   : > { %v6687_v6 = vpop.f32.mrf.mxu0  ;;  %v6927_v7 = vpop.f32.mrf.mxu1 }
 0x1f9   : > { %v4730_v11 = vmax.f32 %v4490_v3, 0.0  ;;  %v4488_v12 = vadd.f32 %v7806_v59, %v4241_v4  ;;  %v4244_v13 = vmax.f32 %v6687_v6, %v6927_v7 }
 0x1fa   : > { %v2721_v17 = vpop.f32.mrf.mxu0  ;;  %v3681_v18 = vpop.f32.mrf.mxu1 }
 0x1fb   : > { %v4902_v20 = vmax.f32 %v4726_v10, %v4730_v11  ;;  %v4491_v21 = vadd.f32 %v7806_v59, %v4244_v13  ;;  %v4242_v22 = vmax.f32 %v2721_v17, %v3681_v18  ;;  %v4728_v27 = vmax.f32 %v4488_v12, 0.0 }
 0x1fc   : > { %v6690_v24 = vpop.f32.mrf.mxu0  ;;  %6785 = vmatmul.mubr.bf16.gmra.mxu0 %v7300_v8  ;;  %v6930_v25 = vpop.f32.mrf.mxu1  ;;  %7025 = vmatmul.mubr.bf16.gmra.mxu1 %v7301_v9 }
 0x1fd   : > { %v6055_v26 = vpack.c.bf16 %v4902_v20, %v4902_v20  ;;  %v4731_v28 = vmax.f32 %v4491_v21, 0.0  ;;  %v4489_v29 = vadd.f32 %v7806_v59, %v4242_v22  ;;  %6788 = vmatprep.mubr.bf16.mxu0 %v7302_v14  ;;  %7028 = vmatprep.mubr.bf16.mxu1 %v7303_v15  ;;  %v4900_v40 = vmax.f32 %v4724_v32, %v4728_v27 }
 0x1fe   : > { %v2734_v30 = vpop.f32.mrf.mxu0  ;;  %v3694_v31 = vpop.f32.mrf.mxu1  ;;  %v4247_v43 = vmax.f32 %v6690_v24, %v6930_v25 }
 0x1ff   : > { %5502 = vst [vmem:[%s7503_s13 + $0x108] sm:$0xf] %v6055_v26  ;;  %v4903_v34 = vmax.f32 %v4727_v23, %v4731_v28  ;;  %v4729_v35 = vmax.f32 %v4489_v29, 0.0  ;;  %v4245_v57 = vmax.f32 %v2734_v30, %v3694_v31 }
 0x200   : > { %v6691_v36 = vpop.f32.mrf.mxu0  ;;  %v6931_v37 = vpop.f32.mrf.mxu1  ;;  %v4494_v61 = vadd.f32 %v7806_v59, %v4247_v43 }
 0x201   : > { %v6056_v41 = vpack.c.bf16 %v4903_v34, %v4903_v34  ;;  %v4901_v42 = vmax.f32 %v4725_v33, %v4729_v35  ;;  %v4248_v47 = vmax.f32 %v6691_v36, %v6931_v37  ;;  %v4492_v2 = vadd.f32 %v7806_v59, %v4245_v57 }
 0x202   : > { %v2737_v44 = vpop.f32.mrf.mxu0  ;;  %v3697_v45 = vpop.f32.mrf.mxu1  ;;  %v4734_v62 = vmax.f32 %v4494_v61, 0.0 }
 0x203   : > { %5503 = vst [vmem:[%s7503_s13 + $0x10c] sm:$0x7] %v6056_v41  ;;  %v6192_v46 = vpack.c.bf16 %v4901_v42, %v4900_v40  ;;  %v4246_v53 = vmax.f32 %v2737_v44, %v3697_v45  ;;  %v4495_v56 = vadd.f32 %v7806_v59, %v4248_v47  ;;  %v4732_v18 = vmax.f32 %v4492_v2, 0.0 }
 0x204   : > { %v6694_v48 = vpop.f32.mrf.mxu0  ;;  %6789 = vmatmul.mubr.bf16.gmra.mxu0 %v7304_v38  ;;  %v6934_v49 = vpop.f32.mrf.mxu1  ;;  %7029 = vmatmul.mubr.bf16.gmra.mxu1 %v7305_v39 }
 0x205   : > { %6274 = vst [vmem:[%s7503_s13 + $0x100] sm:$0xff] %v6192_v46   ;;  %v4251_v50 = vmax.f32 %v6694_v48, %v6934_v49  ;;  %v4493_v5 = vadd.f32 %v7806_v59, %v4246_v53  ;;  %v4735_v9 = vmax.f32 %v4495_v56, 0.0 }
 0x206   : > { %v2750_v51 = vpop.f32.mrf.mxu0  ;;  %v3710_v52 = vpop.f32.mrf.mxu1 }
 0x207   : > { %v4498_v54 = vadd.f32 %v7806_v59, %v4251_v50  ;;  %v4249_v55 = vmax.f32 %v2750_v51, %v3710_v52  ;;  %v4733_v19 = vmax.f32 %v4493_v5, 0.0 }
 0x208   : > { %v6695_v58 = vpop.f32.mrf.mxu0  ;;  %v6935_v60 = vpop.f32.mrf.mxu1 }
 0x209   : > { %v4738_v63 = vmax.f32 %v4498_v54, 0.0  ;;  %v4496_v0 = vadd.f32 %v7806_v59, %v4249_v55  ;;  %v4252_v1 = vmax.f32 %v6695_v58, %v6935_v60 }
 0x20a   : > { %v2753_v3 = vpop.f32.mrf.mxu0  ;;  %v3713_v4 = vpop.f32.mrf.mxu1 }
 0x20b   : > { %v4906_v6 = vmax.f32 %v4734_v62, %v4738_v63  ;;  %v4499_v7 = vadd.f32 %v7806_v59, %v4252_v1  ;;  %v4250_v8 = vmax.f32 %v2753_v3, %v3713_v4  ;;  %v4736_v13 = vmax.f32 %v4496_v0, 0.0 }
 0x20c   : > { %v6698_v10 = vpop.f32.mrf.mxu0  ;;  %v6938_v11 = vpop.f32.mrf.mxu1 }
 0x20d   : > { %v6059_v12 = vpack.c.bf16 %v4906_v6, %v4906_v6  ;;  %v4739_v14 = vmax.f32 %v4499_v7, 0.0  ;;  %v4497_v15 = vadd.f32 %v7806_v59, %v4250_v8  ;;  %v4904_v24 = vmax.f32 %v4732_v18, %v4736_v13 }
 0x20e   : > { %v2766_v16 = vpop.f32.mrf.mxu0  ;;  %v3726_v17 = vpop.f32.mrf.mxu1  ;;  %v4255_v27 = vmax.f32 %v6698_v10, %v6938_v11 }
 0x20f   : > { %5506 = vst [vmem:[%s7503_s13 + $0x118] sm:$0xf] %v6059_v12  ;;  %v4907_v20 = vmax.f32 %v4735_v9, %v4739_v14  ;;  %v4737_v21 = vmax.f32 %v4497_v15, 0.0  ;;  %v4253_v36 = vmax.f32 %v2766_v16, %v3726_v17 }
 0x210   : > { %v6699_v22 = vpop.f32.mrf.mxu0  ;;  %v6939_v23 = vpop.f32.mrf.mxu1  ;;  %v4502_v34 = vadd.f32 %v7806_v59, %v4255_v27 }
 0x211   : > { %v6060_v25 = vpack.c.bf16 %v4907_v20, %v4907_v20  ;;  %v4905_v26 = vmax.f32 %v4733_v19, %v4737_v21  ;;  %v4256_v31 = vmax.f32 %v6699_v22, %v6939_v23  ;;  %v4500_v49 = vadd.f32 %v7806_v59, %v4253_v36 }
 0x212   : > { %v2769_v28 = vpop.f32.mrf.mxu0  ;;  %v3729_v29 = vpop.f32.mrf.mxu1  ;;  %v4742_v45 = vmax.f32 %v4502_v34, 0.0 }
 0x213   : > { %5507 = vst [vmem:[%s7503_s13 + $0x11c] sm:$0x7] %v6060_v25  ;;  %v6197_v30 = vpack.c.bf16 %v4905_v26, %v4904_v24  ;;  %v4254_v39 = vmax.f32 %v2769_v28, %v3729_v29  ;;  %v4503_v42 = vadd.f32 %v7806_v59, %v4256_v31  ;;  %v4740_v2 = vmax.f32 %v4500_v49, 0.0 }
 0x214   : > { %v6702_v32 = vpop.f32.mrf.mxu0  ;;  %v6942_v33 = vpop.f32.mrf.mxu1 }
 0x215   : > { %6275 = vst [vmem:[%s7503_s13 + $0x110] sm:$0xff] %v6197_v30   ;;  %v4259_v35 = vmax.f32 %v6702_v32, %v6942_v33  ;;  %v4501_v57 = vadd.f32 %v7806_v59, %v4254_v39  ;;  %v4743_v54 = vmax.f32 %v4503_v42, 0.0 }
 0x216   : > { %v2782_v37 = vpop.f32.mrf.mxu0  ;;  %v3742_v38 = vpop.f32.mrf.mxu1 }
 0x217   : > { %v4506_v40 = vadd.f32 %v7806_v59, %v4259_v35  ;;  %v4257_v41 = vmax.f32 %v2782_v37, %v3742_v38  ;;  %v4741_v3 = vmax.f32 %v4501_v57, 0.0 }
 0x218   : > { %v6703_v43 = vpop.f32.mrf.mxu0  ;;  %v6943_v44 = vpop.f32.mrf.mxu1 }
 0x219   : > { %v4746_v46 = vmax.f32 %v4506_v40, 0.0  ;;  %v4504_v47 = vadd.f32 %v7806_v59, %v4257_v41  ;;  %v4260_v48 = vmax.f32 %v6703_v43, %v6943_v44 }
 0x21a   : > { %v2785_v61 = vpop.f32.mrf.mxu0  ;;  %v3745_v50 = vpop.f32.mrf.mxu1 }
 0x21b   : > { %v4910_v51 = vmax.f32 %v4742_v45, %v4746_v46  ;;  %v4507_v52 = vadd.f32 %v7806_v59, %v4260_v48  ;;  %v4258_v53 = vmax.f32 %v2785_v61, %v3745_v50  ;;  %v4744_v60 = vmax.f32 %v4504_v47, 0.0 }
 0x21c   : > { %v6706_v55 = vpop.f32.mrf.mxu0  ;;  %v6946_v56 = vpop.f32.mrf.mxu1 }
 0x21d   : > { %v6063_v58 = vpack.c.bf16 %v4910_v51, %v4910_v51  ;;  %v4747_v62 = vmax.f32 %v4507_v52, 0.0  ;;  %v4505_v63 = vadd.f32 %v7806_v59, %v4258_v53  ;;  %v4908_v8 = vmax.f32 %v4740_v2, %v4744_v60 }
 0x21e   : > { %v2798_v0 = vpop.f32.mrf.mxu0  ;;  %v3758_v1 = vpop.f32.mrf.mxu1  ;;  %v4263_v11 = vmax.f32 %v6706_v55, %v6946_v56 }
 0x21f   : > { %5510 = vst [vmem:[%s7503_s13 + $0x128] sm:$0xf] %v6063_v58  ;;  %v4911_v4 = vmax.f32 %v4743_v54, %v4747_v62  ;;  %v4745_v5 = vmax.f32 %v4505_v63, 0.0  ;;  %v4261_v20 = vmax.f32 %v2798_v0, %v3758_v1 }
 0x220   : > { %v6707_v6 = vpop.f32.mrf.mxu0  ;;  %v6947_v7 = vpop.f32.mrf.mxu1  ;;  %v4510_v18 = vadd.f32 %v7806_v59, %v4263_v11 }
 0x221   : > { %v6064_v9 = vpack.c.bf16 %v4911_v4, %v4911_v4  ;;  %v4909_v10 = vmax.f32 %v4741_v3, %v4745_v5  ;;  %v4264_v15 = vmax.f32 %v6707_v6, %v6947_v7  ;;  %v4508_v33 = vadd.f32 %v7806_v59, %v4261_v20 }
 0x222   : > { %v2801_v12 = vpop.f32.mrf.mxu0  ;;  %v3761_v13 = vpop.f32.mrf.mxu1  ;;  %v4750_v29 = vmax.f32 %v4510_v18, 0.0 }
 0x223   : > { %5511 = vst [vmem:[%s7503_s13 + $0x12c] sm:$0x7] %v6064_v9  ;;  %v6202_v14 = vpack.c.bf16 %v4909_v10, %v4908_v8  ;;  %v4262_v23 = vmax.f32 %v2801_v12, %v3761_v13  ;;  %v4511_v26 = vadd.f32 %v7806_v59, %v4264_v15  ;;  %v4748_v49 = vmax.f32 %v4508_v33, 0.0 }
 0x224   : > { %v6710_v16 = vpop.f32.mrf.mxu0  ;;  %v6950_v17 = vpop.f32.mrf.mxu1 }
 0x225   : > { %6276 = vst [vmem:[%s7503_s13 + $0x120] sm:$0xff] %v6202_v14   ;;  %v4267_v19 = vmax.f32 %v6710_v16, %v6950_v17  ;;  %v4509_v36 = vadd.f32 %v7806_v59, %v4262_v23  ;;  %v4751_v40 = vmax.f32 %v4511_v26, 0.0 }
 0x226   : > { %v2814_v21 = vpop.f32.mrf.mxu0  ;;  %v3774_v22 = vpop.f32.mrf.mxu1 }
 0x227   : > { %v4514_v24 = vadd.f32 %v7806_v59, %v4267_v19  ;;  %v4265_v25 = vmax.f32 %v2814_v21, %v3774_v22  ;;  %v4749_v61 = vmax.f32 %v4509_v36, 0.0 }
 0x228   : > { %v6711_v27 = vpop.f32.mrf.mxu0  ;;  %v6951_v28 = vpop.f32.mrf.mxu1 }
 0x229   : > { %v4754_v30 = vmax.f32 %v4514_v24, 0.0  ;;  %v4512_v31 = vadd.f32 %v7806_v59, %v4265_v25  ;;  %v4268_v32 = vmax.f32 %v6711_v27, %v6951_v28 }
 0x22a   : > { %v2817_v34 = vpop.f32.mrf.mxu0  ;;  %v3777_v35 = vpop.f32.mrf.mxu1 }
 0x22b   : > { %v4914_v37 = vmax.f32 %v4750_v29, %v4754_v30  ;;  %v4515_v38 = vadd.f32 %v7806_v59, %v4268_v32  ;;  %v4266_v39 = vmax.f32 %v2817_v34, %v3777_v35  ;;  %v4752_v44 = vmax.f32 %v4512_v31, 0.0 }
 0x22c   : > { %v6714_v41 = vpop.f32.mrf.mxu0  ;;  %v6954_v42 = vpop.f32.mrf.mxu1 }
 0x22d   : > { %v6067_v43 = vpack.c.bf16 %v4914_v37, %v4914_v37  ;;  %v4755_v45 = vmax.f32 %v4515_v38, 0.0  ;;  %v4513_v46 = vadd.f32 %v7806_v59, %v4266_v39  ;;  %v4912_v53 = vmax.f32 %v4748_v49, %v4752_v44 }
 0x22e   : > { %v2830_v47 = vpop.f32.mrf.mxu0  ;;  %v3790_v48 = vpop.f32.mrf.mxu1  ;;  %v4271_v56 = vmax.f32 %v6714_v41, %v6954_v42 }
 0x22f   : > { %5514 = vst [vmem:[%s7503_s13 + $0x138] sm:$0xf] %v6067_v43  ;;  %v4915_v50 = vmax.f32 %v4751_v40, %v4755_v45  ;;  %v4753_v57 = vmax.f32 %v4513_v46, 0.0  ;;  %v4269_v4 = vmax.f32 %v2830_v47, %v3790_v48 }
 0x230   : > { %v6715_v51 = vpop.f32.mrf.mxu0  ;;  %v6955_v52 = vpop.f32.mrf.mxu1  ;;  %v4518_v2 = vadd.f32 %v7806_v59, %v4271_v56 }
 0x231   : > { %v6068_v54 = vpack.c.bf16 %v4915_v50, %v4915_v50  ;;  %v4913_v55 = vmax.f32 %v4749_v61, %v4753_v57  ;;  %v4272_v63 = vmax.f32 %v6715_v51, %v6955_v52  ;;  %v4516_v17 = vadd.f32 %v7806_v59, %v4269_v4 }
 0x232   : > { %v2833_v58 = vpop.f32.mrf.mxu0  ;;  %v3793_v60 = vpop.f32.mrf.mxu1  ;;  %v4758_v13 = vmax.f32 %v4518_v2, 0.0 }
 0x233   : > { %5515 = vst [vmem:[%s7503_s13 + $0x13c] sm:$0x7] %v6068_v54  ;;  %v6207_v62 = vpack.c.bf16 %v4913_v55, %v4912_v53  ;;  %v4270_v7 = vmax.f32 %v2833_v58, %v3793_v60  ;;  %v4519_v10 = vadd.f32 %v7806_v59, %v4272_v63  ;;  %v4756_v33 = vmax.f32 %v4516_v17, 0.0 }
 0x234   : > { %v6718_v0 = vpop.f32.mrf.mxu0  ;;  %v6958_v1 = vpop.f32.mrf.mxu1 }
 0x235   : > { %6277 = vst [vmem:[%s7503_s13 + $0x130] sm:$0xff] %v6207_v62   ;;  %v4275_v3 = vmax.f32 %v6718_v0, %v6958_v1  ;;  %v4517_v20 = vadd.f32 %v7806_v59, %v4270_v7  ;;  %v4759_v24 = vmax.f32 %v4519_v10, 0.0 }
 0x236   : > { %v2846_v5 = vpop.f32.mrf.mxu0  ;;  %v3806_v6 = vpop.f32.mrf.mxu1 }
 0x237   : > { %v4522_v8 = vadd.f32 %v7806_v59, %v4275_v3  ;;  %v4273_v9 = vmax.f32 %v2846_v5, %v3806_v6  ;;  %v4757_v34 = vmax.f32 %v4517_v20, 0.0 }
 0x238   : > { %v6719_v11 = vpop.f32.mrf.mxu0  ;;  %v6959_v12 = vpop.f32.mrf.mxu1 }
 0x239   : > { %v4762_v14 = vmax.f32 %v4522_v8, 0.0  ;;  %v4520_v15 = vadd.f32 %v7806_v59, %v4273_v9  ;;  %v4276_v16 = vmax.f32 %v6719_v11, %v6959_v12 }
 0x23a   : > { %v2849_v18 = vpop.f32.mrf.mxu0  ;;  %v3809_v19 = vpop.f32.mrf.mxu1 }
 0x23b   : > { %v4918_v21 = vmax.f32 %v4758_v13, %v4762_v14  ;;  %v4523_v22 = vadd.f32 %v7806_v59, %v4276_v16  ;;  %v4274_v23 = vmax.f32 %v2849_v18, %v3809_v19  ;;  %v4760_v28 = vmax.f32 %v4520_v15, 0.0 }
 0x23c   : > { %v6722_v25 = vpop.f32.mrf.mxu0  ;;  %v6962_v26 = vpop.f32.mrf.mxu1 }
 0x23d   : > { %v6071_v27 = vpack.c.bf16 %v4918_v21, %v4918_v21  ;;  %v4763_v29 = vmax.f32 %v4523_v22, 0.0  ;;  %v4521_v30 = vadd.f32 %v7806_v59, %v4274_v23  ;;  %v4916_v39 = vmax.f32 %v4756_v33, %v4760_v28 }
 0x23e   : > { %v2862_v31 = vpop.f32.mrf.mxu0  ;;  %v3822_v32 = vpop.f32.mrf.mxu1  ;;  %v4279_v42 = vmax.f32 %v6722_v25, %v6962_v26 }
 0x23f   : > { %5518 = vst [vmem:[%s7503_s13 + $0x148] sm:$0xf] %v6071_v27  ;;  %v4919_v35 = vmax.f32 %v4759_v24, %v4763_v29  ;;  %v4761_v36 = vmax.f32 %v4521_v30, 0.0  ;;  %v4277_v50 = vmax.f32 %v2862_v31, %v3822_v32 }
 0x240   : > { %v6723_v37 = vpop.f32.mrf.mxu0  ;;  %v6963_v38 = vpop.f32.mrf.mxu1  ;;  %v4526_v49 = vadd.f32 %v7806_v59, %v4279_v42 }
 0x241   : > { %v6072_v40 = vpack.c.bf16 %v4919_v35, %v4919_v35  ;;  %v4917_v41 = vmax.f32 %v4757_v34, %v4761_v36  ;;  %v4280_v46 = vmax.f32 %v6723_v37, %v6963_v38  ;;  %v4524_v1 = vadd.f32 %v7806_v59, %v4277_v50 }
 0x242   : > { %v2865_v43 = vpop.f32.mrf.mxu0  ;;  %v3825_v44 = vpop.f32.mrf.mxu1  ;;  %v4766_v60 = vmax.f32 %v4526_v49, 0.0 }
 0x243   : > { %5519 = vst [vmem:[%s7503_s13 + $0x14c] sm:$0x7] %v6072_v40  ;;  %v6212_v45 = vpack.c.bf16 %v4917_v41, %v4916_v39  ;;  %v4278_v52 = vmax.f32 %v2865_v43, %v3825_v44  ;;  %v4527_v55 = vadd.f32 %v7806_v59, %v4280_v46  ;;  %v4764_v17 = vmax.f32 %v4524_v1, 0.0 }
 0x244   : > { %v6726_v47 = vpop.f32.mrf.mxu0  ;;  %v6966_v48 = vpop.f32.mrf.mxu1 }
 0x245   : > { %6278 = vst [vmem:[%s7503_s13 + $0x140] sm:$0xff] %v6212_v45   ;;  %v4283_v61 = vmax.f32 %v6726_v47, %v6966_v48  ;;  %v4525_v4 = vadd.f32 %v7806_v59, %v4278_v52  ;;  %v4767_v8 = vmax.f32 %v4527_v55, 0.0 }
 0x246   : > { %v2878_v57 = vpop.f32.mrf.mxu0  ;;  %v3838_v51 = vpop.f32.mrf.mxu1 }
 0x247   : > { %v4530_v53 = vadd.f32 %v7806_v59, %v4283_v61  ;;  %v4281_v54 = vmax.f32 %v2878_v57, %v3838_v51  ;;  %v4765_v18 = vmax.f32 %v4525_v4, 0.0 }
 0x248   : > { %v6727_v56 = vpop.f32.mrf.mxu0  ;;  %v6967_v58 = vpop.f32.mrf.mxu1 }
 0x249   : > { %v4770_v62 = vmax.f32 %v4530_v53, 0.0  ;;  %v4528_v63 = vadd.f32 %v7806_v59, %v4281_v54  ;;  %v4284_v0 = vmax.f32 %v6727_v56, %v6967_v58 }
 0x24a   : > { %v2881_v2 = vpop.f32.mrf.mxu0  ;;  %v3841_v3 = vpop.f32.mrf.mxu1 }
 0x24b   : > { %v4922_v5 = vmax.f32 %v4766_v60, %v4770_v62  ;;  %v4531_v6 = vadd.f32 %v7806_v59, %v4284_v0  ;;  %v4282_v7 = vmax.f32 %v2881_v2, %v3841_v3  ;;  %v4768_v12 = vmax.f32 %v4528_v63, 0.0 }
 0x24c   : > { %v6730_v9 = vpop.f32.mrf.mxu0  ;;  %v6970_v10 = vpop.f32.mrf.mxu1 }
 0x24d   : > { %v6075_v11 = vpack.c.bf16 %v4922_v5, %v4922_v5  ;;  %v4771_v13 = vmax.f32 %v4531_v6, 0.0  ;;  %v4529_v14 = vadd.f32 %v7806_v59, %v4282_v7  ;;  %v4920_v23 = vmax.f32 %v4764_v17, %v4768_v12 }
 0x24e   : > { %v2894_v15 = vpop.f32.mrf.mxu0  ;;  %v3854_v16 = vpop.f32.mrf.mxu1  ;;  %v4287_v26 = vmax.f32 %v6730_v9, %v6970_v10 }
 0x24f   : > { %5522 = vst [vmem:[%s7503_s13 + $0x158] sm:$0xf] %v6075_v11  ;;  %v4923_v19 = vmax.f32 %v4767_v8, %v4771_v13  ;;  %v4769_v20 = vmax.f32 %v4529_v14, 0.0  ;;  %v4285_v35 = vmax.f32 %v2894_v15, %v3854_v16 }
 0x250   : > { %v6731_v21 = vpop.f32.mrf.mxu0  ;;  %v6971_v22 = vpop.f32.mrf.mxu1  ;;  %v4534_v33 = vadd.f32 %v7806_v59, %v4287_v26 }
 0x251   : > { %v6076_v24 = vpack.c.bf16 %v4923_v19, %v4923_v19  ;;  %v4921_v25 = vmax.f32 %v4765_v18, %v4769_v20  ;;  %v4288_v30 = vmax.f32 %v6731_v21, %v6971_v22  ;;  %v4532_v48 = vadd.f32 %v7806_v59, %v4285_v35 }
 0x252   : > { %v2897_v27 = vpop.f32.mrf.mxu0  ;;  %v3857_v28 = vpop.f32.mrf.mxu1  ;;  %v4774_v44 = vmax.f32 %v4534_v33, 0.0 }
 0x253   : > { %5523 = vst [vmem:[%s7503_s13 + $0x15c] sm:$0x7] %v6076_v24  ;;  %v6217_v29 = vpack.c.bf16 %v4921_v25, %v4920_v23  ;;  %v4286_v38 = vmax.f32 %v2897_v27, %v3857_v28  ;;  %v4535_v41 = vadd.f32 %v7806_v59, %v4288_v30  ;;  %v4772_v1 = vmax.f32 %v4532_v48, 0.0 }
 0x254   : > { %v6734_v31 = vpop.f32.mrf.mxu0  ;;  %v6974_v32 = vpop.f32.mrf.mxu1 }
 0x255   : > { %6279 = vst [vmem:[%s7503_s13 + $0x150] sm:$0xff] %v6217_v29   ;;  %v4291_v34 = vmax.f32 %v6734_v31, %v6974_v32  ;;  %v4533_v50 = vadd.f32 %v7806_v59, %v4286_v38  ;;  %v4775_v53 = vmax.f32 %v4535_v41, 0.0 }
 0x256   : > { %v2910_v36 = vpop.f32.mrf.mxu0  ;;  %v3870_v37 = vpop.f32.mrf.mxu1 }
 0x257   : > { %v4538_v39 = vadd.f32 %v7806_v59, %v4291_v34  ;;  %v4289_v40 = vmax.f32 %v2910_v36, %v3870_v37  ;;  %v4773_v2 = vmax.f32 %v4533_v50, 0.0 }
 0x258   : > { %v6735_v42 = vpop.f32.mrf.mxu0  ;;  %v6975_v43 = vpop.f32.mrf.mxu1 }
 0x259   : > { %v4778_v45 = vmax.f32 %v4538_v39, 0.0  ;;  %v4536_v46 = vadd.f32 %v7806_v59, %v4289_v40  ;;  %v4292_v47 = vmax.f32 %v6735_v42, %v6975_v43 }
 0x25a   : > { %v2913_v49 = vpop.f32.mrf.mxu0  ;;  %v3873_v61 = vpop.f32.mrf.mxu1 }
 0x25b   : > { %v4926_v57 = vmax.f32 %v4774_v44, %v4778_v45  ;;  %v4539_v51 = vadd.f32 %v7806_v59, %v4292_v47  ;;  %v4290_v52 = vmax.f32 %v2913_v49, %v3873_v61  ;;  %v4776_v58 = vmax.f32 %v4536_v46, 0.0 }
 0x25c   : > { %v6738_v54 = vpop.f32.mrf.mxu0  ;;  %v6978_v55 = vpop.f32.mrf.mxu1 }
 0x25d   : > { %v6079_v56 = vpack.c.bf16 %v4926_v57, %v4926_v57  ;;  %v4779_v60 = vmax.f32 %v4539_v51, 0.0  ;;  %v4537_v62 = vadd.f32 %v7806_v59, %v4290_v52  ;;  %v4924_v7 = vmax.f32 %v4772_v1, %v4776_v58 }
 0x25e   : > { %v2926_v63 = vpop.f32.mrf.mxu0  ;;  %v3886_v0 = vpop.f32.mrf.mxu1  ;;  %v4295_v10 = vmax.f32 %v6738_v54, %v6978_v55 }
 0x25f   : > { %5526 = vst [vmem:[%s7503_s13 + $0x168] sm:$0xf] %v6079_v56  ;;  %v4927_v3 = vmax.f32 %v4775_v53, %v4779_v60  ;;  %v4777_v4 = vmax.f32 %v4537_v62, 0.0  ;;  %v4293_v19 = vmax.f32 %v2926_v63, %v3886_v0 }
 0x260   : > { %v6739_v5 = vpop.f32.mrf.mxu0  ;;  %v6979_v6 = vpop.f32.mrf.mxu1  ;;  %v4542_v17 = vadd.f32 %v7806_v59, %v4295_v10 }
 0x261   : > { %v6080_v8 = vpack.c.bf16 %v4927_v3, %v4927_v3  ;;  %v4925_v9 = vmax.f32 %v4773_v2, %v4777_v4  ;;  %v4296_v14 = vmax.f32 %v6739_v5, %v6979_v6  ;;  %v4540_v32 = vadd.f32 %v7806_v59, %v4293_v19 }
 0x262   : > { %v2929_v11 = vpop.f32.mrf.mxu0  ;;  %v3889_v12 = vpop.f32.mrf.mxu1  ;;  %v4782_v28 = vmax.f32 %v4542_v17, 0.0 }
 0x263   : > { %5527 = vst [vmem:[%s7503_s13 + $0x16c] sm:$0x7] %v6080_v8  ;;  %v6222_v13 = vpack.c.bf16 %v4925_v9, %v4924_v7  ;;  %v4294_v22 = vmax.f32 %v2929_v11, %v3889_v12  ;;  %v4543_v25 = vadd.f32 %v7806_v59, %v4296_v14  ;;  %v4780_v48 = vmax.f32 %v4540_v32, 0.0 }
 0x264   : > { %v6742_v15 = vpop.f32.mrf.mxu0  ;;  %v6982_v16 = vpop.f32.mrf.mxu1 }
 0x265   : > { %6280 = vst [vmem:[%s7503_s13 + $0x160] sm:$0xff] %v6222_v13   ;;  %v4299_v18 = vmax.f32 %v6742_v15, %v6982_v16  ;;  %v4541_v35 = vadd.f32 %v7806_v59, %v4294_v22  ;;  %v4783_v39 = vmax.f32 %v4543_v25, 0.0 }
 0x266   : > { %v2942_v20 = vpop.f32.mrf.mxu0  ;;  %v3902_v21 = vpop.f32.mrf.mxu1 }
 0x267   : > { %v4546_v23 = vadd.f32 %v7806_v59, %v4299_v18  ;;  %v4297_v24 = vmax.f32 %v2942_v20, %v3902_v21  ;;  %v4781_v49 = vmax.f32 %v4541_v35, 0.0 }
 0x268   : > { %v6743_v26 = vpop.f32.mrf.mxu0  ;;  %v6983_v27 = vpop.f32.mrf.mxu1 }
 0x269   : > { %v4786_v29 = vmax.f32 %v4546_v23, 0.0  ;;  %v4544_v30 = vadd.f32 %v7806_v59, %v4297_v24  ;;  %v4300_v31 = vmax.f32 %v6743_v26, %v6983_v27 }
 0x26a   : > { %v2945_v33 = vpop.f32.mrf.mxu0  ;;  %v3905_v34 = vpop.f32.mrf.mxu1 }
 0x26b   : > { %v4930_v36 = vmax.f32 %v4782_v28, %v4786_v29  ;;  %v4547_v37 = vadd.f32 %v7806_v59, %v4300_v31  ;;  %v4298_v38 = vmax.f32 %v2945_v33, %v3905_v34  ;;  %v4784_v43 = vmax.f32 %v4544_v30, 0.0 }
 0x26c   : > { %v6746_v40 = vpop.f32.mrf.mxu0  ;;  %v6986_v41 = vpop.f32.mrf.mxu1 }
 0x26d   : > { %v6083_v42 = vpack.c.bf16 %v4930_v36, %v4930_v36  ;;  %v4787_v44 = vmax.f32 %v4547_v37, 0.0  ;;  %v4545_v45 = vadd.f32 %v7806_v59, %v4298_v38  ;;  %v4928_v52 = vmax.f32 %v4780_v48, %v4784_v43 }
 0x26e   : > { %v2958_v46 = vpop.f32.mrf.mxu0  ;;  %v3918_v47 = vpop.f32.mrf.mxu1  ;;  %v4303_v55 = vmax.f32 %v6746_v40, %v6986_v41 }
 0x26f   : > { %5530 = vst [vmem:[%s7503_s13 + $0x178] sm:$0xf] %v6083_v42  ;;  %v4931_v61 = vmax.f32 %v4783_v39, %v4787_v44  ;;  %v4785_v50 = vmax.f32 %v4545_v45, 0.0  ;;  %v4301_v3 = vmax.f32 %v2958_v46, %v3918_v47 }
 0x270   : > { %v6747_v57 = vpop.f32.mrf.mxu0  ;;  %v6987_v51 = vpop.f32.mrf.mxu1  ;;  %v4550_v1 = vadd.f32 %v7806_v59, %v4303_v55 }
 0x271   : > { %v6084_v53 = vpack.c.bf16 %v4931_v61, %v4931_v61  ;;  %v4929_v54 = vmax.f32 %v4781_v49, %v4785_v50  ;;  %v4304_v62 = vmax.f32 %v6747_v57, %v6987_v51  ;;  %v4548_v16 = vadd.f32 %v7806_v59, %v4301_v3 }
 0x272   : > { %v2961_v56 = vpop.f32.mrf.mxu0  ;;  %v3921_v58 = vpop.f32.mrf.mxu1  ;;  %v4790_v12 = vmax.f32 %v4550_v1, 0.0 }
 0x273   : > { %5531 = vst [vmem:[%s7503_s13 + $0x17c] sm:$0x7] %v6084_v53  ;;  %v6227_v60 = vpack.c.bf16 %v4929_v54, %v4928_v52  ;;  %v4302_v6 = vmax.f32 %v2961_v56, %v3921_v58  ;;  %v4551_v9 = vadd.f32 %v7806_v59, %v4304_v62  ;;  %v4788_v32 = vmax.f32 %v4548_v16, 0.0 }
 0x274   : > { %v6750_v63 = vpop.f32.mrf.mxu0  ;;  %v6990_v0 = vpop.f32.mrf.mxu1 }
 0x275   : > { %6281 = vst [vmem:[%s7503_s13 + $0x170] sm:$0xff] %v6227_v60   ;;  %v4307_v2 = vmax.f32 %v6750_v63, %v6990_v0  ;;  %v4549_v19 = vadd.f32 %v7806_v59, %v4302_v6  ;;  %v4791_v23 = vmax.f32 %v4551_v9, 0.0 }
 0x276   : > { %v2974_v4 = vpop.f32.mrf.mxu0  ;;  %v3934_v5 = vpop.f32.mrf.mxu1 }
 0x277   : > { %v4554_v7 = vadd.f32 %v7806_v59, %v4307_v2  ;;  %v4305_v8 = vmax.f32 %v2974_v4, %v3934_v5  ;;  %v4789_v33 = vmax.f32 %v4549_v19, 0.0 }
 0x278   : > { %v6751_v10 = vpop.f32.mrf.mxu0  ;;  %v6991_v11 = vpop.f32.mrf.mxu1 }
 0x279   : > { %v4794_v13 = vmax.f32 %v4554_v7, 0.0  ;;  %v4552_v14 = vadd.f32 %v7806_v59, %v4305_v8  ;;  %v4308_v15 = vmax.f32 %v6751_v10, %v6991_v11 }
 0x27a   : > { %v2977_v17 = vpop.f32.mrf.mxu0  ;;  %v3937_v18 = vpop.f32.mrf.mxu1 }
 0x27b   : > { %v4934_v20 = vmax.f32 %v4790_v12, %v4794_v13  ;;  %v4555_v21 = vadd.f32 %v7806_v59, %v4308_v15  ;;  %v4306_v22 = vmax.f32 %v2977_v17, %v3937_v18  ;;  %v4792_v27 = vmax.f32 %v4552_v14, 0.0 }
 0x27c   : > { %v6754_v24 = vpop.f32.mrf.mxu0  ;;  %v6994_v25 = vpop.f32.mrf.mxu1 }
 0x27d   : > { %v6087_v26 = vpack.c.bf16 %v4934_v20, %v4934_v20  ;;  %v4795_v28 = vmax.f32 %v4555_v21, 0.0  ;;  %v4553_v29 = vadd.f32 %v7806_v59, %v4306_v22  ;;  %v4932_v38 = vmax.f32 %v4788_v32, %v4792_v27 }
 0x27e   : > { %v2990_v30 = vpop.f32.mrf.mxu0  ;;  %v3950_v31 = vpop.f32.mrf.mxu1  ;;  %v4311_v41 = vmax.f32 %v6754_v24, %v6994_v25 }
 0x27f   : > { %5534 = vst [vmem:[%s7503_s13 + $0x188] sm:$0xf] %v6087_v26  ;;  %v4935_v34 = vmax.f32 %v4791_v23, %v4795_v28  ;;  %v4793_v35 = vmax.f32 %v4553_v29, 0.0  ;;  %v4309_v61 = vmax.f32 %v2990_v30, %v3950_v31  ;;  %v7927_v31 = vld [vmem:[%s7978_s2] ss:$0 sm:$0xff] }
 0x280   : > { %v6755_v36 = vpop.f32.mrf.mxu0  ;;  %v6995_v37 = vpop.f32.mrf.mxu1  ;;  %v4558_v48 = vadd.f32 %v7806_v59, %v4311_v41 }
 0x281   : > { %v6088_v39 = vpack.c.bf16 %v4935_v34, %v4935_v34  ;;  %v4933_v40 = vmax.f32 %v4789_v33, %v4793_v35  ;;  %v4312_v45 = vmax.f32 %v6755_v36, %v6995_v37  ;;  %v4556_v0 = vadd.f32 %v7806_v59, %v4309_v61 }
 0x282   : > { %v2993_v42 = vpop.f32.mrf.mxu0  ;;  %v3953_v43 = vpop.f32.mrf.mxu1  ;;  %v4798_v58 = vmax.f32 %v4558_v48, 0.0 }
 0x283   : > { %5535 = vst [vmem:[%s7503_s13 + $0x18c] sm:$0x7] %v6088_v39  ;;  %v6232_v44 = vpack.c.bf16 %v4933_v40, %v4932_v38  ;;  %v4310_v51 = vmax.f32 %v2993_v42, %v3953_v43  ;;  %v4559_v54 = vadd.f32 %v7806_v59, %v4312_v45  ;;  %v4796_v16 = vmax.f32 %v4556_v0, 0.0 }
 0x284   : > { %v6758_v46 = vpop.f32.mrf.mxu0  ;;  %v6998_v47 = vpop.f32.mrf.mxu1 }
 0x285   : > { %6282 = vst [vmem:[%s7503_s13 + $0x180] sm:$0xff] %v6232_v44   ;;  %v4315_v49 = vmax.f32 %v6758_v46, %v6998_v47  ;;  %v4557_v3 = vadd.f32 %v7806_v59, %v4310_v51  ;;  %v4799_v7 = vmax.f32 %v4559_v54, 0.0 }
 0x286   : > { %v3006_v50 = vpop.f32.mrf.mxu0  ;;  %v3966_v57 = vpop.f32.mrf.mxu1 }
 0x287   : > { %v4562_v52 = vadd.f32 %v7806_v59, %v4315_v49  ;;  %v4313_v53 = vmax.f32 %v3006_v50, %v3966_v57  ;;  %v4797_v17 = vmax.f32 %v4557_v3, 0.0 }
 0x288   : > { %v6759_v55 = vpop.f32.mrf.mxu0  ;;  %v6999_v56 = vpop.f32.mrf.mxu1 }
 0x289   : > { %v4802_v60 = vmax.f32 %v4562_v52, 0.0  ;;  %v4560_v62 = vadd.f32 %v7806_v59, %v4313_v53  ;;  %v4316_v63 = vmax.f32 %v6759_v55, %v6999_v56 }
 0x28a   : > { %v3009_v1 = vpop.f32.mrf.mxu0  ;;  %v3969_v2 = vpop.f32.mrf.mxu1 }
 0x28b   : > { %v4938_v4 = vmax.f32 %v4798_v58, %v4802_v60  ;;  %v4563_v5 = vadd.f32 %v7806_v59, %v4316_v63  ;;  %v4314_v6 = vmax.f32 %v3009_v1, %v3969_v2  ;;  %v4800_v11 = vmax.f32 %v4560_v62, 0.0 }
 0x28c   : > { %v6762_v8 = vpop.f32.mrf.mxu0  ;;  %v7002_v9 = vpop.f32.mrf.mxu1 }
 0x28d   : > { %v6091_v10 = vpack.c.bf16 %v4938_v4, %v4938_v4  ;;  %v4803_v12 = vmax.f32 %v4563_v5, 0.0  ;;  %v4561_v13 = vadd.f32 %v7806_v59, %v4314_v6  ;;  %v4936_v22 = vmax.f32 %v4796_v16, %v4800_v11 }
 0x28e   : > { %v3022_v14 = vpop.f32.mrf.mxu0  ;;  %v3982_v15 = vpop.f32.mrf.mxu1  ;;  %v4319_v25 = vmax.f32 %v6762_v8, %v7002_v9 }
 0x28f   : > { %5538 = vst [vmem:[%s7503_s13 + $0x198] sm:$0xf] %v6091_v10  ;;  %v4939_v18 = vmax.f32 %v4799_v7, %v4803_v12  ;;  %v4801_v19 = vmax.f32 %v4561_v13, 0.0  ;;  %v4317_v34 = vmax.f32 %v3022_v14, %v3982_v15 }
 0x290   : > { %v6763_v20 = vpop.f32.mrf.mxu0  ;;  %v7003_v21 = vpop.f32.mrf.mxu1  ;;  %v4566_v32 = vadd.f32 %v7927_v31, %v4319_v25 }
 0x291   : > { %v6092_v23 = vpack.c.bf16 %v4939_v18, %v4939_v18  ;;  %v4937_v24 = vmax.f32 %v4797_v17, %v4801_v19  ;;  %v4320_v59 = vmax.f32 %v6763_v20, %v7003_v21  ;;  %v4564_v47 = vadd.f32 %v7927_v31, %v4317_v34 }
 0x292   : > { %v3025_v26 = vpop.f32.mrf.mxu0  ;;  %v3985_v27 = vpop.f32.mrf.mxu1  ;;  %v4806_v43 = vmax.f32 %v4566_v32, 0.0 }
 0x293   : > { %5539 = vst [vmem:[%s7503_s13 + $0x19c] sm:$0x7] %v6092_v23  ;;  %v6237_v28 = vpack.c.bf16 %v4937_v24, %v4936_v22  ;;  %v4318_v37 = vmax.f32 %v3025_v26, %v3985_v27  ;;  %v4567_v40 = vadd.f32 %v7927_v31, %v4320_v59  ;;  %v4804_v0 = vmax.f32 %v4564_v47, 0.0 }
 0x294   : > { %v6766_v29 = vpop.f32.mrf.mxu0  ;;  %v7006_v30 = vpop.f32.mrf.mxu1 }
 0x295   : > { %6283 = vst [vmem:[%s7503_s13 + $0x190] sm:$0xff] %v6237_v28   ;;  %v4323_v33 = vmax.f32 %v6766_v29, %v7006_v30  ;;  %v4565_v61 = vadd.f32 %v7927_v31, %v4318_v37  ;;  %v4807_v52 = vmax.f32 %v4567_v40, 0.0 }
 0x296   : > { %v3038_v35 = vpop.f32.mrf.mxu0  ;;  %v3998_v36 = vpop.f32.mrf.mxu1 }
 0x297   : > { %v4570_v38 = vadd.f32 %v7927_v31, %v4323_v33  ;;  %v4321_v39 = vmax.f32 %v3038_v35, %v3998_v36  ;;  %v4805_v1 = vmax.f32 %v4565_v61, 0.0 }
 0x298   : > { %v6767_v41 = vpop.f32.mrf.mxu0  ;;  %v7007_v42 = vpop.f32.mrf.mxu1 }
 0x299   : > { %v4810_v44 = vmax.f32 %v4570_v38, 0.0  ;;  %v4568_v45 = vadd.f32 %v7927_v31, %v4321_v39  ;;  %v4324_v46 = vmax.f32 %v6767_v41, %v7007_v42 }
 0x29a   : > { %v3041_v48 = vpop.f32.mrf.mxu0  ;;  %v4001_v49 = vpop.f32.mrf.mxu1 }
 0x29b   : > { %v4942_v50 = vmax.f32 %v4806_v43, %v4810_v44  ;;  %v4571_v57 = vadd.f32 %v7927_v31, %v4324_v46  ;;  %v4322_v51 = vmax.f32 %v3041_v48, %v4001_v49  ;;  %v4808_v56 = vmax.f32 %v4568_v45, 0.0 }
 0x29c   : > { %v6770_v53 = vpop.f32.mrf.mxu0  ;;  %v7010_v54 = vpop.f32.mrf.mxu1 }
 0x29d   : > { %v6095_v55 = vpack.c.bf16 %v4942_v50, %v4942_v50  ;;  %v4811_v58 = vmax.f32 %v4571_v57, 0.0  ;;  %v4569_v60 = vadd.f32 %v7927_v31, %v4322_v51  ;;  %v4940_v6 = vmax.f32 %v4804_v0, %v4808_v56 }
 0x29e   : > { %v3054_v62 = vpop.f32.mrf.mxu0  ;;  %v4014_v63 = vpop.f32.mrf.mxu1  ;;  %v4327_v9 = vmax.f32 %v6770_v53, %v7010_v54 }
 0x29f   : > { %5542 = vst [vmem:[%s7503_s13 + $0x1a8] sm:$0xf] %v6095_v55  ;;  %v4943_v2 = vmax.f32 %v4807_v52, %v4811_v58  ;;  %v4809_v3 = vmax.f32 %v4569_v60, 0.0  ;;  %v4325_v18 = vmax.f32 %v3054_v62, %v4014_v63 }
 0x2a0   : > { %v6771_v4 = vpop.f32.mrf.mxu0  ;;  %v7011_v5 = vpop.f32.mrf.mxu1  ;;  %v4574_v16 = vadd.f32 %v7927_v31, %v4327_v9 }
 0x2a1   : > { %v6096_v7 = vpack.c.bf16 %v4943_v2, %v4943_v2  ;;  %v4941_v8 = vmax.f32 %v4805_v1, %v4809_v3  ;;  %v4328_v13 = vmax.f32 %v6771_v4, %v7011_v5  ;;  %v4572_v30 = vadd.f32 %v7927_v31, %v4325_v18 }
 0x2a2   : > { %v3057_v10 = vpop.f32.mrf.mxu0  ;;  %v4017_v11 = vpop.f32.mrf.mxu1  ;;  %v4814_v27 = vmax.f32 %v4574_v16, 0.0 }
 0x2a3   : > { %5543 = vst [vmem:[%s7503_s13 + $0x1ac] sm:$0x7] %v6096_v7  ;;  %v6242_v12 = vpack.c.bf16 %v4941_v8, %v4940_v6  ;;  %v4326_v21 = vmax.f32 %v3057_v10, %v4017_v11  ;;  %v4575_v24 = vadd.f32 %v7927_v31, %v4328_v13  ;;  %v4812_v47 = vmax.f32 %v4572_v30, 0.0 }
 0x2a4   : > { %v6774_v14 = vpop.f32.mrf.mxu0  ;;  %v7014_v15 = vpop.f32.mrf.mxu1 }
 0x2a5   : > { %6284 = vst [vmem:[%s7503_s13 + $0x1a0] sm:$0xff] %v6242_v12   ;;  %v4331_v17 = vmax.f32 %v6774_v14, %v7014_v15  ;;  %v4573_v34 = vadd.f32 %v7927_v31, %v4326_v21  ;;  %v4815_v38 = vmax.f32 %v4575_v24, 0.0 }
 0x2a6   : > { %v3070_v19 = vpop.f32.mrf.mxu0  ;;  %v4030_v20 = vpop.f32.mrf.mxu1 }
 0x2a7   : > { %v4578_v22 = vadd.f32 %v7927_v31, %v4331_v17  ;;  %v4329_v23 = vmax.f32 %v3070_v19, %v4030_v20  ;;  %v4813_v48 = vmax.f32 %v4573_v34, 0.0 }
 0x2a8   : > { %v6775_v25 = vpop.f32.mrf.mxu0  ;;  %v7015_v26 = vpop.f32.mrf.mxu1 }
 0x2a9   : > { %v4818_v28 = vmax.f32 %v4578_v22, 0.0  ;;  %v4576_v59 = vadd.f32 %v7927_v31, %v4329_v23  ;;  %v4332_v29 = vmax.f32 %v6775_v25, %v7015_v26 }
 0x2aa   : > { %v3073_v32 = vpop.f32.mrf.mxu0  ;;  %v4033_v33 = vpop.f32.mrf.mxu1 }
 0x2ab   : > { %v4946_v35 = vmax.f32 %v4814_v27, %v4818_v28  ;;  %v4579_v36 = vadd.f32 %v7927_v31, %v4332_v29  ;;  %v4330_v37 = vmax.f32 %v3073_v32, %v4033_v33  ;;  %v4816_v42 = vmax.f32 %v4576_v59, 0.0 }
 0x2ac   : > { %v6778_v39 = vpop.f32.mrf.mxu0  ;;  %v7018_v40 = vpop.f32.mrf.mxu1 }
 0x2ad   : > { %v6099_v41 = vpack.c.bf16 %v4946_v35, %v4946_v35  ;;  %v4819_v43 = vmax.f32 %v4579_v36, 0.0  ;;  %v4577_v44 = vadd.f32 %v7927_v31, %v4330_v37  ;;  %v4944_v51 = vmax.f32 %v4812_v47, %v4816_v42 }
 0x2ae   : > { %v3086_v45 = vpop.f32.mrf.mxu0  ;;  %v4046_v46 = vpop.f32.mrf.mxu1  ;;  %v4335_v54 = vmax.f32 %v6778_v39, %v7018_v40 }
 0x2af   : > { %5546 = vst [vmem:[%s7503_s13 + $0x1b8] sm:$0xf] %v6099_v41  ;;  %v4947_v49 = vmax.f32 %v4815_v38, %v4819_v43  ;;  %v4817_v61 = vmax.f32 %v4577_v44, 0.0  ;;  %v4333_v2 = vmax.f32 %v3086_v45, %v4046_v46 }
 0x2b0   : > { %v6779_v50 = vpop.f32.mrf.mxu0  ;;  %v7019_v57 = vpop.f32.mrf.mxu1  ;;  %v4582_v0 = vadd.f32 %v7927_v31, %v4335_v54 }
 0x2b1   : > { %v6100_v52 = vpack.c.bf16 %v4947_v49, %v4947_v49  ;;  %v4945_v53 = vmax.f32 %v4813_v48, %v4817_v61  ;;  %v4336_v60 = vmax.f32 %v6779_v50, %v7019_v57  ;;  %v4580_v15 = vadd.f32 %v7927_v31, %v4333_v2 }
 0x2b2   : > { %v3089_v55 = vpop.f32.mrf.mxu0  ;;  %v4049_v56 = vpop.f32.mrf.mxu1  ;;  %v4822_v11 = vmax.f32 %v4582_v0, 0.0 }
 0x2b3   : > { %5547 = vst [vmem:[%s7503_s13 + $0x1bc] sm:$0x7] %v6100_v52  ;;  %v6247_v58 = vpack.c.bf16 %v4945_v53, %v4944_v51  ;;  %v4334_v5 = vmax.f32 %v3089_v55, %v4049_v56  ;;  %v4583_v8 = vadd.f32 %v7927_v31, %v4336_v60  ;;  %v4820_v30 = vmax.f32 %v4580_v15, 0.0 }
 0x2b4   : > { %v6782_v62 = vpop.f32.mrf.mxu0  ;;  %v7022_v63 = vpop.f32.mrf.mxu1 }
 0x2b5   : > { %6285 = vst [vmem:[%s7503_s13 + $0x1b0] sm:$0xff] %v6247_v58   ;;  %v4339_v1 = vmax.f32 %v6782_v62, %v7022_v63  ;;  %v4581_v18 = vadd.f32 %v7927_v31, %v4334_v5  ;;  %v4823_v22 = vmax.f32 %v4583_v8, 0.0 }
 0x2b6   : > { %v3102_v3 = vpop.f32.mrf.mxu0  ;;  %v4062_v4 = vpop.f32.mrf.mxu1 }
 0x2b7   : > { %v4586_v6 = vadd.f32 %v7927_v31, %v4339_v1  ;;  %v4337_v7 = vmax.f32 %v3102_v3, %v4062_v4  ;;  %v4821_v32 = vmax.f32 %v4581_v18, 0.0 }
 0x2b8   : > { %v6783_v9 = vpop.f32.mrf.mxu0  ;;  %v7023_v10 = vpop.f32.mrf.mxu1 }
 0x2b9   : > { %v4826_v12 = vmax.f32 %v4586_v6, 0.0  ;;  %v4584_v13 = vadd.f32 %v7927_v31, %v4337_v7  ;;  %v4340_v14 = vmax.f32 %v6783_v9, %v7023_v10 }
 0x2ba   : > { %v3105_v16 = vpop.f32.mrf.mxu0  ;;  %v4065_v17 = vpop.f32.mrf.mxu1 }
 0x2bb   : > { %v4950_v19 = vmax.f32 %v4822_v11, %v4826_v12  ;;  %v4587_v20 = vadd.f32 %v7927_v31, %v4340_v14  ;;  %v4338_v21 = vmax.f32 %v3105_v16, %v4065_v17  ;;  %v4824_v26 = vmax.f32 %v4584_v13, 0.0 }
 0x2bc   : > { %v6786_v23 = vpop.f32.mrf.mxu0  ;;  %v7026_v24 = vpop.f32.mrf.mxu1 }
 0x2bd   : > { %v6103_v25 = vpack.c.bf16 %v4950_v19, %v4950_v19  ;;  %v4827_v27 = vmax.f32 %v4587_v20, 0.0  ;;  %v4585_v28 = vadd.f32 %v7927_v31, %v4338_v21  ;;  %v4948_v37 = vmax.f32 %v4820_v30, %v4824_v26 }
 0x2be   : > { %v3118_v59 = vpop.f32.mrf.mxu0  ;;  %v4078_v29 = vpop.f32.mrf.mxu1  ;;  %v4343_v40 = vmax.f32 %v6786_v23, %v7026_v24 }
 0x2bf   : > { %5550 = vst [vmem:[%s7503_s13 + $0x1c8] sm:$0xf] %v6103_v25  ;;  %v4951_v33 = vmax.f32 %v4823_v22, %v4827_v27  ;;  %v4825_v34 = vmax.f32 %v4585_v28, 0.0  ;;  %v4341_v49 = vmax.f32 %v3118_v59, %v4078_v29 }
 0x2c0   : > { %v6787_v35 = vpop.f32.mrf.mxu0  ;;  %v7027_v36 = vpop.f32.mrf.mxu1  ;;  %v4590_v47 = vadd.f32 %v7927_v31, %v4343_v40 }
 0x2c1   : > { %v6104_v38 = vpack.c.bf16 %v4951_v33, %v4951_v33  ;;  %v4949_v39 = vmax.f32 %v4821_v32, %v4825_v34  ;;  %v4344_v44 = vmax.f32 %v6787_v35, %v7027_v36  ;;  %v4588_v63 = vadd.f32 %v7927_v31, %v4341_v49 }
 0x2c2   : > { %v3121_v41 = vpop.f32.mrf.mxu0  ;;  %v4081_v42 = vpop.f32.mrf.mxu1  ;;  %v4830_v56 = vmax.f32 %v4590_v47, 0.0 }
 0x2c3   : > { %5551 = vst [vmem:[%s7503_s13 + $0x1cc] sm:$0x7] %v6104_v38  ;;  %v6252_v43 = vpack.c.bf16 %v4949_v39, %v4948_v37  ;;  %v4342_v57 = vmax.f32 %v3121_v41, %v4081_v42  ;;  %v4591_v53 = vadd.f32 %v7927_v31, %v4344_v44  ;;  %v4828_v11 = vmax.f32 %v4588_v63, 0.0 }
 0x2c4   : > { %v6790_v45 = vpop.f32.mrf.mxu0  ;;  %v7030_v46 = vpop.f32.mrf.mxu1 }
 0x2c5   : > { %6286 = vst [vmem:[%s7503_s13 + $0x1c0] sm:$0xff] %v6252_v43   ;;  %v4347_v48 = vmax.f32 %v6790_v45, %v7030_v46  ;;  %v4589_v2 = vadd.f32 %v7927_v31, %v4342_v57  ;;  %v4831_v6 = vmax.f32 %v4591_v53, 0.0 }
 0x2c6   : > { %v3134_v61 = vpop.f32.mrf.mxu0  ;;  %v4094_v50 = vpop.f32.mrf.mxu1 }
 0x2c7   : > { %v4594_v51 = vadd.f32 %v7927_v31, %v4347_v48  ;;  %v4345_v52 = vmax.f32 %v3134_v61, %v4094_v50  ;;  %v4829_v12 = vmax.f32 %v4589_v2, 0.0 }
 0x2c8   : > { %v6791_v54 = vpop.f32.mrf.mxu0  ;;  %v7031_v55 = vpop.f32.mrf.mxu1 }
 0x2c9   : > { %v4834_v58 = vmax.f32 %v4594_v51, 0.0  ;;  %v4592_v60 = vadd.f32 %v7927_v31, %v4345_v52  ;;  %v4348_v62 = vmax.f32 %v6791_v54, %v7031_v55 }
 0x2ca   : > { %v3137_v0 = vpop.f32.mrf.mxu0  ;;  %v4097_v1 = vpop.f32.mrf.mxu1 }
 0x2cb   : > { %v4954_v3 = vmax.f32 %v4830_v56, %v4834_v58  ;;  %v4595_v4 = vadd.f32 %v7927_v31, %v4348_v62  ;;  %v4346_v5 = vmax.f32 %v3137_v0, %v4097_v1  ;;  %v4832_v8 = vmax.f32 %v4592_v60, 0.0 }
 0x2cd   : > { %v6107_v7 = vpack.c.bf16 %v4954_v3, %v4954_v3  ;;  %v4835_v9 = vmax.f32 %v4595_v4, 0.0  ;;  %v4593_v10 = vadd.f32 %v7927_v31, %v4346_v5  ;;  %v4952_v15 = vmax.f32 %v4828_v11, %v4832_v8 }
 0x2cf   : > { %5554 = vst [vmem:[%s7503_s13 + $0x1d8] sm:$0xf] %v6107_v7  ;;  %v4955_v13 = vmax.f32 %v4831_v6, %v4835_v9  ;;  %v4833_v14 = vmax.f32 %v4593_v10, 0.0 }
 0x2d1   : > { %v6108_v16 = vpack.c.bf16 %v4955_v13, %v4955_v13  ;;  %v4953_v17 = vmax.f32 %v4829_v12, %v4833_v14 }
 0x2d3   : > { %5555 = vst [vmem:[%s7503_s13 + $0x1dc] sm:$0x7] %v6108_v16  ;;  %v6257_v18 = vpack.c.bf16 %v4953_v17, %v4952_v15 }
 0x2d5   : > { %6287 = vst [vmem:[%s7503_s13 + $0x1d0] sm:$0xff] %v6257_v18  }
 0x2d6 PF: > { %s13_s12 = sadd.s32 1, %s7315_s12  }
 0x2d7   : > { %p10_p4 = scmp.ge.s32.totalorder %s13_s12, 4  }
 0x2d9   :  { %12 = sbr.rel (!%p10_p4) target bundleno = 1 (0x1), region = 62 }

// kernel: lenet200_forward.4
= control target key start
LH: loop header
LB: loop body
LE: loop exit
PB: predicated region body
PF: predicated region fallthrough
CT: control target
= control target key end

     0   :  { %s2202_s12 = smov 0   ;;  %s2537_s0 = inlined_call_operand.vmem [shape: bf16[2,832,256], index: 0, kind: input, shape index: {}]   ;;  %s2538_s1 = inlined_call_operand.vmem [shape: bf16[256,128], index: 1, kind: input, shape index: {}]   ;;  %s2539_s2 = inlined_call_operand.vmem [shape: f32[1,128], index: 2, kind: input, shape index: {}]   ;;  %s2540_s3 = inlined_call_operand.vmem [shape: bf16[2,13,13,128], index: 3, kind: output, shape index: {}]  }
   0x1 LB: > { %s1776_s13 = sadd.s32 4294967295, %s2179_s12   ;;  %p1780_p0 = scmp.ge.s32.totalorder %s2179_s12, 1  ;;  %s2179_s12 = sphi %s2202_s12, %s13_s12  }
   0x2   : > { %p137_p1 = scmp.lt.s32.totalorder %s2179_s12, 3 }
   0x4   : > { %p138_p2 = pnand %p1780_p0, %p137_p1 }
   0x5   : > { %p161_p3 = scmp.lt.s32.totalorder (!%p138_p2), %s1776_s13, 1 }
   0x6   : > { %141 = sbr.rel (%p138_p2) target bundleno = 485 (0x1e5), region = 32 }
   0xb   : > { %v2001_v0 = vld [vmem:[%s2538_s1 + $0x38] sm:$0xff]   ;;  %v2181_v1 = vmov 0   ;;  %v2002_v2 = vld [vmem:[%s2538_s1 + $0x30] sm:$0xff]   ;;  %v2003_v3 = vld [vmem:[%s2538_s1 + $0x28] sm:$0xff]   ;;  %s2544_s13 = smov (!%p161_p3, %s1776_s13), 1  ;;  %vm1667_vm0 = vcmask 1042432  }
   0xc   : > { %924 = vmatprep.subr.bf16.mxu0 %v2181_v1  ;;  %1958 = vmatprep.subr.bf16.mxu1 %v2181_v1  ;;  %v2004_v4 = vld [vmem:[%s2538_s1 + $0x20] sm:$0xff]   ;;  %s1990_s22 = smul.u32 832, %s2544_s13  ;;  %v2005_v5 = vld [vmem:[%s2538_s1 + $0x18] sm:$0xff]   ;;  %v2006_v7 = vld [vmem:[%s2538_s1 + $0x10] sm:$0xff]   ;;  %vm1668_vm1 = vsmask.f32 2304 }
   0xd   : > { %925 = vmatpush1.bf16.msra.mxu0 %v2001_v0  ;;  %1974 = vmatpush1.bf16.msra.mxu1 %v2001_v0  ;;  %v2007_v9 = vld [vmem:[%s2538_s1 + $0x8] sm:$0xff]   ;;  %v2008_v10 = vld [vmem:[%s2538_s1] sm:$0xff]   ;;  %v2009_v11 = vld [vmem:[%s2538_s1 + $0x78] sm:$0xff]  }
   0xe   : > { %926 = vmatprep.subr.bf16.mxu0 %v2181_v1  ;;  %1959 = vmatprep.subr.bf16.mxu1 %v2181_v1  ;;  %s2239_s27 = scalar_lea.vmem %s2537_s0, %s1990_s22  ;;  %v2010_v12 = vld [vmem:[%s2538_s1 + $0x70] sm:$0xff]   ;;  %v2011_v13 = vld [vmem:[%s2538_s1 + $0x68] sm:$0xff]   ;;  %v2012_v14 = vld [vmem:[%s2538_s1 + $0x60] sm:$0xff]  }
   0xf   : > { %v2019_v6 = vld [vmem:[%s2239_s27 + $0x4] ss:$8 sps:$4 sm:$0xff]   ;;  %v2013_v15 = vld [vmem:[%s2538_s1 + $0x58] sm:$0xff]   ;;  %v2014_v16 = vld [vmem:[%s2538_s1 + $0x50] sm:$0xff]  }
  0x10   : > { %v2022_v8 = vld [vmem:[%s2239_s27 + $0x1a4] ss:$8 sps:$4 sm:$0xff]   ;;  %956 = vmatprep.mubr.bf16.mxu0 %v2019_v6  ;;  %v2017_v19 = vld [vmem:[%s2239_s27] ss:$8 sps:$4 sm:$0xff]   ;;  %v2023_v21 = vld [vmem:[%s2239_s27 + $0x14] ss:$8 sps:$4 sm:$0xff]  }
  0x11   : > { %927 = vmatpush1.bf16.msra.mxu0 %v2002_v2  ;;  %1975 = vmatpush1.bf16.msra.mxu1 %v2002_v2  ;;  %v2015_v17 = vld [vmem:[%s2538_s1 + $0x48] sm:$0xff]   ;;  %v2016_v18 = vld [vmem:[%s2538_s1 + $0x40] sm:$0xff]   ;;  %v2025_v22 = vld [vmem:[%s2239_s27 + $0x1b4] ss:$8 sps:$4 sm:$0xff]  }
  0x12   : > { %928 = vmatprep.subr.bf16.mxu0 %v2181_v1  ;;  %1960 = vmatprep.subr.bf16.mxu1 %v2181_v1  ;;  %v2020_v20 = vld [vmem:[%s2239_s27 + $0x1a0] ss:$8 sps:$4 sm:$0xff]   ;;  %v2027_v23 = vld [vmem:[%s2239_s27 + $0x10] ss:$8 sps:$4 sm:$0xff]   ;;  %v2029_v25 = vld [vmem:[%s2239_s27 + $0x24] ss:$8 sps:$4 sm:$0xff]  }
  0x13   : > { %1164 = vmatprep.mubr.bf16.mxu1 %v2022_v8  ;;  %v2028_v24 = vld [vmem:[%s2239_s27 + $0x1b0] ss:$8 sps:$4 sm:$0xff]   ;;  %v2031_v26 = vld [vmem:[%s2239_s27 + $0x1c4] ss:$8 sps:$4 sm:$0xff]   ;;  %v2033_v27 = vld [vmem:[%s2239_s27 + $0x20] ss:$8 sps:$4 sm:$0xff]  }
  0x14   : > { %v2034_v28 = vld [vmem:[%s2239_s27 + $0x1c0] ss:$8 sps:$4 sm:$0xff]   ;;  %v2035_v29 = vld [vmem:[%s2239_s27 + $0x34] ss:$8 sps:$4 sm:$0xff]   ;;  %v2039_v31 = vld [vmem:[%s2239_s27 + $0x30] ss:$8 sps:$4 sm:$0xff]  }
  0x15   : > { %929 = vmatpush1.bf16.msra.mxu0 %v2003_v3  ;;  %1976 = vmatpush1.bf16.msra.mxu1 %v2003_v3  ;;  %v2037_v30 = vld [vmem:[%s2239_s27 + $0x1d4] ss:$8 sps:$4 sm:$0xff]   ;;  %v2040_v32 = vld [vmem:[%s2239_s27 + $0x1d0] ss:$8 sps:$4 sm:$0xff]   ;;  %v2041_v33 = vld [vmem:[%s2239_s27 + $0x44] ss:$8 sps:$4 sm:$0xff]  }
  0x16   : > { %930 = vmatprep.subr.bf16.mxu0 %v2181_v1  ;;  %1961 = vmatprep.subr.bf16.mxu1 %v2181_v1  ;;  %v2043_v34 = vld [vmem:[%s2239_s27 + $0x1e4] ss:$8 sps:$4 sm:$0xff]   ;;  %v2045_v35 = vld [vmem:[%s2239_s27 + $0x40] ss:$8 sps:$4 sm:$0xff]   ;;  %v2047_v37 = vld [vmem:[%s2239_s27 + $0x54] ss:$8 sps:$4 sm:$0xff]  }
  0x17   : > { %v2046_v36 = vld [vmem:[%s2239_s27 + $0x1e0] ss:$8 sps:$4 sm:$0xff]   ;;  %v2049_v38 = vld [vmem:[%s2239_s27 + $0x1f4] ss:$8 sps:$4 sm:$0xff]   ;;  %v2051_v39 = vld [vmem:[%s2239_s27 + $0x50] ss:$8 sps:$4 sm:$0xff]  }
  0x18   : > { %v2052_v40 = vld [vmem:[%s2239_s27 + $0x1f0] ss:$8 sps:$4 sm:$0xff]   ;;  %v2053_v41 = vld [vmem:[%s2239_s27 + $0x64] ss:$8 sps:$4 sm:$0xff]   ;;  %v2057_v43 = vld [vmem:[%s2239_s27 + $0x60] ss:$8 sps:$4 sm:$0xff]  }
  0x19   : > { %931 = vmatpush1.bf16.msra.mxu0 %v2004_v4  ;;  %1977 = vmatpush1.bf16.msra.mxu1 %v2004_v4  ;;  %v2055_v42 = vld [vmem:[%s2239_s27 + $0x204] ss:$8 sps:$4 sm:$0xff]   ;;  %v2058_v44 = vld [vmem:[%s2239_s27 + $0x200] ss:$8 sps:$4 sm:$0xff]   ;;  %v2059_v45 = vld [vmem:[%s2239_s27 + $0x74] ss:$8 sps:$4 sm:$0xff]  }
  0x1a   : > { %932 = vmatprep.subr.bf16.mxu0 %v2181_v1  ;;  %1962 = vmatprep.subr.bf16.mxu1 %v2181_v1  ;;  %v2061_v46 = vld [vmem:[%s2239_s27 + $0x214] ss:$8 sps:$4 sm:$0xff]   ;;  %v2063_v47 = vld [vmem:[%s2239_s27 + $0x70] ss:$8 sps:$4 sm:$0xff]   ;;  %v2065_v49 = vld [vmem:[%s2239_s27 + $0x84] ss:$8 sps:$4 sm:$0xff]  }
  0x1b   : > { %v2064_v48 = vld [vmem:[%s2239_s27 + $0x210] ss:$8 sps:$4 sm:$0xff]   ;;  %v2067_v50 = vld [vmem:[%s2239_s27 + $0x224] ss:$8 sps:$4 sm:$0xff]   ;;  %v2069_v51 = vld [vmem:[%s2239_s27 + $0x80] ss:$8 sps:$4 sm:$0xff]  }
  0x1c   : > { %v2070_v52 = vld [vmem:[%s2239_s27 + $0x220] ss:$8 sps:$4 sm:$0xff]   ;;  %v2071_v53 = vld [vmem:[%s2239_s27 + $0x94] ss:$8 sps:$4 sm:$0xff]   ;;  %v2075_v55 = vld [vmem:[%s2239_s27 + $0x90] ss:$8 sps:$4 sm:$0xff]  }
  0x1d   : > { %933 = vmatpush1.bf16.msra.mxu0 %v2005_v5  ;;  %1978 = vmatpush1.bf16.msra.mxu1 %v2005_v5  ;;  %v2073_v54 = vld [vmem:[%s2239_s27 + $0x234] ss:$8 sps:$4 sm:$0xff]   ;;  %v2076_v56 = vld [vmem:[%s2239_s27 + $0x230] ss:$8 sps:$4 sm:$0xff]   ;;  %v2077_v57 = vld [vmem:[%s2239_s27 + $0xa4] ss:$8 sps:$4 sm:$0xff]  }
  0x1e   : > { %934 = vmatprep.subr.bf16.mxu0 %v2181_v1  ;;  %1963 = vmatprep.subr.bf16.mxu1 %v2181_v1  ;;  %v2079_v58 = vld [vmem:[%s2239_s27 + $0x244] ss:$8 sps:$4 sm:$0xff]   ;;  %v2081_v59 = vld [vmem:[%s2239_s27 + $0xa0] ss:$8 sps:$4 sm:$0xff]   ;;  %v2083_v61 = vld [vmem:[%s2239_s27 + $0xb4] ss:$8 sps:$4 sm:$0xff]  }
  0x1f   : > { %v2082_v60 = vld [vmem:[%s2239_s27 + $0x240] ss:$8 sps:$4 sm:$0xff]   ;;  %v2085_v62 = vld [vmem:[%s2239_s27 + $0x254] ss:$8 sps:$4 sm:$0xff]   ;;  %v2087_v63 = vld [vmem:[%s2239_s27 + $0xb0] ss:$8 sps:$4 sm:$0xff]  }
  0x20   : > { %v2088_v0 = vld [vmem:[%s2239_s27 + $0x250] ss:$8 sps:$4 sm:$0xff]   ;;  %v2091_v2 = vld [vmem:[%s2239_s27 + $0x264] ss:$8 sps:$4 sm:$0xff]   ;;  %v2093_v3 = vld [vmem:[%s2239_s27 + $0xc0] ss:$8 sps:$4 sm:$0xff]  }
  0x21   : > { %935 = vmatpush1.bf16.msra.mxu0 %v2006_v7  ;;  %1979 = vmatpush1.bf16.msra.mxu1 %v2006_v7  ;;  %v2094_v4 = vld [vmem:[%s2239_s27 + $0x260] ss:$8 sps:$4 sm:$0xff]   ;;  %v2095_v5 = vld [vmem:[%s2239_s27 + $0xd4] ss:$8 sps:$4 sm:$0xff]   ;;  %v2099_v7 = vld [vmem:[%s2239_s27 + $0xd0] ss:$8 sps:$4 sm:$0xff]  }
  0x22   : > { %936 = vmatprep.subr.bf16.mxu0 %v2181_v1  ;;  %1964 = vmatprep.subr.bf16.mxu1 %v2181_v1  ;;  %v2097_v6 = vld [vmem:[%s2239_s27 + $0x274] ss:$8 sps:$4 sm:$0xff]   ;;  %v2100_v8 = vld [vmem:[%s2239_s27 + $0x270] ss:$8 sps:$4 sm:$0xff]   ;;  %vm2418_vm2 = vmand %vm1667_vm0, %vm1668_vm1 }
  0x25   : > { %937 = vmatpush1.bf16.msra.mxu0 %v2007_v9  ;;  %1980 = vmatpush1.bf16.msra.mxu1 %v2007_v9  ;;  %v2101_v9 = vld [vmem:[%s2239_s27 + $0xe4] ss:$8 sps:$4 sm:$0xff]  }
  0x26   : > { %938 = vmatprep.subr.bf16.mxu0 %v2181_v1  ;;  %1965 = vmatprep.subr.bf16.mxu1 %v2181_v1 }
  0x29   : > { %939 = vmatpush1.bf16.msra.mxu0 %v2008_v10  ;;  %1981 = vmatpush1.bf16.msra.mxu1 %v2008_v10  ;;  %v2103_v10 = vld [vmem:[%s2239_s27 + $0x284] ss:$8 sps:$4 sm:$0xff]  }
  0x2a   : > { %940 = vmatprep.subr.bf16.mxu0 %v2181_v1  ;;  %1966 = vmatprep.subr.bf16.mxu1 %v2181_v1 }
  0x2d   : > { %941 = vmatpush2.bf16.msra.mxu0 %v2009_v11  ;;  %1982 = vmatpush2.bf16.msra.mxu1 %v2009_v11  ;;  %v2105_v11 = vld [vmem:[%s2239_s27 + $0xe0] ss:$8 sps:$4 sm:$0xff]  }
  0x2e   : > { %942 = vmatprep.subr.bf16.mxu0 %v2181_v1  ;;  %1967 = vmatprep.subr.bf16.mxu1 %v2181_v1 }
  0x31   : > { %943 = vmatpush2.bf16.msra.mxu0 %v2010_v12  ;;  %1983 = vmatpush2.bf16.msra.mxu1 %v2010_v12  ;;  %v2106_v12 = vld [vmem:[%s2239_s27 + $0x280] ss:$8 sps:$4 sm:$0xff]  }
  0x32   : > { %944 = vmatprep.subr.bf16.mxu0 %v2181_v1  ;;  %1968 = vmatprep.subr.bf16.mxu1 %v2181_v1 }
  0x35   : > { %945 = vmatpush2.bf16.msra.mxu0 %v2011_v13  ;;  %1984 = vmatpush2.bf16.msra.mxu1 %v2011_v13  ;;  %v2107_v13 = vld [vmem:[%s2239_s27 + $0xf4] ss:$8 sps:$4 sm:$0xff]  }
  0x36   : > { %946 = vmatprep.subr.bf16.mxu0 %v2181_v1  ;;  %1969 = vmatprep.subr.bf16.mxu1 %v2181_v1 }
  0x39   : > { %947 = vmatpush2.bf16.msra.mxu0 %v2012_v14  ;;  %1985 = vmatpush2.bf16.msra.mxu1 %v2012_v14  ;;  %v2109_v14 = vld [vmem:[%s2239_s27 + $0x294] ss:$8 sps:$4 sm:$0xff]  }
  0x3a   : > { %948 = vmatprep.subr.bf16.mxu0 %v2181_v1  ;;  %1970 = vmatprep.subr.bf16.mxu1 %v2181_v1 }
  0x3d   : > { %949 = vmatpush2.bf16.msra.mxu0 %v2013_v15  ;;  %1986 = vmatpush2.bf16.msra.mxu1 %v2013_v15  ;;  %v2111_v15 = vld [vmem:[%s2239_s27 + $0xf0] ss:$8 sps:$4 sm:$0xff]  }
  0x3e   : > { %950 = vmatprep.subr.bf16.mxu0 %v2181_v1  ;;  %1971 = vmatprep.subr.bf16.mxu1 %v2181_v1 }
  0x41   : > { %951 = vmatpush2.bf16.msra.mxu0 %v2014_v16  ;;  %1987 = vmatpush2.bf16.msra.mxu1 %v2014_v16  ;;  %v2112_v16 = vld [vmem:[%s2239_s27 + $0x290] ss:$8 sps:$4 sm:$0xff]  }
  0x42   : > { %952 = vmatprep.subr.bf16.mxu0 %v2181_v1  ;;  %1972 = vmatprep.subr.bf16.mxu1 %v2181_v1 }
  0x45   : > { %953 = vmatpush2.bf16.msra.mxu0 %v2015_v17  ;;  %1988 = vmatpush2.bf16.msra.mxu1 %v2015_v17  ;;  %v2113_v17 = vld [vmem:[%s2239_s27 + $0x104] ss:$8 sps:$4 sm:$0xff]  }
  0x46   : > { %954 = vmatprep.subr.bf16.mxu0 %v2181_v1  ;;  %1973 = vmatprep.subr.bf16.mxu1 %v2181_v1  ;;  %v2089_v1 = vld [vmem:[%s2239_s27 + $0xc4] ss:$8 sps:$4 sm:$0xff]  }
  0x49   : > { %955 = vmatpush2.bf16.msra.mxu0 %v2016_v18  ;;  %1989 = vmatpush2.bf16.msra.mxu1 %v2016_v18  ;;  %v2115_v18 = vld [vmem:[%s2239_s27 + $0x2a4] ss:$8 sps:$4 sm:$0xff]  }
  0x4c   : > { %957 = vmatmul.mubr.bf16.vlgmr.msra.gmra.mxu0 %v2017_v19  ;;  %1165 = vmatmul.mubr.bf16.vlgmr.msra.gmra.mxu1 %v2020_v20  ;;  %v2117_v19 = vld [vmem:[%s2239_s27 + $0x100] ss:$8 sps:$4 sm:$0xff]  }
  0x4d   : > { %964 = vmatprep.mubr.bf16.mxu0 %v2023_v21  ;;  %1172 = vmatprep.mubr.bf16.mxu1 %v2025_v22  ;;  %v2118_v20 = vld [vmem:[%s2239_s27 + $0x2a0] ss:$8 sps:$4 sm:$0xff]   ;;  %v2119_v21 = vld [vmem:[%s2239_s27 + $0x114] ss:$8 sps:$4 sm:$0xff]  }
  0x4e   : > { %v2121_v22 = vld [vmem:[%s2239_s27 + $0x2b4] ss:$8 sps:$4 sm:$0xff]  }
  0x54   : > { %965 = vmatmul.mubr.bf16.gmra.mxu0 %v2027_v23  ;;  %1173 = vmatmul.mubr.bf16.gmra.mxu1 %v2028_v24  ;;  %v2123_v23 = vld [vmem:[%s2239_s27 + $0x110] ss:$8 sps:$4 sm:$0xff]  }
  0x55   : > { %972 = vmatprep.mubr.bf16.mxu0 %v2029_v25  ;;  %1180 = vmatprep.mubr.bf16.mxu1 %v2031_v26  ;;  %v2124_v24 = vld [vmem:[%s2239_s27 + $0x2b0] ss:$8 sps:$4 sm:$0xff]   ;;  %v2125_v25 = vld [vmem:[%s2239_s27 + $0x124] ss:$8 sps:$4 sm:$0xff]  }
  0x56   : > { %v2127_v26 = vld [vmem:[%s2239_s27 + $0x2c4] ss:$8 sps:$4 sm:$0xff]  }
  0x5c   : > { %973 = vmatmul.mubr.bf16.gmra.mxu0 %v2033_v27  ;;  %1181 = vmatmul.mubr.bf16.gmra.mxu1 %v2034_v28  ;;  %v2129_v27 = vld [vmem:[%s2239_s27 + $0x120] ss:$8 sps:$4 sm:$0xff]  }
  0x5d   : > { %980 = vmatprep.mubr.bf16.mxu0 %v2035_v29  ;;  %1188 = vmatprep.mubr.bf16.mxu1 %v2037_v30  ;;  %v2130_v28 = vld [vmem:[%s2239_s27 + $0x2c0] ss:$8 sps:$4 sm:$0xff]   ;;  %v2131_v29 = vld [vmem:[%s2239_s27 + $0x134] ss:$8 sps:$4 sm:$0xff]  }
  0x5e   : > { %v2133_v30 = vld [vmem:[%s2239_s27 + $0x2d4] ss:$8 sps:$4 sm:$0xff]  }
  0x64   : > { %981 = vmatmul.mubr.bf16.gmra.mxu0 %v2039_v31  ;;  %1189 = vmatmul.mubr.bf16.gmra.mxu1 %v2040_v32  ;;  %v2135_v31 = vld [vmem:[%s2239_s27 + $0x130] ss:$8 sps:$4 sm:$0xff]  }
  0x65   : > { %988 = vmatprep.mubr.bf16.mxu0 %v2041_v33  ;;  %1196 = vmatprep.mubr.bf16.mxu1 %v2043_v34  ;;  %v2136_v32 = vld [vmem:[%s2239_s27 + $0x2d0] ss:$8 sps:$4 sm:$0xff]   ;;  %v2137_v33 = vld [vmem:[%s2239_s27 + $0x144] ss:$8 sps:$4 sm:$0xff]  }
  0x66   : > { %v2139_v34 = vld [vmem:[%s2239_s27 + $0x2e4] ss:$8 sps:$4 sm:$0xff]  }
  0x6c   : > { %989 = vmatmul.mubr.bf16.gmra.mxu0 %v2045_v35  ;;  %1197 = vmatmul.mubr.bf16.gmra.mxu1 %v2046_v36  ;;  %v2141_v35 = vld [vmem:[%s2239_s27 + $0x140] ss:$8 sps:$4 sm:$0xff]  }
  0x6d   : > { %996 = vmatprep.mubr.bf16.mxu0 %v2047_v37  ;;  %1204 = vmatprep.mubr.bf16.mxu1 %v2049_v38  ;;  %v2142_v36 = vld [vmem:[%s2239_s27 + $0x2e0] ss:$8 sps:$4 sm:$0xff]   ;;  %v2143_v37 = vld [vmem:[%s2239_s27 + $0x154] ss:$8 sps:$4 sm:$0xff]  }
  0x6e   : > { %v2145_v38 = vld [vmem:[%s2239_s27 + $0x2f4] ss:$8 sps:$4 sm:$0xff]  }
  0x74   : > { %997 = vmatmul.mubr.bf16.gmra.mxu0 %v2051_v39  ;;  %1205 = vmatmul.mubr.bf16.gmra.mxu1 %v2052_v40  ;;  %v2147_v39 = vld [vmem:[%s2239_s27 + $0x150] ss:$8 sps:$4 sm:$0xff]  }
  0x75   : > { %1004 = vmatprep.mubr.bf16.mxu0 %v2053_v41  ;;  %1212 = vmatprep.mubr.bf16.mxu1 %v2055_v42  ;;  %v2148_v40 = vld [vmem:[%s2239_s27 + $0x2f0] ss:$8 sps:$4 sm:$0xff]   ;;  %v2149_v41 = vld [vmem:[%s2239_s27 + $0x164] ss:$8 sps:$4 sm:$0xff]  }
  0x76   : > { %v2151_v42 = vld [vmem:[%s2239_s27 + $0x304] ss:$8 sps:$4 sm:$0xff]  }
  0x7c   : > { %1005 = vmatmul.mubr.bf16.gmra.mxu0 %v2057_v43  ;;  %1213 = vmatmul.mubr.bf16.gmra.mxu1 %v2058_v44  ;;  %v2153_v43 = vld [vmem:[%s2239_s27 + $0x160] ss:$8 sps:$4 sm:$0xff]  }
  0x7d   : > { %1012 = vmatprep.mubr.bf16.mxu0 %v2059_v45  ;;  %1220 = vmatprep.mubr.bf16.mxu1 %v2061_v46  ;;  %v2154_v44 = vld [vmem:[%s2239_s27 + $0x300] ss:$8 sps:$4 sm:$0xff]   ;;  %v2155_v45 = vld [vmem:[%s2239_s27 + $0x174] ss:$8 sps:$4 sm:$0xff]  }
  0x7e   : > { %v2157_v46 = vld [vmem:[%s2239_s27 + $0x314] ss:$8 sps:$4 sm:$0xff]  }
  0x84   : > { %1013 = vmatmul.mubr.bf16.gmra.mxu0 %v2063_v47  ;;  %1221 = vmatmul.mubr.bf16.gmra.mxu1 %v2064_v48  ;;  %v2159_v47 = vld [vmem:[%s2239_s27 + $0x170] ss:$8 sps:$4 sm:$0xff]  }
  0x85   : > { %1020 = vmatprep.mubr.bf16.mxu0 %v2065_v49  ;;  %1228 = vmatprep.mubr.bf16.mxu1 %v2067_v50  ;;  %v2160_v48 = vld [vmem:[%s2239_s27 + $0x310] ss:$8 sps:$4 sm:$0xff]   ;;  %v2161_v49 = vld [vmem:[%s2239_s27 + $0x184] ss:$8 sps:$4 sm:$0xff]  }
  0x86   : > { %v2163_v50 = vld [vmem:[%s2239_s27 + $0x324] ss:$8 sps:$4 sm:$0xff]  }
  0x8c   : > { %1021 = vmatmul.mubr.bf16.gmra.mxu0 %v2069_v51  ;;  %1229 = vmatmul.mubr.bf16.gmra.mxu1 %v2070_v52  ;;  %v2165_v51 = vld [vmem:[%s2239_s27 + $0x180] ss:$8 sps:$4 sm:$0xff]  }
  0x8d   : > { %1028 = vmatprep.mubr.bf16.mxu0 %v2071_v53  ;;  %1236 = vmatprep.mubr.bf16.mxu1 %v2073_v54  ;;  %v2166_v52 = vld [vmem:[%s2239_s27 + $0x320] ss:$8 sps:$4 sm:$0xff]   ;;  %v2167_v53 = vld [vmem:[%s2239_s27 + $0x194] ss:$8 sps:$4 sm:$0xff]  }
  0x8e   : > { %v2169_v54 = vld [vmem:[%s2239_s27 + $0x334] ss:$8 sps:$4 sm:$0xff]  }
  0x94   : > { %1029 = vmatmul.mubr.bf16.gmra.mxu0 %v2075_v55  ;;  %1237 = vmatmul.mubr.bf16.gmra.mxu1 %v2076_v56 }
  0x95   : > { %1036 = vmatprep.mubr.bf16.mxu0 %v2077_v57  ;;  %1244 = vmatprep.mubr.bf16.mxu1 %v2079_v58 }
  0x9c   : > { %1037 = vmatmul.mubr.bf16.gmra.mxu0 %v2081_v59  ;;  %1245 = vmatmul.mubr.bf16.gmra.mxu1 %v2082_v60 }
  0x9d   : > { %1044 = vmatprep.mubr.bf16.mxu0 %v2083_v61  ;;  %1252 = vmatprep.mubr.bf16.mxu1 %v2085_v62  ;;  %v2171_v61 = vld [vmem:[%s2239_s27 + $0x190] ss:$8 sps:$4 sm:$0xff]  }
  0x9e   : > { %v2172_v62 = vld [vmem:[%s2239_s27 + $0x330] ss:$8 sps:$4 sm:$0xff]   ;;  %s1991_s27 = smul.u32 104, %s2544_s13 }
  0xa0   : > { %s2415_s30 = scalar_lea.vmem %s2540_s3, %s1991_s27 }
  0xa4   : > { %1045 = vmatmul.mubr.bf16.gmra.mxu0 %v2087_v63  ;;  %1253 = vmatmul.mubr.bf16.gmra.mxu1 %v2088_v0  ;;  %v2405_v0 = vld [vmem:[%s2539_s2] ss:$0 sm:$0xff] }
  0xa5   : > { %1052 = vmatprep.mubr.bf16.mxu0 %v2089_v1  ;;  %1260 = vmatprep.mubr.bf16.mxu1 %v2091_v2 }
  0xac   : > { %1053 = vmatmul.mubr.bf16.gmra.mxu0 %v2093_v3  ;;  %1261 = vmatmul.mubr.bf16.gmra.mxu1 %v2094_v4 }
  0xad   : > { %1060 = vmatprep.mubr.bf16.mxu0 %v2095_v5  ;;  %1268 = vmatprep.mubr.bf16.mxu1 %v2097_v6 }
  0xb4   : > { %1061 = vmatmul.mubr.bf16.gmra.mxu0 %v2099_v7  ;;  %1269 = vmatmul.mubr.bf16.gmra.mxu1 %v2100_v8 }
  0xb5   : > { %1068 = vmatprep.mubr.bf16.mxu0 %v2101_v9  ;;  %1276 = vmatprep.mubr.bf16.mxu1 %v2103_v10 }
  0xbc   : > { %1069 = vmatmul.mubr.bf16.gmra.mxu0 %v2105_v11  ;;  %1277 = vmatmul.mubr.bf16.gmra.mxu1 %v2106_v12 }
  0xbd   : > { %1076 = vmatprep.mubr.bf16.mxu0 %v2107_v13  ;;  %1284 = vmatprep.mubr.bf16.mxu1 %v2109_v14 }
  0xc4   : > { %1077 = vmatmul.mubr.bf16.gmra.mxu0 %v2111_v15  ;;  %1285 = vmatmul.mubr.bf16.gmra.mxu1 %v2112_v16 }
  0xc5   : > { %1084 = vmatprep.mubr.bf16.mxu0 %v2113_v17  ;;  %1292 = vmatprep.mubr.bf16.mxu1 %v2115_v18 }
  0xcc   : > { %1085 = vmatmul.mubr.bf16.gmra.mxu0 %v2117_v19  ;;  %1293 = vmatmul.mubr.bf16.gmra.mxu1 %v2118_v20 }
  0xcd   : > { %1092 = vmatprep.mubr.bf16.mxu0 %v2119_v21  ;;  %1300 = vmatprep.mubr.bf16.mxu1 %v2121_v22 }
  0xd4   : > { %1093 = vmatmul.mubr.bf16.gmra.mxu0 %v2123_v23  ;;  %1301 = vmatmul.mubr.bf16.gmra.mxu1 %v2124_v24 }
  0xd5   : > { %1100 = vmatprep.mubr.bf16.mxu0 %v2125_v25  ;;  %1308 = vmatprep.mubr.bf16.mxu1 %v2127_v26 }
  0xdc   : > { %1101 = vmatmul.mubr.bf16.gmra.mxu0 %v2129_v27  ;;  %1309 = vmatmul.mubr.bf16.gmra.mxu1 %v2130_v28 }
  0xdd   : > { %1108 = vmatprep.mubr.bf16.mxu0 %v2131_v29  ;;  %1316 = vmatprep.mubr.bf16.mxu1 %v2133_v30  ;;  %v1670_v30 = vld [vmem:[%s2415_s30 + $0x4] sm:$0x7] }
  0xe4   : > { %1109 = vmatmul.mubr.bf16.gmra.mxu0 %v2135_v31  ;;  %1317 = vmatmul.mubr.bf16.gmra.mxu1 %v2136_v32 }
  0xe5   : > { %1116 = vmatprep.mubr.bf16.mxu0 %v2137_v33  ;;  %1324 = vmatprep.mubr.bf16.mxu1 %v2139_v34 }
  0xec   : > { %1117 = vmatmul.mubr.bf16.gmra.mxu0 %v2141_v35  ;;  %1325 = vmatmul.mubr.bf16.gmra.mxu1 %v2142_v36 }
  0xed   : > { %1124 = vmatprep.mubr.bf16.mxu0 %v2143_v37  ;;  %1332 = vmatprep.mubr.bf16.mxu1 %v2145_v38 }
  0xf4   : > { %1125 = vmatmul.mubr.bf16.gmra.mxu0 %v2147_v39  ;;  %1333 = vmatmul.mubr.bf16.gmra.mxu1 %v2148_v40 }
  0xf5   : > { %1132 = vmatprep.mubr.bf16.mxu0 %v2149_v41  ;;  %1340 = vmatprep.mubr.bf16.mxu1 %v2151_v42 }
  0xfc   : > { %1133 = vmatmul.mubr.bf16.gmra.mxu0 %v2153_v43  ;;  %1341 = vmatmul.mubr.bf16.gmra.mxu1 %v2154_v44 }
  0xfd   : > { %1140 = vmatprep.mubr.bf16.mxu0 %v2155_v45  ;;  %1348 = vmatprep.mubr.bf16.mxu1 %v2157_v46 }
 0x104   : > { %1141 = vmatmul.mubr.bf16.gmra.mxu0 %v2159_v47  ;;  %1349 = vmatmul.mubr.bf16.gmra.mxu1 %v2160_v48 }
 0x105   : > { %1148 = vmatprep.mubr.bf16.mxu0 %v2161_v49  ;;  %1356 = vmatprep.mubr.bf16.mxu1 %v2163_v50 }
 0x10c   : > { %v958_v55 = vpop.f32.mrf.mxu0  ;;  %1149 = vmatmul.mubr.bf16.gmra.mxu0 %v2165_v51  ;;  %v1166_v56 = vpop.f32.mrf.mxu1  ;;  %1357 = vmatmul.mubr.bf16.gmra.mxu1 %v2166_v52 }
 0x10d   : > { %1156 = vmatprep.mubr.bf16.mxu0 %v2167_v53  ;;  %1364 = vmatprep.mubr.bf16.mxu1 %v2169_v54  ;;  %v1373_v63 = vmax.f32 %v958_v55, %v1166_v56 }
 0x10e   : > { %v960_v57 = vpop.f32.mrf.mxu0  ;;  %v1168_v58 = vpop.f32.mrf.mxu1 }
 0x10f   : > { %v1432_v5 = vadd.f32 %v2405_v0, %v1373_v63 }
 0x110   : > { %v961_v59 = vpop.f32.mrf.mxu0  ;;  %v1169_v60 = vpop.f32.mrf.mxu1 }
 0x111   : > { %v1374_v6 = vmax.f32 %v961_v59, %v1169_v60  ;;  %v1484_v13 = vmax.f32 %v1432_v5, 0.0 }
 0x112   : > { %v963_v1 = vpop.f32.mrf.mxu0  ;;  %v1171_v2 = vpop.f32.mrf.mxu1 }
 0x113   : > { %v1433_v14 = vadd.f32 %v2405_v0, %v1374_v6  ;;  %v1674_v1 = vld [vmem:[%s2415_s30 + $0xc] sm:$0x7] }
 0x114   : > { %v966_v3 = vpop.f32.mrf.mxu0  ;;  %1157 = vmatmul.mubr.bf16.gmra.mxu0 %v2171_v61  ;;  %v1174_v4 = vpop.f32.mrf.mxu1  ;;  %1365 = vmatmul.mubr.bf16.gmra.mxu1 %v2172_v62 }
 0x115   : > { %v1375_v7 = vmax.f32 %v966_v3, %v1174_v4  ;;  %v1485_v23 = vmax.f32 %v1433_v14, 0.0 }
 0x116   : > { %v968_v8 = vpop.f32.mrf.mxu0  ;;  %v1176_v9 = vpop.f32.mrf.mxu1 }
 0x117   : > { %v1434_v10 = vadd.f32 %v2405_v0, %v1375_v7 }
 0x118   : > { %v969_v11 = vpop.f32.mrf.mxu0  ;;  %v1177_v12 = vpop.f32.mrf.mxu1 }
 0x119   : > { %v1486_v15 = vmax.f32 %v1434_v10, 0.0  ;;  %v1376_v16 = vmax.f32 %v969_v11, %v1177_v12 }
 0x11a   : > { %v971_v17 = vpop.f32.mrf.mxu0  ;;  %v1179_v18 = vpop.f32.mrf.mxu1 }
 0x11b   : > { %v1536_v19 = vmax.f32 %v1484_v13, %v1486_v15  ;;  %v1435_v20 = vadd.f32 %v2405_v0, %v1376_v16 }
 0x11c   : > { %v974_v21 = vpop.f32.mrf.mxu0  ;;  %v1182_v22 = vpop.f32.mrf.mxu1 }
 0x11d   : > { %v1932_v24 = vpack.c.bf16 %v1536_v19, %v1536_v19  ;;  %v1487_v25 = vmax.f32 %v1435_v20, 0.0  ;;  %v1377_v34 = vmax.f32 %v974_v21, %v1182_v22 }
 0x11e   : > { %v976_v26 = vpop.f32.mrf.mxu0  ;;  %v1184_v27 = vpop.f32.mrf.mxu1 }
 0x11f   : > { %1666 = vst [vmem:[%s2415_s30] sm:$0xf] %v1932_v24  ;;  %v1537_v28 = vmax.f32 %v1485_v23, %v1487_v25  ;;  %v1436_v40 = vadd.f32 %v2405_v0, %v1377_v34 }
 0x120   : > { %v977_v31 = vpop.f32.mrf.mxu0  ;;  %v1185_v32 = vpop.f32.mrf.mxu1 }
 0x121   : > { %v1933_v33 = vpack.c.bf16 %v1537_v28, %v1537_v28  ;;  %v1378_v41 = vmax.f32 %v977_v31, %v1185_v32  ;;  %v1488_v48 = vmax.f32 %v1436_v40, 0.0 }
 0x122   : > { %v979_v35 = vpop.f32.mrf.mxu0  ;;  %v1187_v36 = vpop.f32.mrf.mxu1 }
 0x123   : > { %v1671_v37 = vsel %vm2418_vm2, %v1933_v33, %v1670_v30  ;;  %v1437_v49 = vadd.f32 %v2405_v0, %v1378_v41  ;;  %v1678_v36 = vld [vmem:[%s2415_s30 + $0x14] sm:$0x7] }
 0x124   : > { %1672 = vst [vmem:[%s2415_s30 + $0x4] sm:$0x7] %v1671_v37  ;;  %v982_v38 = vpop.f32.mrf.mxu0  ;;  %v1190_v39 = vpop.f32.mrf.mxu1 }
 0x125   : > { %v1379_v42 = vmax.f32 %v982_v38, %v1190_v39  ;;  %v1489_v58 = vmax.f32 %v1437_v49, 0.0 }
 0x126   : > { %v984_v43 = vpop.f32.mrf.mxu0  ;;  %v1192_v44 = vpop.f32.mrf.mxu1 }
 0x127   : > { %v1438_v45 = vadd.f32 %v2405_v0, %v1379_v42 }
 0x128   : > { %v985_v46 = vpop.f32.mrf.mxu0  ;;  %v1193_v47 = vpop.f32.mrf.mxu1 }
 0x129   : > { %v1490_v50 = vmax.f32 %v1438_v45, 0.0  ;;  %v1380_v51 = vmax.f32 %v985_v46, %v1193_v47 }
 0x12a   : > { %v987_v52 = vpop.f32.mrf.mxu0  ;;  %v1195_v53 = vpop.f32.mrf.mxu1 }
 0x12b   : > { %v1538_v54 = vmax.f32 %v1488_v48, %v1490_v50  ;;  %v1439_v55 = vadd.f32 %v2405_v0, %v1380_v51 }
 0x12c   : > { %v990_v56 = vpop.f32.mrf.mxu0  ;;  %v1198_v57 = vpop.f32.mrf.mxu1 }
 0x12d   : > { %v1934_v59 = vpack.c.bf16 %v1538_v54, %v1538_v54  ;;  %v1491_v60 = vmax.f32 %v1439_v55, 0.0  ;;  %v1381_v5 = vmax.f32 %v990_v56, %v1198_v57 }
 0x12e   : > { %v992_v61 = vpop.f32.mrf.mxu0  ;;  %v1200_v62 = vpop.f32.mrf.mxu1 }
 0x12f   : > { %1673 = vst [vmem:[%s2415_s30 + $0x8] sm:$0xf] %v1934_v59  ;;  %v1539_v63 = vmax.f32 %v1489_v58, %v1491_v60  ;;  %v1440_v11 = vadd.f32 %v2405_v0, %v1381_v5 }
 0x130   : > { %v993_v2 = vpop.f32.mrf.mxu0  ;;  %v1201_v3 = vpop.f32.mrf.mxu1 }
 0x131   : > { %v1935_v4 = vpack.c.bf16 %v1539_v63, %v1539_v63  ;;  %v1382_v12 = vmax.f32 %v993_v2, %v1201_v3  ;;  %v1492_v19 = vmax.f32 %v1440_v11, 0.0 }
 0x132   : > { %v995_v6 = vpop.f32.mrf.mxu0  ;;  %v1203_v7 = vpop.f32.mrf.mxu1 }
 0x133   : > { %v1675_v8 = vsel %vm2418_vm2, %v1935_v4, %v1674_v1  ;;  %v1441_v20 = vadd.f32 %v2405_v0, %v1382_v12  ;;  %v1682_v7 = vld [vmem:[%s2415_s30 + $0x1c] sm:$0x7] }
 0x134   : > { %1676 = vst [vmem:[%s2415_s30 + $0xc] sm:$0x7] %v1675_v8  ;;  %v998_v9 = vpop.f32.mrf.mxu0  ;;  %v1206_v10 = vpop.f32.mrf.mxu1 }
 0x135   : > { %v1383_v13 = vmax.f32 %v998_v9, %v1206_v10  ;;  %v1493_v30 = vmax.f32 %v1441_v20, 0.0 }
 0x136   : > { %v1000_v14 = vpop.f32.mrf.mxu0  ;;  %v1208_v15 = vpop.f32.mrf.mxu1 }
 0x137   : > { %v1442_v16 = vadd.f32 %v2405_v0, %v1383_v13 }
 0x138   : > { %v1001_v17 = vpop.f32.mrf.mxu0  ;;  %v1209_v18 = vpop.f32.mrf.mxu1 }
 0x139   : > { %v1494_v21 = vmax.f32 %v1442_v16, 0.0  ;;  %v1384_v22 = vmax.f32 %v1001_v17, %v1209_v18 }
 0x13a   : > { %v1003_v23 = vpop.f32.mrf.mxu0  ;;  %v1211_v24 = vpop.f32.mrf.mxu1 }
 0x13b   : > { %v1540_v25 = vmax.f32 %v1492_v19, %v1494_v21  ;;  %v1443_v26 = vadd.f32 %v2405_v0, %v1384_v22 }
 0x13c   : > { %v1006_v27 = vpop.f32.mrf.mxu0  ;;  %v1214_v28 = vpop.f32.mrf.mxu1 }
 0x13d   : > { %v1936_v31 = vpack.c.bf16 %v1540_v25, %v1540_v25  ;;  %v1495_v32 = vmax.f32 %v1443_v26, 0.0  ;;  %v1385_v40 = vmax.f32 %v1006_v27, %v1214_v28 }
 0x13e   : > { %v1008_v33 = vpop.f32.mrf.mxu0  ;;  %v1216_v34 = vpop.f32.mrf.mxu1 }
 0x13f   : > { %1677 = vst [vmem:[%s2415_s30 + $0x10] sm:$0xf] %v1936_v31  ;;  %v1541_v35 = vmax.f32 %v1493_v30, %v1495_v32  ;;  %v1444_v46 = vadd.f32 %v2405_v0, %v1385_v40 }
 0x140   : > { %v1009_v37 = vpop.f32.mrf.mxu0  ;;  %v1217_v38 = vpop.f32.mrf.mxu1 }
 0x141   : > { %v1937_v39 = vpack.c.bf16 %v1541_v35, %v1541_v35  ;;  %v1386_v47 = vmax.f32 %v1009_v37, %v1217_v38  ;;  %v1496_v54 = vmax.f32 %v1444_v46, 0.0 }
 0x142   : > { %v1011_v41 = vpop.f32.mrf.mxu0  ;;  %v1219_v42 = vpop.f32.mrf.mxu1 }
 0x143   : > { %v1679_v43 = vsel %vm2418_vm2, %v1937_v39, %v1678_v36  ;;  %v1445_v55 = vadd.f32 %v2405_v0, %v1386_v47  ;;  %v1686_v42 = vld [vmem:[%s2415_s30 + $0x24] sm:$0x7] }
 0x144   : > { %1680 = vst [vmem:[%s2415_s30 + $0x14] sm:$0x7] %v1679_v43  ;;  %v1014_v44 = vpop.f32.mrf.mxu0  ;;  %v1222_v45 = vpop.f32.mrf.mxu1 }
 0x145   : > { %v1387_v48 = vmax.f32 %v1014_v44, %v1222_v45  ;;  %v1497_v1 = vmax.f32 %v1445_v55, 0.0 }
 0x146   : > { %v1016_v49 = vpop.f32.mrf.mxu0  ;;  %v1224_v50 = vpop.f32.mrf.mxu1 }
 0x147   : > { %v1446_v51 = vadd.f32 %v2405_v0, %v1387_v48 }
 0x148   : > { %v1017_v52 = vpop.f32.mrf.mxu0  ;;  %v1225_v53 = vpop.f32.mrf.mxu1 }
 0x149   : > { %v1498_v56 = vmax.f32 %v1446_v51, 0.0  ;;  %v1388_v57 = vmax.f32 %v1017_v52, %v1225_v53 }
 0x14a   : > { %v1019_v58 = vpop.f32.mrf.mxu0  ;;  %v1227_v59 = vpop.f32.mrf.mxu1 }
 0x14b   : > { %v1542_v60 = vmax.f32 %v1496_v54, %v1498_v56  ;;  %v1447_v61 = vadd.f32 %v2405_v0, %v1388_v57 }
 0x14c   : > { %v1022_v62 = vpop.f32.mrf.mxu0  ;;  %v1230_v63 = vpop.f32.mrf.mxu1 }
 0x14d   : > { %v1938_v2 = vpack.c.bf16 %v1542_v60, %v1542_v60  ;;  %v1499_v3 = vmax.f32 %v1447_v61, 0.0  ;;  %v1389_v11 = vmax.f32 %v1022_v62, %v1230_v63 }
 0x14e   : > { %v1024_v4 = vpop.f32.mrf.mxu0  ;;  %v1232_v5 = vpop.f32.mrf.mxu1 }
 0x14f   : > { %1681 = vst [vmem:[%s2415_s30 + $0x18] sm:$0xf] %v1938_v2  ;;  %v1543_v6 = vmax.f32 %v1497_v1, %v1499_v3  ;;  %v1448_v17 = vadd.f32 %v2405_v0, %v1389_v11 }
 0x150   : > { %v1025_v8 = vpop.f32.mrf.mxu0  ;;  %v1233_v9 = vpop.f32.mrf.mxu1 }
 0x151   : > { %v1939_v10 = vpack.c.bf16 %v1543_v6, %v1543_v6  ;;  %v1390_v18 = vmax.f32 %v1025_v8, %v1233_v9  ;;  %v1500_v25 = vmax.f32 %v1448_v17, 0.0 }
 0x152   : > { %v1027_v12 = vpop.f32.mrf.mxu0  ;;  %v1235_v13 = vpop.f32.mrf.mxu1 }
 0x153   : > { %v1683_v14 = vsel %vm2418_vm2, %v1939_v10, %v1682_v7  ;;  %v1449_v26 = vadd.f32 %v2405_v0, %v1390_v18  ;;  %v1690_v13 = vld [vmem:[%s2415_s30 + $0x2c] sm:$0x7] }
 0x154   : > { %1684 = vst [vmem:[%s2415_s30 + $0x1c] sm:$0x7] %v1683_v14  ;;  %v1030_v15 = vpop.f32.mrf.mxu0  ;;  %v1238_v16 = vpop.f32.mrf.mxu1 }
 0x155   : > { %v1391_v19 = vmax.f32 %v1030_v15, %v1238_v16  ;;  %v1501_v36 = vmax.f32 %v1449_v26, 0.0 }
 0x156   : > { %v1032_v20 = vpop.f32.mrf.mxu0  ;;  %v1240_v21 = vpop.f32.mrf.mxu1 }
 0x157   : > { %v1450_v22 = vadd.f32 %v2405_v0, %v1391_v19 }
 0x158   : > { %v1033_v23 = vpop.f32.mrf.mxu0  ;;  %v1241_v24 = vpop.f32.mrf.mxu1 }
 0x159   : > { %v1502_v27 = vmax.f32 %v1450_v22, 0.0  ;;  %v1392_v28 = vmax.f32 %v1033_v23, %v1241_v24 }
 0x15a   : > { %v1035_v30 = vpop.f32.mrf.mxu0  ;;  %v1243_v31 = vpop.f32.mrf.mxu1 }
 0x15b   : > { %v1544_v32 = vmax.f32 %v1500_v25, %v1502_v27  ;;  %v1451_v33 = vadd.f32 %v2405_v0, %v1392_v28 }
 0x15c   : > { %v1038_v34 = vpop.f32.mrf.mxu0  ;;  %v1246_v35 = vpop.f32.mrf.mxu1 }
 0x15d   : > { %v1940_v37 = vpack.c.bf16 %v1544_v32, %v1544_v32  ;;  %v1503_v38 = vmax.f32 %v1451_v33, 0.0  ;;  %v1393_v46 = vmax.f32 %v1038_v34, %v1246_v35 }
 0x15e   : > { %v1040_v39 = vpop.f32.mrf.mxu0  ;;  %v1248_v40 = vpop.f32.mrf.mxu1 }
 0x15f   : > { %1685 = vst [vmem:[%s2415_s30 + $0x20] sm:$0xf] %v1940_v37  ;;  %v1545_v41 = vmax.f32 %v1501_v36, %v1503_v38  ;;  %v1452_v52 = vadd.f32 %v2405_v0, %v1393_v46 }
 0x160   : > { %v1041_v43 = vpop.f32.mrf.mxu0  ;;  %v1249_v44 = vpop.f32.mrf.mxu1 }
 0x161   : > { %v1941_v45 = vpack.c.bf16 %v1545_v41, %v1545_v41  ;;  %v1394_v53 = vmax.f32 %v1041_v43, %v1249_v44  ;;  %v1504_v60 = vmax.f32 %v1452_v52, 0.0 }
 0x162   : > { %v1043_v47 = vpop.f32.mrf.mxu0  ;;  %v1251_v48 = vpop.f32.mrf.mxu1 }
 0x163   : > { %v1687_v49 = vsel %vm2418_vm2, %v1941_v45, %v1686_v42  ;;  %v1453_v61 = vadd.f32 %v2405_v0, %v1394_v53  ;;  %v1694_v48 = vld [vmem:[%s2415_s30 + $0x34] sm:$0x7] }
 0x164   : > { %1688 = vst [vmem:[%s2415_s30 + $0x24] sm:$0x7] %v1687_v49  ;;  %v1046_v50 = vpop.f32.mrf.mxu0  ;;  %v1254_v51 = vpop.f32.mrf.mxu1 }
 0x165   : > { %v1395_v54 = vmax.f32 %v1046_v50, %v1254_v51  ;;  %v1505_v7 = vmax.f32 %v1453_v61, 0.0 }
 0x166   : > { %v1048_v55 = vpop.f32.mrf.mxu0  ;;  %v1256_v56 = vpop.f32.mrf.mxu1 }
 0x167   : > { %v1454_v57 = vadd.f32 %v2405_v0, %v1395_v54 }
 0x168   : > { %v1049_v58 = vpop.f32.mrf.mxu0  ;;  %v1257_v59 = vpop.f32.mrf.mxu1 }
 0x169   : > { %v1506_v62 = vmax.f32 %v1454_v57, 0.0  ;;  %v1396_v63 = vmax.f32 %v1049_v58, %v1257_v59 }
 0x16a   : > { %v1051_v1 = vpop.f32.mrf.mxu0  ;;  %v1259_v2 = vpop.f32.mrf.mxu1 }
 0x16b   : > { %v1546_v3 = vmax.f32 %v1504_v60, %v1506_v62  ;;  %v1455_v4 = vadd.f32 %v2405_v0, %v1396_v63 }
 0x16c   : > { %v1054_v5 = vpop.f32.mrf.mxu0  ;;  %v1262_v6 = vpop.f32.mrf.mxu1 }
 0x16d   : > { %v1942_v8 = vpack.c.bf16 %v1546_v3, %v1546_v3  ;;  %v1507_v9 = vmax.f32 %v1455_v4, 0.0  ;;  %v1397_v17 = vmax.f32 %v1054_v5, %v1262_v6 }
 0x16e   : > { %v1056_v10 = vpop.f32.mrf.mxu0  ;;  %v1264_v11 = vpop.f32.mrf.mxu1 }
 0x16f   : > { %1689 = vst [vmem:[%s2415_s30 + $0x28] sm:$0xf] %v1942_v8  ;;  %v1547_v12 = vmax.f32 %v1505_v7, %v1507_v9  ;;  %v1456_v23 = vadd.f32 %v2405_v0, %v1397_v17 }
 0x170   : > { %v1057_v14 = vpop.f32.mrf.mxu0  ;;  %v1265_v15 = vpop.f32.mrf.mxu1 }
 0x171   : > { %v1943_v16 = vpack.c.bf16 %v1547_v12, %v1547_v12  ;;  %v1398_v24 = vmax.f32 %v1057_v14, %v1265_v15  ;;  %v1508_v32 = vmax.f32 %v1456_v23, 0.0 }
 0x172   : > { %v1059_v18 = vpop.f32.mrf.mxu0  ;;  %v1267_v19 = vpop.f32.mrf.mxu1 }
 0x173   : > { %v1691_v20 = vsel %vm2418_vm2, %v1943_v16, %v1690_v13  ;;  %v1457_v33 = vadd.f32 %v2405_v0, %v1398_v24  ;;  %v1698_v19 = vld [vmem:[%s2415_s30 + $0x3c] sm:$0x7] }
 0x174   : > { %1692 = vst [vmem:[%s2415_s30 + $0x2c] sm:$0x7] %v1691_v20  ;;  %v1062_v21 = vpop.f32.mrf.mxu0  ;;  %v1270_v22 = vpop.f32.mrf.mxu1 }
 0x175   : > { %v1399_v25 = vmax.f32 %v1062_v21, %v1270_v22  ;;  %v1509_v42 = vmax.f32 %v1457_v33, 0.0 }
 0x176   : > { %v1064_v26 = vpop.f32.mrf.mxu0  ;;  %v1272_v27 = vpop.f32.mrf.mxu1 }
 0x177   : > { %v1458_v28 = vadd.f32 %v2405_v0, %v1399_v25 }
 0x178   : > { %v1065_v30 = vpop.f32.mrf.mxu0  ;;  %v1273_v31 = vpop.f32.mrf.mxu1 }
 0x179   : > { %v1510_v34 = vmax.f32 %v1458_v28, 0.0  ;;  %v1400_v35 = vmax.f32 %v1065_v30, %v1273_v31 }
 0x17a   : > { %v1067_v36 = vpop.f32.mrf.mxu0  ;;  %v1275_v37 = vpop.f32.mrf.mxu1 }
 0x17b   : > { %v1548_v38 = vmax.f32 %v1508_v32, %v1510_v34  ;;  %v1459_v39 = vadd.f32 %v2405_v0, %v1400_v35 }
 0x17c   : > { %v1070_v40 = vpop.f32.mrf.mxu0  ;;  %v1278_v41 = vpop.f32.mrf.mxu1 }
 0x17d   : > { %v1944_v43 = vpack.c.bf16 %v1548_v38, %v1548_v38  ;;  %v1511_v44 = vmax.f32 %v1459_v39, 0.0  ;;  %v1401_v52 = vmax.f32 %v1070_v40, %v1278_v41 }
 0x17e   : > { %v1072_v45 = vpop.f32.mrf.mxu0  ;;  %v1280_v46 = vpop.f32.mrf.mxu1 }
 0x17f   : > { %1693 = vst [vmem:[%s2415_s30 + $0x30] sm:$0xf] %v1944_v43  ;;  %v1549_v47 = vmax.f32 %v1509_v42, %v1511_v44  ;;  %v1460_v58 = vadd.f32 %v2405_v0, %v1401_v52 }
 0x180   : > { %v1073_v49 = vpop.f32.mrf.mxu0  ;;  %v1281_v50 = vpop.f32.mrf.mxu1 }
 0x181   : > { %v1945_v51 = vpack.c.bf16 %v1549_v47, %v1549_v47  ;;  %v1402_v59 = vmax.f32 %v1073_v49, %v1281_v50  ;;  %v1512_v3 = vmax.f32 %v1460_v58, 0.0 }
 0x182   : > { %v1075_v53 = vpop.f32.mrf.mxu0  ;;  %v1283_v54 = vpop.f32.mrf.mxu1 }
 0x183   : > { %v1695_v55 = vsel %vm2418_vm2, %v1945_v51, %v1694_v48  ;;  %v1461_v4 = vadd.f32 %v2405_v0, %v1402_v59  ;;  %v1702_v54 = vld [vmem:[%s2415_s30 + $0x44] sm:$0x7] }
 0x184   : > { %1696 = vst [vmem:[%s2415_s30 + $0x34] sm:$0x7] %v1695_v55  ;;  %v1078_v56 = vpop.f32.mrf.mxu0  ;;  %v1286_v57 = vpop.f32.mrf.mxu1 }
 0x185   : > { %v1403_v60 = vmax.f32 %v1078_v56, %v1286_v57  ;;  %v1513_v13 = vmax.f32 %v1461_v4, 0.0 }
 0x186   : > { %v1080_v61 = vpop.f32.mrf.mxu0  ;;  %v1288_v62 = vpop.f32.mrf.mxu1 }
 0x187   : > { %v1462_v63 = vadd.f32 %v2405_v0, %v1403_v60 }
 0x188   : > { %v1081_v1 = vpop.f32.mrf.mxu0  ;;  %v1289_v2 = vpop.f32.mrf.mxu1 }
 0x189   : > { %v1514_v5 = vmax.f32 %v1462_v63, 0.0  ;;  %v1404_v6 = vmax.f32 %v1081_v1, %v1289_v2 }
 0x18a   : > { %v1083_v7 = vpop.f32.mrf.mxu0  ;;  %v1291_v8 = vpop.f32.mrf.mxu1 }
 0x18b   : > { %v1550_v9 = vmax.f32 %v1512_v3, %v1514_v5  ;;  %v1463_v10 = vadd.f32 %v2405_v0, %v1404_v6 }
 0x18c   : > { %v1086_v11 = vpop.f32.mrf.mxu0  ;;  %v1294_v12 = vpop.f32.mrf.mxu1 }
 0x18d   : > { %v1946_v14 = vpack.c.bf16 %v1550_v9, %v1550_v9  ;;  %v1515_v15 = vmax.f32 %v1463_v10, 0.0  ;;  %v1405_v23 = vmax.f32 %v1086_v11, %v1294_v12 }
 0x18e   : > { %v1088_v16 = vpop.f32.mrf.mxu0  ;;  %v1296_v17 = vpop.f32.mrf.mxu1 }
 0x18f   : > { %1697 = vst [vmem:[%s2415_s30 + $0x38] sm:$0xf] %v1946_v14  ;;  %v1551_v18 = vmax.f32 %v1513_v13, %v1515_v15  ;;  %v1464_v30 = vadd.f32 %v2405_v0, %v1405_v23 }
 0x190   : > { %v1089_v20 = vpop.f32.mrf.mxu0  ;;  %v1297_v21 = vpop.f32.mrf.mxu1 }
 0x191   : > { %v1947_v22 = vpack.c.bf16 %v1551_v18, %v1551_v18  ;;  %v1406_v31 = vmax.f32 %v1089_v20, %v1297_v21  ;;  %v1516_v38 = vmax.f32 %v1464_v30, 0.0 }
 0x192   : > { %v1091_v24 = vpop.f32.mrf.mxu0  ;;  %v1299_v25 = vpop.f32.mrf.mxu1 }
 0x193   : > { %v1699_v26 = vsel %vm2418_vm2, %v1947_v22, %v1698_v19  ;;  %v1465_v39 = vadd.f32 %v2405_v0, %v1406_v31  ;;  %v1706_v25 = vld [vmem:[%s2415_s30 + $0x4c] sm:$0x7] }
 0x194   : > { %1700 = vst [vmem:[%s2415_s30 + $0x3c] sm:$0x7] %v1699_v26  ;;  %v1094_v27 = vpop.f32.mrf.mxu0  ;;  %v1302_v28 = vpop.f32.mrf.mxu1 }
 0x195   : > { %v1407_v32 = vmax.f32 %v1094_v27, %v1302_v28  ;;  %v1517_v48 = vmax.f32 %v1465_v39, 0.0 }
 0x196   : > { %v1096_v33 = vpop.f32.mrf.mxu0  ;;  %v1304_v34 = vpop.f32.mrf.mxu1 }
 0x197   : > { %v1466_v35 = vadd.f32 %v2405_v0, %v1407_v32 }
 0x198   : > { %v1097_v36 = vpop.f32.mrf.mxu0  ;;  %v1305_v37 = vpop.f32.mrf.mxu1 }
 0x199   : > { %v1518_v40 = vmax.f32 %v1466_v35, 0.0  ;;  %v1408_v41 = vmax.f32 %v1097_v36, %v1305_v37 }
 0x19a   : > { %v1099_v42 = vpop.f32.mrf.mxu0  ;;  %v1307_v43 = vpop.f32.mrf.mxu1 }
 0x19b   : > { %v1552_v44 = vmax.f32 %v1516_v38, %v1518_v40  ;;  %v1467_v45 = vadd.f32 %v2405_v0, %v1408_v41 }
 0x19c   : > { %v1102_v46 = vpop.f32.mrf.mxu0  ;;  %v1310_v47 = vpop.f32.mrf.mxu1 }
 0x19d   : > { %v1948_v49 = vpack.c.bf16 %v1552_v44, %v1552_v44  ;;  %v1519_v50 = vmax.f32 %v1467_v45, 0.0  ;;  %v1409_v58 = vmax.f32 %v1102_v46, %v1310_v47 }
 0x19e   : > { %v1104_v51 = vpop.f32.mrf.mxu0  ;;  %v1312_v52 = vpop.f32.mrf.mxu1 }
 0x19f   : > { %1701 = vst [vmem:[%s2415_s30 + $0x40] sm:$0xf] %v1948_v49  ;;  %v1553_v53 = vmax.f32 %v1517_v48, %v1519_v50  ;;  %v1468_v1 = vadd.f32 %v2405_v0, %v1409_v58 }
 0x1a0   : > { %v1105_v55 = vpop.f32.mrf.mxu0  ;;  %v1313_v56 = vpop.f32.mrf.mxu1 }
 0x1a1   : > { %v1949_v57 = vpack.c.bf16 %v1553_v53, %v1553_v53  ;;  %v1410_v2 = vmax.f32 %v1105_v55, %v1313_v56  ;;  %v1520_v9 = vmax.f32 %v1468_v1, 0.0 }
 0x1a2   : > { %v1107_v59 = vpop.f32.mrf.mxu0  ;;  %v1315_v60 = vpop.f32.mrf.mxu1 }
 0x1a3   : > { %v1703_v61 = vsel %vm2418_vm2, %v1949_v57, %v1702_v54  ;;  %v1469_v10 = vadd.f32 %v2405_v0, %v1410_v2  ;;  %v1710_v60 = vld [vmem:[%s2415_s30 + $0x54] sm:$0x7] }
 0x1a4   : > { %1704 = vst [vmem:[%s2415_s30 + $0x44] sm:$0x7] %v1703_v61  ;;  %v1110_v62 = vpop.f32.mrf.mxu0  ;;  %v1318_v63 = vpop.f32.mrf.mxu1 }
 0x1a5   : > { %v1411_v3 = vmax.f32 %v1110_v62, %v1318_v63  ;;  %v1521_v19 = vmax.f32 %v1469_v10, 0.0 }
 0x1a6   : > { %v1112_v4 = vpop.f32.mrf.mxu0  ;;  %v1320_v5 = vpop.f32.mrf.mxu1 }
 0x1a7   : > { %v1470_v6 = vadd.f32 %v2405_v0, %v1411_v3 }
 0x1a8   : > { %v1113_v7 = vpop.f32.mrf.mxu0  ;;  %v1321_v8 = vpop.f32.mrf.mxu1 }
 0x1a9   : > { %v1522_v11 = vmax.f32 %v1470_v6, 0.0  ;;  %v1412_v12 = vmax.f32 %v1113_v7, %v1321_v8 }
 0x1aa   : > { %v1115_v13 = vpop.f32.mrf.mxu0  ;;  %v1323_v14 = vpop.f32.mrf.mxu1 }
 0x1ab   : > { %v1554_v15 = vmax.f32 %v1520_v9, %v1522_v11  ;;  %v1471_v16 = vadd.f32 %v2405_v0, %v1412_v12 }
 0x1ac   : > { %v1118_v17 = vpop.f32.mrf.mxu0  ;;  %v1326_v18 = vpop.f32.mrf.mxu1 }
 0x1ad   : > { %v1950_v20 = vpack.c.bf16 %v1554_v15, %v1554_v15  ;;  %v1523_v21 = vmax.f32 %v1471_v16, 0.0  ;;  %v1413_v30 = vmax.f32 %v1118_v17, %v1326_v18 }
 0x1ae   : > { %v1120_v22 = vpop.f32.mrf.mxu0  ;;  %v1328_v23 = vpop.f32.mrf.mxu1 }
 0x1af   : > { %1705 = vst [vmem:[%s2415_s30 + $0x48] sm:$0xf] %v1950_v20  ;;  %v1555_v24 = vmax.f32 %v1521_v19, %v1523_v21  ;;  %v1472_v36 = vadd.f32 %v2405_v0, %v1413_v30 }
 0x1b0   : > { %v1121_v26 = vpop.f32.mrf.mxu0  ;;  %v1329_v27 = vpop.f32.mrf.mxu1 }
 0x1b1   : > { %v1951_v28 = vpack.c.bf16 %v1555_v24, %v1555_v24  ;;  %v1414_v37 = vmax.f32 %v1121_v26, %v1329_v27  ;;  %v1524_v44 = vmax.f32 %v1472_v36, 0.0 }
 0x1b2   : > { %v1123_v31 = vpop.f32.mrf.mxu0  ;;  %v1331_v32 = vpop.f32.mrf.mxu1 }
 0x1b3   : > { %v1707_v33 = vsel %vm2418_vm2, %v1951_v28, %v1706_v25  ;;  %v1473_v45 = vadd.f32 %v2405_v0, %v1414_v37  ;;  %v1714_v32 = vld [vmem:[%s2415_s30 + $0x5c] sm:$0x7] }
 0x1b4   : > { %1708 = vst [vmem:[%s2415_s30 + $0x4c] sm:$0x7] %v1707_v33  ;;  %v1126_v34 = vpop.f32.mrf.mxu0  ;;  %v1334_v35 = vpop.f32.mrf.mxu1 }
 0x1b5   : > { %v1415_v38 = vmax.f32 %v1126_v34, %v1334_v35  ;;  %v1525_v54 = vmax.f32 %v1473_v45, 0.0 }
 0x1b6   : > { %v1128_v39 = vpop.f32.mrf.mxu0  ;;  %v1336_v40 = vpop.f32.mrf.mxu1 }
 0x1b7   : > { %v1474_v41 = vadd.f32 %v2405_v0, %v1415_v38 }
 0x1b8   : > { %v1129_v42 = vpop.f32.mrf.mxu0  ;;  %v1337_v43 = vpop.f32.mrf.mxu1 }
 0x1b9   : > { %v1526_v46 = vmax.f32 %v1474_v41, 0.0  ;;  %v1416_v47 = vmax.f32 %v1129_v42, %v1337_v43 }
 0x1ba   : > { %v1131_v48 = vpop.f32.mrf.mxu0  ;;  %v1339_v49 = vpop.f32.mrf.mxu1 }
 0x1bb   : > { %v1556_v50 = vmax.f32 %v1524_v44, %v1526_v46  ;;  %v1475_v51 = vadd.f32 %v2405_v0, %v1416_v47 }
 0x1bc   : > { %v1134_v52 = vpop.f32.mrf.mxu0  ;;  %v1342_v53 = vpop.f32.mrf.mxu1 }
 0x1bd   : > { %v1952_v55 = vpack.c.bf16 %v1556_v50, %v1556_v50  ;;  %v1527_v56 = vmax.f32 %v1475_v51, 0.0  ;;  %v1417_v1 = vmax.f32 %v1134_v52, %v1342_v53 }
 0x1be   : > { %v1136_v57 = vpop.f32.mrf.mxu0  ;;  %v1344_v58 = vpop.f32.mrf.mxu1 }
 0x1bf   : > { %1709 = vst [vmem:[%s2415_s30 + $0x50] sm:$0xf] %v1952_v55  ;;  %v1557_v59 = vmax.f32 %v1525_v54, %v1527_v56  ;;  %v1476_v7 = vadd.f32 %v2405_v0, %v1417_v1 }
 0x1c0   : > { %v1137_v61 = vpop.f32.mrf.mxu0  ;;  %v1345_v62 = vpop.f32.mrf.mxu1 }
 0x1c1   : > { %v1953_v63 = vpack.c.bf16 %v1557_v59, %v1557_v59  ;;  %v1418_v8 = vmax.f32 %v1137_v61, %v1345_v62  ;;  %v1528_v15 = vmax.f32 %v1476_v7, 0.0  ;;  %v1718_v62 = vld [vmem:[%s2415_s30 + $0x64] sm:$0x7] }
 0x1c2   : > { %v1139_v2 = vpop.f32.mrf.mxu0  ;;  %v1347_v3 = vpop.f32.mrf.mxu1 }
 0x1c3   : > { %v1711_v4 = vsel %vm2418_vm2, %v1953_v63, %v1710_v60  ;;  %v1477_v16 = vadd.f32 %v2405_v0, %v1418_v8 }
 0x1c4   : > { %1712 = vst [vmem:[%s2415_s30 + $0x54] sm:$0x7] %v1711_v4  ;;  %v1142_v5 = vpop.f32.mrf.mxu0  ;;  %v1350_v6 = vpop.f32.mrf.mxu1 }
 0x1c5   : > { %v1419_v9 = vmax.f32 %v1142_v5, %v1350_v6  ;;  %v1529_v25 = vmax.f32 %v1477_v16, 0.0 }
 0x1c6   : > { %v1144_v10 = vpop.f32.mrf.mxu0  ;;  %v1352_v11 = vpop.f32.mrf.mxu1 }
 0x1c7   : > { %v1478_v12 = vadd.f32 %v2405_v0, %v1419_v9 }
 0x1c8   : > { %v1145_v13 = vpop.f32.mrf.mxu0  ;;  %v1353_v14 = vpop.f32.mrf.mxu1 }
 0x1c9   : > { %v1530_v17 = vmax.f32 %v1478_v12, 0.0  ;;  %v1420_v18 = vmax.f32 %v1145_v13, %v1353_v14 }
 0x1ca   : > { %v1147_v19 = vpop.f32.mrf.mxu0  ;;  %v1355_v20 = vpop.f32.mrf.mxu1 }
 0x1cb   : > { %v1558_v21 = vmax.f32 %v1528_v15, %v1530_v17  ;;  %v1479_v22 = vadd.f32 %v2405_v0, %v1420_v18 }
 0x1cc   : > { %v1150_v23 = vpop.f32.mrf.mxu0  ;;  %v1358_v24 = vpop.f32.mrf.mxu1 }
 0x1cd   : > { %v1954_v26 = vpack.c.bf16 %v1558_v21, %v1558_v21  ;;  %v1531_v27 = vmax.f32 %v1479_v22, 0.0  ;;  %v1421_v36 = vmax.f32 %v1150_v23, %v1358_v24 }
 0x1ce   : > { %v1152_v28 = vpop.f32.mrf.mxu0  ;;  %v1360_v30 = vpop.f32.mrf.mxu1 }
 0x1cf   : > { %1713 = vst [vmem:[%s2415_s30 + $0x58] sm:$0xf] %v1954_v26  ;;  %v1559_v31 = vmax.f32 %v1529_v25, %v1531_v27  ;;  %v1480_v42 = vadd.f32 %v2405_v0, %v1421_v36 }
 0x1d0   : > { %v1153_v33 = vpop.f32.mrf.mxu0  ;;  %v1361_v34 = vpop.f32.mrf.mxu1 }
 0x1d1   : > { %v1955_v35 = vpack.c.bf16 %v1559_v31, %v1559_v31  ;;  %v1422_v43 = vmax.f32 %v1153_v33, %v1361_v34  ;;  %v1532_v50 = vmax.f32 %v1480_v42, 0.0 }
 0x1d2   : > { %v1155_v37 = vpop.f32.mrf.mxu0  ;;  %v1363_v38 = vpop.f32.mrf.mxu1 }
 0x1d3   : > { %v1715_v39 = vsel %vm2418_vm2, %v1955_v35, %v1714_v32  ;;  %v1481_v51 = vadd.f32 %v2405_v0, %v1422_v43 }
 0x1d4   : > { %1716 = vst [vmem:[%s2415_s30 + $0x5c] sm:$0x7] %v1715_v39  ;;  %v1158_v40 = vpop.f32.mrf.mxu0  ;;  %v1366_v41 = vpop.f32.mrf.mxu1 }
 0x1d5   : > { %v1423_v44 = vmax.f32 %v1158_v40, %v1366_v41  ;;  %v1533_v58 = vmax.f32 %v1481_v51, 0.0 }
 0x1d6   : > { %v1160_v45 = vpop.f32.mrf.mxu0  ;;  %v1368_v46 = vpop.f32.mrf.mxu1 }
 0x1d7   : > { %v1482_v47 = vadd.f32 %v2405_v0, %v1423_v44 }
 0x1d8   : > { %v1161_v48 = vpop.f32.mrf.mxu0  ;;  %v1369_v49 = vpop.f32.mrf.mxu1 }
 0x1d9   : > { %v1534_v52 = vmax.f32 %v1482_v47, 0.0  ;;  %v1424_v53 = vmax.f32 %v1161_v48, %v1369_v49 }
 0x1da   : > { %v1163_v54 = vpop.f32.mrf.mxu0  ;;  %v1371_v55 = vpop.f32.mrf.mxu1 }
 0x1db   : > { %v1560_v56 = vmax.f32 %v1532_v50, %v1534_v52  ;;  %v1483_v57 = vadd.f32 %v2405_v0, %v1424_v53 }
 0x1dd   : > { %v1956_v59 = vpack.c.bf16 %v1560_v56, %v1560_v56  ;;  %v1535_v60 = vmax.f32 %v1483_v57, 0.0 }
 0x1df   : > { %1717 = vst [vmem:[%s2415_s30 + $0x60] sm:$0xf] %v1956_v59  ;;  %v1561_v61 = vmax.f32 %v1533_v58, %v1535_v60 }
 0x1e1   : > { %v1957_v63 = vpack.c.bf16 %v1561_v61, %v1561_v61 }
 0x1e3   : > { %v1719_v1 = vsel %vm2418_vm2, %v1957_v63, %v1718_v62 }
 0x1e4   : > { %1720 = vst [vmem:[%s2415_s30 + $0x64] sm:$0x7] %v1719_v1 }
 0x1e5 PF: > { %s13_s12 = sadd.s32 1, %s2179_s12  }
 0x1e6   : > { %p10_p4 = scmp.ge.s32.totalorder %s13_s12, 4  }
 0x1e8   :  { %12 = sbr.rel (!%p10_p4) target bundleno = 1 (0x1), region = 62 }

// kernel: lenet200_forward.5
= control target key start
LH: loop header
LB: loop body
LE: loop exit
PB: predicated region body
PF: predicated region fallthrough
CT: control target
= control target key end

     0   :  { %v397_v27 = vlaneseq  ;;  %v3058_v35 = vmov 1966171168   ;;  %s3759_s0 = inlined_call_operand.vmem [shape: bf16[2,2816], index: 0, kind: input, shape index: {}]   ;;  %s3760_s1 = inlined_call_operand.vmem [shape: bf16[2816,128], index: 1, kind: input, shape index: {}]   ;;  %s3761_s2 = inlined_call_operand.vmem [shape: f32[1,128], index: 2, kind: input, shape index: {}]   ;;  %s3762_s3 = inlined_call_operand.vmem [shape: bf16[128,128], index: 3, kind: input, shape index: {}]   ;;  %s3763_s4 = inlined_call_operand.vmem [shape: f32[1,128], index: 4, kind: input, shape index: {}]   ;;  %s3764_s5 = inlined_call_operand.vmem [shape: bf16[128,256], index: 5, kind: input, shape index: {}]   ;;  %s3765_s6 = inlined_call_operand.vmem [shape: f32[1,256], index: 6, kind: input, shape index: {}]   ;;  %s3766_s7 = inlined_call_operand.hbm [shape: f32[2,256], index: 7, kind: output, shape index: {}]  }
   0x1   :  { %v2825_v0 = vld [vmem:[%s3760_s1 + $0x78] sm:$0xff]   ;;  %v2829_v4 = vld [vmem:[%s3760_s1 + $0x70] sm:$0xff]   ;;  %v2833_v8 = vld [vmem:[%s3760_s1 + $0x68] sm:$0xff]   ;;  %v395_v36 = vunpack.c.l.s4 %v3058_v35 }
   0x2   :  { %v2826_v1 = vld [vmem:[%s3760_s1 + $0x38] sm:$0xff]   ;;  %2549 = vmatprep.subr.bf16.mxu0 %v2825_v0  ;;  %v2830_v5 = vld [vmem:[%s3760_s1 + $0x30] sm:$0xff]   ;;  %v2834_v9 = vld [vmem:[%s3760_s1 + $0x28] sm:$0xff]   ;;  %v3196_v32 = vshrl.u32 %v397_v27, 7 }
   0x3   :  { %v2827_v2 = vld [vmem:[%s3760_s1 + $0xf8] sm:$0xff]   ;;  %2550 = vmatpush3.bf16.msra.mxu0 %v2826_v1  ;;  %v2831_v6 = vld [vmem:[%s3760_s1 + $0xf0] sm:$0xff]   ;;  %v2835_v10 = vld [vmem:[%s3760_s1 + $0xe8] sm:$0xff]   ;;  %v396_v39 = vunpack.c.0.s8 %v395_v36 }
   0x4   :  { %v2828_v3 = vld [vmem:[%s3760_s1 + $0xb8] sm:$0xff]   ;;  %2571 = vmatprep.subr.bf16.mxu1 %v2827_v2  ;;  %2551 = vmatprep.subr.bf16.mxu0 %v2829_v4  ;;  %v2832_v7 = vld [vmem:[%s3760_s1 + $0xb0] sm:$0xff]   ;;  %v2836_v11 = vld [vmem:[%s3760_s1 + $0xa8] sm:$0xff]  }
   0x5   :  { %2572 = vmatpush3.bf16.msra.mxu1 %v2828_v3  ;;  %v2837_v12 = vld [vmem:[%s3760_s1 + $0x60] sm:$0xff]   ;;  %v2841_v16 = vld [vmem:[%s3760_s1 + $0x58] sm:$0xff]   ;;  %v2845_v20 = vld [vmem:[%s3760_s1 + $0x50] sm:$0xff]   ;;  %v3211_v41 = vsub.s32 %v396_v39, %v3196_v32 }
   0x6   :  { %2573 = vmatprep.subr.bf16.mxu1 %v2831_v6  ;;  %v2838_v13 = vld [vmem:[%s3760_s1 + $0x20] sm:$0xff]   ;;  %v2842_v17 = vld [vmem:[%s3760_s1 + $0x18] sm:$0xff]   ;;  %v2846_v21 = vld [vmem:[%s3760_s1 + $0x10] sm:$0xff]  }
   0x7   :  { %2552 = vmatpush3.bf16.msra.mxu0 %v2830_v5  ;;  %v2839_v14 = vld [vmem:[%s3760_s1 + $0xe0] sm:$0xff]   ;;  %v2843_v18 = vld [vmem:[%s3760_s1 + $0xd8] sm:$0xff]   ;;  %v2847_v22 = vld [vmem:[%s3760_s1 + $0xd0] sm:$0xff]  }
   0x8   :  { %2553 = vmatprep.subr.bf16.mxu0 %v2833_v8  ;;  %v2840_v15 = vld [vmem:[%s3760_s1 + $0xa0] sm:$0xff]   ;;  %v2844_v19 = vld [vmem:[%s3760_s1 + $0x98] sm:$0xff]   ;;  %v2848_v23 = vld [vmem:[%s3760_s1 + $0x90] sm:$0xff]  }
   0x9   :  { %2574 = vmatpush3.bf16.msra.mxu1 %v2832_v7  ;;  %v2849_v24 = vld [vmem:[%s3760_s1 + $0x48] sm:$0xff]   ;;  %v2853_v29 = vld [vmem:[%s3760_s1 + $0x40] sm:$0xff]   ;;  %v2858_v37 = vld [vmem:[%s3760_s1 + $0x178] sm:$0xff]  }
   0xa   :  { %2575 = vmatprep.subr.bf16.mxu1 %v2835_v10  ;;  %v2850_v25 = vld [vmem:[%s3760_s1 + $0x8] sm:$0xff]   ;;  %v2854_v30 = vld [vmem:[%s3760_s1] sm:$0xff]   ;;  %v2860_v40 = vld [vmem:[%s3760_s1 + $0x1f8] sm:$0xff]  }
   0xb   :  { %2554 = vmatpush3.bf16.msra.mxu0 %v2834_v9  ;;  %v2851_v26 = vld [vmem:[%s3760_s1 + $0xc8] sm:$0xff]   ;;  %v2855_v31 = vld [vmem:[%s3760_s1 + $0xc0] sm:$0xff]   ;;  %v2859_v48 = vld [vmem:[%s3760_s1 + $0x138] sm:$0xff]  }
   0xc   :  { %2555 = vmatprep.subr.bf16.mxu0 %v2837_v12  ;;  %v2852_v28 = vld [vmem:[%s3760_s1 + $0x88] sm:$0xff]   ;;  %v28_v33 = vld [vmem:[%s3759_s0] sm:$0xff]  ;;  %v2862_v51 = vld [vmem:[%s3760_s1 + $0x170] sm:$0xff]  }
   0xd   :  { %2576 = vmatpush3.bf16.msra.mxu1 %v2836_v11  ;;  %v2857_v34 = vld [vmem:[%s3760_s1 + $0x80] sm:$0xff]   ;;  %v393_v38 = vcombine.high %v28_v33, %v28_v33  ;;  %v400_v42 = vrot.slane %v28_v33, %v3211_v41  ;;  %v2861_v53 = vld [vmem:[%s3760_s1 + $0x1b8] sm:$0xff]   ;;  %v2864_v54 = vld [vmem:[%s3760_s1 + $0x1f0] sm:$0xff]  }
   0xe   :  { %2577 = vmatprep.subr.bf16.mxu1 %v2839_v14  ;;  %v2863_v56 = vld [vmem:[%s3760_s1 + $0x130] sm:$0xff]   ;;  %v2866_v57 = vld [vmem:[%s3760_s1 + $0x168] sm:$0xff]   ;;  %v2870_v61 = vld [vmem:[%s3760_s1 + $0x160] sm:$0xff]  }
   0xf   :  { %2556 = vmatpush3.bf16.msra.mxu0 %v2838_v13  ;;  %v3215_v43 = vrot.slane %v393_v38, %v3211_v41  ;;  %v408_v44 = vcombine.high %v400_v42, %v400_v42  ;;  %v416_v45 = vrot.slane %v400_v42, %v3211_v41  ;;  %v2865_v58 = vld [vmem:[%s3760_s1 + $0x1b0] sm:$0xff]   ;;  %v2868_v59 = vld [vmem:[%s3760_s1 + $0x1e8] sm:$0xff]   ;;  %v2872_v63 = vld [vmem:[%s3760_s1 + $0x1e0] sm:$0xff]  }
  0x10   :  { %2557 = vmatprep.subr.bf16.mxu0 %v2841_v16  ;;  %v2867_v60 = vld [vmem:[%s3760_s1 + $0x128] sm:$0xff]   ;;  %v2871_v0 = vld [vmem:[%s3760_s1 + $0x120] sm:$0xff]   ;;  %v2874_v1 = vld [vmem:[%s3760_s1 + $0x158] sm:$0xff]  }
  0x11   :  { %2578 = vmatpush3.bf16.msra.mxu1 %v2840_v15  ;;  %v409_v46 = vcombine.high %v3215_v43, %v3215_v43  ;;  %v430_v47 = vrot.slane %v408_v44, %v3211_v41  ;;  %v438_v50 = vcombine.high %v416_v45, %v416_v45  ;;  %v2869_v62 = vld [vmem:[%s3760_s1 + $0x1a8] sm:$0xff]   ;;  %v2873_v2 = vld [vmem:[%s3760_s1 + $0x1a0] sm:$0xff]   ;;  %v2876_v3 = vld [vmem:[%s3760_s1 + $0x1d8] sm:$0xff]  }
  0x12   :  { %2579 = vmatprep.subr.bf16.mxu1 %v2843_v18  ;;  %v2875_v4 = vld [vmem:[%s3760_s1 + $0x118] sm:$0xff]   ;;  %v2878_v5 = vld [vmem:[%s3760_s1 + $0x150] sm:$0xff]   ;;  %v2882_v9 = vld [vmem:[%s3760_s1 + $0x148] sm:$0xff]  }
  0x13   :  { %2558 = vmatpush3.bf16.msra.mxu0 %v2842_v17  ;;  %v437_v49 = vrot.slane %v409_v46, %v3211_v41  ;;  %1648 = vmatprep.mubr.bf16.mxu0 %v430_v47  ;;  %v440_v52 = vcombine.high %v430_v47, %v430_v47  ;;  %v2877_v6 = vld [vmem:[%s3760_s1 + $0x198] sm:$0xff]   ;;  %v2880_v7 = vld [vmem:[%s3760_s1 + $0x1d0] sm:$0xff]   ;;  %v2884_v11 = vld [vmem:[%s3760_s1 + $0x1c8] sm:$0xff]   ;;  %v423_v17 = vrot.slane %v3215_v43, %v3211_v41 }
  0x14   :  { %2559 = vmatprep.subr.bf16.mxu0 %v2845_v20  ;;  %v2879_v8 = vld [vmem:[%s3760_s1 + $0x110] sm:$0xff]   ;;  %v2883_v12 = vld [vmem:[%s3760_s1 + $0x108] sm:$0xff]   ;;  %v2886_v13 = vld [vmem:[%s3760_s1 + $0x140] sm:$0xff]  }
  0x15   :  { %2580 = vmatpush3.bf16.msra.mxu1 %v2844_v19  ;;  %v441_v55 = vcombine.high %v437_v49, %v437_v49  ;;  %1688 = vmatprep.mubr.bf16.mxu1 %v440_v52  ;;  %v2881_v10 = vld [vmem:[%s3760_s1 + $0x190] sm:$0xff]   ;;  %v2885_v14 = vld [vmem:[%s3760_s1 + $0x188] sm:$0xff]   ;;  %v2888_v15 = vld [vmem:[%s3760_s1 + $0x1c0] sm:$0xff]  }
  0x16   :  { %2581 = vmatprep.subr.bf16.mxu1 %v2847_v22  ;;  %v2887_v16 = vld [vmem:[%s3760_s1 + $0x100] sm:$0xff]   ;;  %v2890_v18 = vld [vmem:[%s3760_s1 + $0x278] sm:$0xff]   ;;  %v439_v22 = vcombine.high %v423_v17, %v423_v17  ;;  %v2898_v27 = vld [vmem:[%s3760_s1 + $0x268] sm:$0xff]  }
  0x17   :  { %2560 = vmatpush3.bf16.msra.mxu0 %v2846_v21  ;;  %v2889_v19 = vld [vmem:[%s3760_s1 + $0x180] sm:$0xff]   ;;  %v2892_v20 = vld [vmem:[%s3760_s1 + $0x2f8] sm:$0xff]   ;;  %v2901_v33 = vld [vmem:[%s3760_s1 + $0x2a8] sm:$0xff]  }
  0x18   :  { %2561 = vmatprep.subr.bf16.mxu0 %v2849_v24  ;;  %v2891_v21 = vld [vmem:[%s3760_s1 + $0x238] sm:$0xff]   ;;  %v2903_v35 = vld [vmem:[%s3760_s1 + $0x220] sm:$0xff]   ;;  %v2912_v43 = vld [vmem:[%s3760_s1 + $0x2d0] sm:$0xff]  }
  0x19   :  { %2582 = vmatpush3.bf16.msra.mxu1 %v2848_v23  ;;  %v2894_v23 = vld [vmem:[%s3760_s1 + $0x270] sm:$0xff]   ;;  %v2893_v24 = vld [vmem:[%s3760_s1 + $0x2b8] sm:$0xff]   ;;  %v29_v46 = vld [vmem:[%s3759_s0 + $0x8] sm:$0xff] }
  0x1a   :  { %2583 = vmatprep.subr.bf16.mxu1 %v2851_v26  ;;  %v2895_v26 = vld [vmem:[%s3760_s1 + $0x230] sm:$0xff]   ;;  %v2906_v36 = vld [vmem:[%s3760_s1 + $0x258] sm:$0xff]  }
  0x1b   :  { %2562 = vmatpush3.bf16.msra.mxu0 %v2850_v25  ;;  %v2896_v25 = vld [vmem:[%s3760_s1 + $0x2f0] sm:$0xff]   ;;  %v2908_v38 = vld [vmem:[%s3760_s1 + $0x2d8] sm:$0xff]  }
  0x1c   :  { %2563 = vmatprep.subr.bf16.mxu0 %v2853_v29  ;;  %v2900_v29 = vld [vmem:[%s3760_s1 + $0x2e8] sm:$0xff]   ;;  %v2907_v39 = vld [vmem:[%s3760_s1 + $0x218] sm:$0xff]   ;;  %v2911_v44 = vld [vmem:[%s3760_s1 + $0x210] sm:$0xff]  }
  0x1d   :  { %2584 = vmatpush3.bf16.msra.mxu1 %v2852_v28  ;;  %v2897_v28 = vld [vmem:[%s3760_s1 + $0x2b0] sm:$0xff]   ;;  %v2909_v42 = vld [vmem:[%s3760_s1 + $0x298] sm:$0xff]  }
  0x1e   :  { %2585 = vmatprep.subr.bf16.mxu1 %v2855_v31  ;;  %v2902_v31 = vld [vmem:[%s3760_s1 + $0x260] sm:$0xff]   ;;  %v2913_v47 = vld [vmem:[%s3760_s1 + $0x290] sm:$0xff]  }
  0x1f   :  { %2564 = vmatpush3.bf16.msra.mxu0 %v2854_v30  ;;  %v2899_v30 = vld [vmem:[%s3760_s1 + $0x228] sm:$0xff]  }
  0x20   :  { %2593 = vmatprep.subr.bf16.mxu0 %v2858_v37  ;;  %v2905_v37 = vld [vmem:[%s3760_s1 + $0x2a0] sm:$0xff]  }
  0x21   :  { %2586 = vmatpush3.bf16.msra.mxu1 %v2857_v34  ;;  %v2904_v34 = vld [vmem:[%s3760_s1 + $0x2e0] sm:$0xff]  }
  0x22   :  { %2615 = vmatprep.subr.bf16.mxu1 %v2860_v40  ;;  %1649 = vmatmul.mubr.bf16.vlgmr.msra.gmra.mxu0 %v416_v45  ;;  %v2910_v40 = vld [vmem:[%s3760_s1 + $0x250] sm:$0xff]   ;;  %v2914_v45 = vld [vmem:[%s3760_s1 + $0x248] sm:$0xff]  }
  0x23   :  { %2594 = vmatpush3.bf16.msra.mxu0 %v2859_v48  ;;  %1728 = vmatprep.mubr.bf16.mxu0 %v437_v49  ;;  %v449_v48 = vrot.slane %v29_v46, %v3211_v41  ;;  %v442_v49 = vcombine.high %v29_v46, %v29_v46  ;;  %v2962_v46 = vld [vmem:[%s3760_s1 + $0x4b0] sm:$0xff]  }
  0x24   :  { %1689 = vmatmul.mubr.bf16.vlgmr.msra.gmra.mxu1 %v438_v50  ;;  %2595 = vmatprep.subr.bf16.mxu0 %v2862_v51  ;;  %v2916_v50 = vld [vmem:[%s3760_s1 + $0x2c8] sm:$0xff]  }
  0x25   :  { %2616 = vmatpush3.bf16.msra.mxu1 %v2861_v53  ;;  %1768 = vmatprep.mubr.bf16.mxu1 %v441_v55  ;;  %v2915_v51 = vld [vmem:[%s3760_s1 + $0x208] sm:$0xff]   ;;  %v457_v52 = vcombine.high %v449_v48, %v449_v48  ;;  %v3400_v53 = vrot.slane %v442_v49, %v3211_v41  ;;  %v2967_v49 = vld [vmem:[%s3760_s1 + $0x460] sm:$0xff]  }
  0x26   :  { %2617 = vmatprep.subr.bf16.mxu1 %v2864_v54  ;;  %v2918_v54 = vld [vmem:[%s3760_s1 + $0x240] sm:$0xff]   ;;  %v2917_v55 = vld [vmem:[%s3760_s1 + $0x288] sm:$0xff]  }
  0x27   :  { %2596 = vmatpush3.bf16.msra.mxu0 %v2863_v56  ;;  %v479_v56 = vrot.slane %v457_v52, %v3211_v41  ;;  %v2968_v52 = vld [vmem:[%s3760_s1 + $0x420] sm:$0xff]  }
  0x28   :  { %2597 = vmatprep.subr.bf16.mxu0 %v2866_v57  ;;  %v458_v57 = vcombine.high %v3400_v53, %v3400_v53 }
  0x29   :  { %2618 = vmatpush3.bf16.msra.mxu1 %v2865_v58  ;;  %v2920_v58 = vld [vmem:[%s3760_s1 + $0x2c0] sm:$0xff]  }
  0x2a   :  { %2619 = vmatprep.subr.bf16.mxu1 %v2868_v59  ;;  %v2919_v59 = vld [vmem:[%s3760_s1 + $0x200] sm:$0xff]  }
  0x2b   :  { %2598 = vmatpush3.bf16.msra.mxu0 %v2867_v60  ;;  %v489_v60 = vcombine.high %v479_v56, %v479_v56 }
  0x2c   :  { %2599 = vmatprep.subr.bf16.mxu0 %v2870_v61  ;;  %v465_v61 = vrot.slane %v449_v48, %v3211_v41  ;;  %v2964_v48 = vld [vmem:[%s3760_s1 + $0x428] sm:$0xff]  }
  0x2d   :  { %2620 = vmatpush3.bf16.msra.mxu1 %v2869_v62  ;;  %v2922_v62 = vld [vmem:[%s3760_s1 + $0x378] sm:$0xff]  }
  0x2e   :  { %2621 = vmatprep.subr.bf16.mxu1 %v2872_v63  ;;  %v2921_v63 = vld [vmem:[%s3760_s1 + $0x280] sm:$0xff]  }
  0x2f   :  { %2600 = vmatpush3.bf16.msra.mxu0 %v2871_v0  ;;  %v486_v0 = vrot.slane %v458_v57, %v3211_v41  ;;  %v2975_v57 = vld [vmem:[%s3760_s1 + $0x450] sm:$0xff]  }
  0x30   :  { %2601 = vmatprep.subr.bf16.mxu0 %v2874_v1  ;;  %v2924_v1 = vld [vmem:[%s3760_s1 + $0x3f8] sm:$0xff]  }
  0x31   :  { %2622 = vmatpush3.bf16.msra.mxu1 %v2873_v2  ;;  %v2923_v2 = vld [vmem:[%s3760_s1 + $0x338] sm:$0xff]  }
  0x32   :  { %2623 = vmatprep.subr.bf16.mxu1 %v2876_v3  ;;  %v487_v3 = vcombine.high %v465_v61, %v465_v61 }
  0x33   :  { %2602 = vmatpush3.bf16.msra.mxu0 %v2875_v4  ;;  %v2926_v4 = vld [vmem:[%s3760_s1 + $0x370] sm:$0xff]  }
  0x34   :  { %2603 = vmatprep.subr.bf16.mxu0 %v2878_v5  ;;  %v2925_v5 = vld [vmem:[%s3760_s1 + $0x3b8] sm:$0xff]  }
  0x35   :  { %2624 = vmatpush3.bf16.msra.mxu1 %v2877_v6  ;;  %v490_v6 = vcombine.high %v486_v0, %v486_v0 }
  0x36   :  { %2625 = vmatprep.subr.bf16.mxu1 %v2880_v7  ;;  %v2928_v7 = vld [vmem:[%s3760_s1 + $0x3f0] sm:$0xff]  }
  0x37   :  { %2604 = vmatpush3.bf16.msra.mxu0 %v2879_v8  ;;  %v2927_v8 = vld [vmem:[%s3760_s1 + $0x330] sm:$0xff]  }
  0x38   :  { %2605 = vmatprep.subr.bf16.mxu0 %v2882_v9  ;;  %v2930_v9 = vld [vmem:[%s3760_s1 + $0x368] sm:$0xff]  }
  0x39   :  { %2626 = vmatpush3.bf16.msra.mxu1 %v2881_v10  ;;  %v2929_v10 = vld [vmem:[%s3760_s1 + $0x3b0] sm:$0xff]  }
  0x3a   :  { %2627 = vmatprep.subr.bf16.mxu1 %v2884_v11  ;;  %v2932_v11 = vld [vmem:[%s3760_s1 + $0x3e8] sm:$0xff]  }
  0x3b   :  { %2606 = vmatpush3.bf16.msra.mxu0 %v2883_v12  ;;  %v2931_v12 = vld [vmem:[%s3760_s1 + $0x328] sm:$0xff]  }
  0x3c   :  { %2607 = vmatprep.subr.bf16.mxu0 %v2886_v13  ;;  %v2934_v13 = vld [vmem:[%s3760_s1 + $0x360] sm:$0xff]  }
  0x3d   :  { %2628 = vmatpush3.bf16.msra.mxu1 %v2885_v14  ;;  %v2933_v14 = vld [vmem:[%s3760_s1 + $0x3a8] sm:$0xff]  }
  0x3e   :  { %2629 = vmatprep.subr.bf16.mxu1 %v2888_v15  ;;  %v2936_v15 = vld [vmem:[%s3760_s1 + $0x3e0] sm:$0xff]  }
  0x3f   :  { %2608 = vmatpush3.bf16.msra.mxu0 %v2887_v16  ;;  %v2935_v16 = vld [vmem:[%s3760_s1 + $0x320] sm:$0xff]  }
  0x40   :  { %2637 = vmatprep.subr.bf16.mxu0 %v2890_v18  ;;  %v2937_v18 = vld [vmem:[%s3760_s1 + $0x3a0] sm:$0xff]  }
  0x41   :  { %2630 = vmatpush3.bf16.msra.mxu1 %v2889_v19  ;;  %v2940_v19 = vld [vmem:[%s3760_s1 + $0x3d8] sm:$0xff]  }
  0x42   :  { %1729 = vmatmul.mubr.bf16.vlgmr.msra.gmra.mxu0 %v423_v17  ;;  %2659 = vmatprep.subr.bf16.mxu1 %v2892_v20  ;;  %v2938_v17 = vld [vmem:[%s3760_s1 + $0x358] sm:$0xff]  }
  0x43   :  { %2638 = vmatpush3.bf16.msra.mxu0 %v2891_v21  ;;  %1808 = vmatprep.mubr.bf16.mxu0 %v479_v56  ;;  %v2939_v20 = vld [vmem:[%s3760_s1 + $0x318] sm:$0xff]   ;;  %v2942_v21 = vld [vmem:[%s3760_s1 + $0x350] sm:$0xff]  }
  0x44   :  { %1769 = vmatmul.mubr.bf16.vlgmr.msra.gmra.mxu1 %v439_v22  ;;  %2639 = vmatprep.subr.bf16.mxu0 %v2894_v23  ;;  %v2941_v22 = vld [vmem:[%s3760_s1 + $0x398] sm:$0xff]   ;;  %v2944_v23 = vld [vmem:[%s3760_s1 + $0x3d0] sm:$0xff]  }
  0x45   :  { %2660 = vmatpush3.bf16.msra.mxu1 %v2893_v24  ;;  %1848 = vmatprep.mubr.bf16.mxu1 %v489_v60  ;;  %v2943_v24 = vld [vmem:[%s3760_s1 + $0x310] sm:$0xff]   ;;  %v2972_v56 = vld [vmem:[%s3760_s1 + $0x418] sm:$0xff]  }
  0x46   :  { %2661 = vmatprep.subr.bf16.mxu1 %v2896_v25  ;;  %v2946_v25 = vld [vmem:[%s3760_s1 + $0x348] sm:$0xff]   ;;  %v2976_v60 = vld [vmem:[%s3760_s1 + $0x410] sm:$0xff]  }
  0x47   :  { %2640 = vmatpush3.bf16.msra.mxu0 %v2895_v26  ;;  %v2945_v26 = vld [vmem:[%s3760_s1 + $0x390] sm:$0xff]  }
  0x48   :  { %2641 = vmatprep.subr.bf16.mxu0 %v2898_v27  ;;  %v2948_v27 = vld [vmem:[%s3760_s1 + $0x3c8] sm:$0xff]  }
  0x49   :  { %2662 = vmatpush3.bf16.msra.mxu1 %v2897_v28  ;;  %v2947_v28 = vld [vmem:[%s3760_s1 + $0x308] sm:$0xff]  }
  0x4a   :  { %2663 = vmatprep.subr.bf16.mxu1 %v2900_v29  ;;  %v2950_v29 = vld [vmem:[%s3760_s1 + $0x340] sm:$0xff]  }
  0x4b   :  { %2642 = vmatpush3.bf16.msra.mxu0 %v2899_v30  ;;  %v2949_v30 = vld [vmem:[%s3760_s1 + $0x388] sm:$0xff]  }
  0x4c   :  { %2643 = vmatprep.subr.bf16.mxu0 %v2902_v31  ;;  %v2952_v31 = vld [vmem:[%s3760_s1 + $0x3c0] sm:$0xff]  }
  0x4d   :  { %2664 = vmatpush3.bf16.msra.mxu1 %v2901_v33  ;;  %v2951_v33 = vld [vmem:[%s3760_s1 + $0x300] sm:$0xff]  }
  0x4e   :  { %2665 = vmatprep.subr.bf16.mxu1 %v2904_v34  ;;  %v472_v34 = vrot.slane %v3400_v53, %v3211_v41  ;;  %v2971_v53 = vld [vmem:[%s3760_s1 + $0x458] sm:$0xff]  }
  0x4f   :  { %2644 = vmatpush3.bf16.msra.mxu0 %v2903_v35  ;;  %v2955_v35 = vld [vmem:[%s3760_s1 + $0x478] sm:$0xff]  }
  0x50   :  { %2645 = vmatprep.subr.bf16.mxu0 %v2906_v36  ;;  %v2954_v36 = vld [vmem:[%s3760_s1 + $0x380] sm:$0xff]  }
  0x51   :  { %2666 = vmatpush3.bf16.msra.mxu1 %v2905_v37  ;;  %v2957_v37 = vld [vmem:[%s3760_s1 + $0x4f8] sm:$0xff]  }
  0x52   :  { %2667 = vmatprep.subr.bf16.mxu1 %v2908_v38  ;;  %v2956_v38 = vld [vmem:[%s3760_s1 + $0x438] sm:$0xff]  }
  0x53   :  { %2646 = vmatpush3.bf16.msra.mxu0 %v2907_v39  ;;  %v488_v39 = vcombine.high %v472_v34, %v472_v34 }
  0x54   :  { %2647 = vmatprep.subr.bf16.mxu0 %v2910_v40  ;;  %v2959_v40 = vld [vmem:[%s3760_s1 + $0x470] sm:$0xff]  }
  0x55   :  { %2668 = vmatpush3.bf16.msra.mxu1 %v2909_v42  ;;  %v2958_v42 = vld [vmem:[%s3760_s1 + $0x4b8] sm:$0xff]  }
  0x56   :  { %2669 = vmatprep.subr.bf16.mxu1 %v2912_v43  ;;  %v2961_v43 = vld [vmem:[%s3760_s1 + $0x4f0] sm:$0xff]  }
  0x57   :  { %2648 = vmatpush3.bf16.msra.mxu0 %v2911_v44  ;;  %v2960_v44 = vld [vmem:[%s3760_s1 + $0x430] sm:$0xff]  }
  0x58   :  { %2649 = vmatprep.subr.bf16.mxu0 %v2914_v45  ;;  %v2963_v45 = vld [vmem:[%s3760_s1 + $0x468] sm:$0xff]  }
  0x59   :  { %2670 = vmatpush3.bf16.msra.mxu1 %v2913_v47  ;;  %v2965_v47 = vld [vmem:[%s3760_s1 + $0x4e8] sm:$0xff]  }
  0x5a   :  { %2671 = vmatprep.subr.bf16.mxu1 %v2916_v50  ;;  %v2966_v50 = vld [vmem:[%s3760_s1 + $0x4a8] sm:$0xff]  }
  0x5b   :  { %2650 = vmatpush3.bf16.msra.mxu0 %v2915_v51  ;;  %v2969_v51 = vld [vmem:[%s3760_s1 + $0x4e0] sm:$0xff]  }
  0x5c   :  { %2651 = vmatprep.subr.bf16.mxu0 %v2918_v54  ;;  %v2970_v54 = vld [vmem:[%s3760_s1 + $0x4a0] sm:$0xff]  }
  0x5d   :  { %2672 = vmatpush3.bf16.msra.mxu1 %v2917_v55  ;;  %v2973_v55 = vld [vmem:[%s3760_s1 + $0x4d8] sm:$0xff]  }
  0x5e   :  { %2673 = vmatprep.subr.bf16.mxu1 %v2920_v58  ;;  %v2974_v58 = vld [vmem:[%s3760_s1 + $0x498] sm:$0xff]  }
  0x5f   :  { %2652 = vmatpush3.bf16.msra.mxu0 %v2919_v59  ;;  %v2977_v59 = vld [vmem:[%s3760_s1 + $0x4d0] sm:$0xff]  }
  0x60   :  { %2681 = vmatprep.subr.bf16.mxu0 %v2922_v62  ;;  %v30_v62 = vld [vmem:[%s3759_s0 + $0x10] sm:$0x3f] }
  0x61   :  { %2674 = vmatpush3.bf16.msra.mxu1 %v2921_v63  ;;  %v2978_v63 = vld [vmem:[%s3760_s1 + $0x490] sm:$0xff]  }
  0x62   :  { %1809 = vmatmul.mubr.bf16.vlgmr.msra.gmra.mxu0 %v465_v61  ;;  %2703 = vmatprep.subr.bf16.mxu1 %v2924_v1  ;;  %v2979_v61 = vld [vmem:[%s3760_s1 + $0x448] sm:$0xff]   ;;  %v491_v1 = vcombine.high %v30_v62, %v30_v62 }
  0x63   :  { %2682 = vmatpush3.bf16.msra.mxu0 %v2923_v2  ;;  %1888 = vmatprep.mubr.bf16.mxu0 %v486_v0  ;;  %v498_v0 = vrot.slane %v30_v62, %v3211_v41  ;;  %v2981_v2 = vld [vmem:[%s3760_s1 + $0x4c8] sm:$0xff]  }
  0x64   :  { %1849 = vmatmul.mubr.bf16.vlgmr.msra.gmra.mxu1 %v487_v3  ;;  %2683 = vmatprep.subr.bf16.mxu0 %v2926_v4  ;;  %v2980_v3 = vld [vmem:[%s3760_s1 + $0x408] sm:$0xff]  }
  0x65   :  { %2704 = vmatpush3.bf16.msra.mxu1 %v2925_v5  ;;  %1928 = vmatprep.mubr.bf16.mxu1 %v490_v6  ;;  %v506_v4 = vcombine.high %v498_v0, %v498_v0  ;;  %v505_v5 = vrot.slane %v491_v1, %v3211_v41  ;;  %v2983_v6 = vld [vmem:[%s3760_s1 + $0x440] sm:$0xff]  }
  0x66   :  { %2705 = vmatprep.subr.bf16.mxu1 %v2928_v7  ;;  %v2982_v7 = vld [vmem:[%s3760_s1 + $0x488] sm:$0xff]  }
  0x67   :  { %2684 = vmatpush3.bf16.msra.mxu0 %v2927_v8  ;;  %v528_v8 = vrot.slane %v506_v4, %v3211_v41 }
  0x68   :  { %2685 = vmatprep.subr.bf16.mxu0 %v2930_v9  ;;  %v2985_v9 = vld [vmem:[%s3760_s1 + $0x4c0] sm:$0xff]  }
  0x69   :  { %2706 = vmatpush3.bf16.msra.mxu1 %v2929_v10  ;;  %v2984_v10 = vld [vmem:[%s3760_s1 + $0x400] sm:$0xff]  }
  0x6a   :  { %2707 = vmatprep.subr.bf16.mxu1 %v2932_v11  ;;  %v537_v11 = vcombine.high %v528_v8, %v528_v8 }
  0x6b   :  { %2686 = vmatpush3.bf16.msra.mxu0 %v2931_v12  ;;  %v507_v12 = vcombine.high %v505_v5, %v505_v5 }
  0x6c   :  { %2687 = vmatprep.subr.bf16.mxu0 %v2934_v13  ;;  %v514_v13 = vrot.slane %v498_v0, %v3211_v41 }
  0x6d   :  { %2708 = vmatpush3.bf16.msra.mxu1 %v2933_v14  ;;  %v2987_v14 = vld [vmem:[%s3760_s1 + $0x578] sm:$0xff]  }
  0x6e   :  { %2709 = vmatprep.subr.bf16.mxu1 %v2936_v15  ;;  %v2986_v15 = vld [vmem:[%s3760_s1 + $0x480] sm:$0xff]  }
  0x6f   :  { %2688 = vmatpush3.bf16.msra.mxu0 %v2935_v16  ;;  %v2988_v16 = vld [vmem:[%s3760_s1 + $0x538] sm:$0xff]  }
  0x70   :  { %2689 = vmatprep.subr.bf16.mxu0 %v2938_v17  ;;  %v535_v17 = vrot.slane %v507_v12, %v3211_v41 }
  0x71   :  { %2710 = vmatpush3.bf16.msra.mxu1 %v2937_v18  ;;  %v536_v18 = vcombine.high %v514_v13, %v514_v13 }
  0x72   :  { %2711 = vmatprep.subr.bf16.mxu1 %v2940_v19  ;;  %v2989_v19 = vld [vmem:[%s3760_s1 + $0x570] sm:$0xff]  }
  0x73   :  { %2690 = vmatpush3.bf16.msra.mxu0 %v2939_v20  ;;  %v2990_v20 = vld [vmem:[%s3760_s1 + $0x530] sm:$0xff]  }
  0x74   :  { %2691 = vmatprep.subr.bf16.mxu0 %v2942_v21  ;;  %v2991_v21 = vld [vmem:[%s3760_s1 + $0x568] sm:$0xff]  }
  0x75   :  { %2712 = vmatpush3.bf16.msra.mxu1 %v2941_v22  ;;  %v2992_v22 = vld [vmem:[%s3760_s1 + $0x528] sm:$0xff]  }
  0x76   :  { %2713 = vmatprep.subr.bf16.mxu1 %v2944_v23  ;;  %v2993_v23 = vld [vmem:[%s3760_s1 + $0x560] sm:$0xff]  }
  0x77   :  { %2692 = vmatpush3.bf16.msra.mxu0 %v2943_v24  ;;  %v2994_v24 = vld [vmem:[%s3760_s1 + $0x520] sm:$0xff]  }
  0x78   :  { %2693 = vmatprep.subr.bf16.mxu0 %v2946_v25  ;;  %v2995_v25 = vld [vmem:[%s3760_s1 + $0x558] sm:$0xff]  }
  0x79   :  { %2714 = vmatpush3.bf16.msra.mxu1 %v2945_v26  ;;  %v2996_v26 = vld [vmem:[%s3760_s1 + $0x518] sm:$0xff]  }
  0x7a   :  { %2715 = vmatprep.subr.bf16.mxu1 %v2948_v27  ;;  %v2997_v27 = vld [vmem:[%s3760_s1 + $0x550] sm:$0xff]  }
  0x7b   :  { %2694 = vmatpush3.bf16.msra.mxu0 %v2947_v28 }
  0x7c   :  { %2695 = vmatprep.subr.bf16.mxu0 %v2950_v29 }
  0x7d   :  { %2716 = vmatpush3.bf16.msra.mxu1 %v2949_v30 }
  0x7e   :  { %2717 = vmatprep.subr.bf16.mxu1 %v2952_v31 }
  0x7f   :  { %2696 = vmatpush3.bf16.msra.mxu0 %v2951_v33 }
  0x80   :  { %2725 = vmatprep.subr.bf16.mxu0 %v2955_v35 }
  0x81   :  { %2718 = vmatpush3.bf16.msra.mxu1 %v2954_v36 }
  0x82   :  { %1889 = vmatmul.mubr.bf16.vlgmr.msra.gmra.mxu0 %v472_v34  ;;  %2747 = vmatprep.subr.bf16.mxu1 %v2957_v37 }
  0x83   :  { %2726 = vmatpush3.bf16.msra.mxu0 %v2956_v38  ;;  %1968 = vmatprep.mubr.bf16.mxu0 %v528_v8 }
  0x84   :  { %1929 = vmatmul.mubr.bf16.vlgmr.msra.gmra.mxu1 %v488_v39  ;;  %2727 = vmatprep.subr.bf16.mxu0 %v2959_v40 }
  0x85   :  { %2748 = vmatpush3.bf16.msra.mxu1 %v2958_v42  ;;  %2008 = vmatprep.mubr.bf16.mxu1 %v537_v11 }
  0x86   :  { %2749 = vmatprep.subr.bf16.mxu1 %v2961_v43 }
  0x87   :  { %2728 = vmatpush3.bf16.msra.mxu0 %v2960_v44 }
  0x88   :  { %2729 = vmatprep.subr.bf16.mxu0 %v2963_v45 }
  0x89   :  { %2750 = vmatpush3.bf16.msra.mxu1 %v2962_v46 }
  0x8a   :  { %2751 = vmatprep.subr.bf16.mxu1 %v2965_v47 }
  0x8b   :  { %2730 = vmatpush3.bf16.msra.mxu0 %v2964_v48 }
  0x8c   :  { %2731 = vmatprep.subr.bf16.mxu0 %v2967_v49 }
  0x8d   :  { %2752 = vmatpush3.bf16.msra.mxu1 %v2966_v50 }
  0x8e   :  { %2753 = vmatprep.subr.bf16.mxu1 %v2969_v51 }
  0x8f   :  { %2732 = vmatpush3.bf16.msra.mxu0 %v2968_v52 }
  0x90   :  { %2733 = vmatprep.subr.bf16.mxu0 %v2971_v53 }
  0x91   :  { %2754 = vmatpush3.bf16.msra.mxu1 %v2970_v54 }
  0x92   :  { %2755 = vmatprep.subr.bf16.mxu1 %v2973_v55 }
  0x93   :  { %2734 = vmatpush3.bf16.msra.mxu0 %v2972_v56 }
  0x94   :  { %2735 = vmatprep.subr.bf16.mxu0 %v2975_v57 }
  0x95   :  { %2756 = vmatpush3.bf16.msra.mxu1 %v2974_v58 }
  0x96   :  { %2757 = vmatprep.subr.bf16.mxu1 %v2977_v59 }
  0x97   :  { %2736 = vmatpush3.bf16.msra.mxu0 %v2976_v60 }
  0x98   :  { %2737 = vmatprep.subr.bf16.mxu0 %v2979_v61 }
  0x99   :  { %2758 = vmatpush3.bf16.msra.mxu1 %v2978_v63 }
  0x9a   :  { %2759 = vmatprep.subr.bf16.mxu1 %v2981_v2 }
  0x9b   :  { %2738 = vmatpush3.bf16.msra.mxu0 %v2980_v3 }
  0x9c   :  { %2739 = vmatprep.subr.bf16.mxu0 %v2983_v6 }
  0x9d   :  { %2760 = vmatpush3.bf16.msra.mxu1 %v2982_v7 }
  0x9e   :  { %2761 = vmatprep.subr.bf16.mxu1 %v2985_v9 }
  0x9f   :  { %2740 = vmatpush3.bf16.msra.mxu0 %v2984_v10 }
  0xa0   :  { %2769 = vmatprep.subr.bf16.mxu0 %v2987_v14 }
  0xa1   :  { %2762 = vmatpush3.bf16.msra.mxu1 %v2986_v15 }
  0xa2   :  { %1969 = vmatmul.mubr.bf16.vlgmr.msra.gmra.mxu0 %v514_v13 }
  0xa3   :  { %2770 = vmatpush3.bf16.msra.mxu0 %v2988_v16  ;;  %2048 = vmatprep.mubr.bf16.mxu0 %v535_v17 }
  0xa4   :  { %2009 = vmatmul.mubr.bf16.vlgmr.msra.gmra.mxu1 %v536_v18  ;;  %2771 = vmatprep.subr.bf16.mxu0 %v2989_v19 }
  0xa7   :  { %2772 = vmatpush3.bf16.msra.mxu0 %v2990_v20 }
  0xa8   :  { %2773 = vmatprep.subr.bf16.mxu0 %v2991_v21 }
  0xab   :  { %2774 = vmatpush3.bf16.msra.mxu0 %v2992_v22 }
  0xac   :  { %2775 = vmatprep.subr.bf16.mxu0 %v2993_v23 }
  0xaf   :  { %2776 = vmatpush3.bf16.msra.mxu0 %v2994_v24 }
  0xb0   :  { %2777 = vmatprep.subr.bf16.mxu0 %v2995_v25 }
  0xb1   :  { %12 = vsyncpa [#allocation3], 0  ;;  %v2998_v28 = vld [vmem:[%s3760_s1 + $0x510] sm:$0xff]   ;;  %v2999_v29 = vld [vmem:[%s3760_s1 + $0x548] sm:$0xff]   ;;  %v521_v34 = vrot.slane %v505_v5, %v3211_v41  ;;  %v3059_v49 = vmov 0.0   ;;  %vm3060_vm0 = vmmov 0  }
  0xb2   :  { %v3000_v30 = vld [vmem:[%s3760_s1 + $0x508] sm:$0xff]   ;;  %v3001_v31 = vld [vmem:[%s3760_s1 + $0x540] sm:$0xff]   ;;  %v3004_v41 = vld [vmem:[%s3762_s3 + $0x38] sm:$0xff]   ;;  %2800 = vmatprep.subr.bf16.mxu1 %v3059_v49  ;;  %2816 = vmatprep.mubr.msk.bf16.mxu1 %vm3060_vm0, %v3059_v49 }
  0xb3   :  { %2778 = vmatpush3.bf16.msra.mxu0 %v2996_v26  ;;  %v3002_v33 = vld [vmem:[%s3760_s1 + $0x500] sm:$0xff]   ;;  %2801 = vmatpush3.bf16.msra.mxu1 %v3004_v41  ;;  %v3005_v50 = vld [vmem:[%s3762_s3 + $0x30] sm:$0xff]   ;;  %v3006_v51 = vld [vmem:[%s3762_s3 + $0x28] sm:$0xff]  }
  0xb4   :  { %2779 = vmatprep.subr.bf16.mxu0 %v2997_v27  ;;  %v2346_v36 = vld [vmem:[%s3761_s2] ss:$0 sm:$0xff]  ;;  %2802 = vmatprep.subr.bf16.mxu1 %v3059_v49  ;;  %v3008_v53 = vld [vmem:[%s3762_s3 + $0x18] sm:$0xff]   ;;  %v3009_v54 = vld [vmem:[%s3762_s3 + $0x10] sm:$0xff]  }
  0xb5   :  { %v3007_v52 = vld [vmem:[%s3762_s3 + $0x20] sm:$0xff]   ;;  %v3010_v58 = vld [vmem:[%s3762_s3 + $0x8] sm:$0xff]   ;;  %v3012_v5 = vld [vmem:[%s3764_s5 + $0x70] ss:$8 sps:$4 sm:$0xff]  }
  0xb6   :  { %v3011_v2 = vld [vmem:[%s3762_s3] sm:$0xff]   ;;  %v3014_v6 = vld [vmem:[%s3764_s5 + $0x74] ss:$8 sps:$4 sm:$0xff]   ;;  %v3018_v10 = vld [vmem:[%s3764_s5 + $0x50] ss:$8 sps:$4 sm:$0xff]  }
  0xb7   :  { %2780 = vmatpush3.bf16.msra.mxu0 %v2998_v28  ;;  %2803 = vmatpush3.bf16.msra.mxu1 %v3005_v50  ;;  %v3017_v7 = vld [vmem:[%s3764_s5 + $0x64] ss:$8 sps:$4 sm:$0xff]   ;;  %v3015_v8 = vld [vmem:[%s3764_s5 + $0x60] ss:$8 sps:$4 sm:$0xff]   ;;  %v3020_v9 = vld [vmem:[%s3764_s5 + $0x54] ss:$8 sps:$4 sm:$0xff]  }
  0xb8   :  { %2781 = vmatprep.subr.bf16.mxu0 %v2999_v29  ;;  %2804 = vmatprep.subr.bf16.mxu1 %v3059_v49  ;;  %v3023_v11 = vld [vmem:[%s3764_s5 + $0x44] ss:$8 sps:$4 sm:$0xff]   ;;  %v3021_v12 = vld [vmem:[%s3764_s5 + $0x40] ss:$8 sps:$4 sm:$0xff]   ;;  %v3026_v13 = vld [vmem:[%s3764_s5 + $0x34] ss:$8 sps:$4 sm:$0xff]  }
  0xb9   :  { %v3024_v14 = vld [vmem:[%s3764_s5 + $0x30] ss:$8 sps:$4 sm:$0xff]   ;;  %v3029_v15 = vld [vmem:[%s3764_s5 + $0x24] ss:$8 sps:$4 sm:$0xff]   ;;  %v3027_v16 = vld [vmem:[%s3764_s5 + $0x20] ss:$8 sps:$4 sm:$0xff]  }
  0xba   :  { %v3032_v17 = vld [vmem:[%s3764_s5 + $0x14] ss:$8 sps:$4 sm:$0xff]   ;;  %v3030_v21 = vld [vmem:[%s3764_s5 + $0x10] ss:$8 sps:$4 sm:$0xff]  }
  0xbb   :  { %2782 = vmatpush3.bf16.msra.mxu0 %v3000_v30  ;;  %2805 = vmatpush3.bf16.msra.mxu1 %v3006_v51 }
  0xbc   :  { %2783 = vmatprep.subr.bf16.mxu0 %v3001_v31  ;;  %2806 = vmatprep.subr.bf16.mxu1 %v3059_v49 }
  0xbf   :  { %2784 = vmatpush3.bf16.msra.mxu0 %v3002_v33  ;;  %2807 = vmatpush3.bf16.msra.mxu1 %v3007_v52 }
  0xc0   :  { %2808 = vmatprep.subr.bf16.mxu1 %v3059_v49  ;;  %2279 = vmatprep.subr.bf16.mxu0 %v3014_v6 }
  0xc2   :  { %2049 = vmatmul.mubr.bf16.vlgmr.msra.gmra.mxu0 %v521_v34 }
  0xc3   :  { %2809 = vmatpush3.bf16.msra.mxu1 %v3008_v53  ;;  %2280 = vmatpush1.bf16.msra.mxu0 %v3012_v5 }
  0xc4   :  { %2810 = vmatprep.subr.bf16.mxu1 %v3059_v49  ;;  %2281 = vmatprep.subr.bf16.mxu0 %v3017_v7 }
  0xc7   :  { %2811 = vmatpush3.bf16.msra.mxu1 %v3009_v54  ;;  %2282 = vmatpush1.bf16.msra.mxu0 %v3015_v8 }
  0xc8   :  { %2812 = vmatprep.subr.bf16.mxu1 %v3059_v49  ;;  %2283 = vmatprep.subr.bf16.mxu0 %v3020_v9 }
  0xcb   :  { %2813 = vmatpush3.bf16.msra.mxu1 %v3010_v58  ;;  %2284 = vmatpush1.bf16.msra.mxu0 %v3018_v10 }
  0xcc   :  { %2814 = vmatprep.subr.bf16.mxu1 %v3059_v49  ;;  %2285 = vmatprep.subr.bf16.mxu0 %v3023_v11  ;;  %v2191_v11 = vsub.s32 0, %v3196_v32 }
  0xcf   :  { %2815 = vmatpush3.bf16.msra.mxu1 %v3011_v2  ;;  %2286 = vmatpush1.bf16.msra.mxu0 %v3021_v12  ;;  %v3061_v2 = vmov 0   ;;  %v2195_v12 = vsub.s32 1, %v3196_v32 }
  0xd0   :  { %2287 = vmatprep.subr.bf16.mxu0 %v3026_v13  ;;  %2311 = vmatprep.mubr.bf16.mxu0 %v3061_v2  ;;  %v2187_v13 = vld [vmem:[%s3765_s6] sm:$0x3] }
  0xd3   :  { %2288 = vmatpush1.bf16.msra.mxu0 %v3024_v14  ;;  %v2192_v14 = vrot.slane %v2187_v13, %v2191_v11 }
  0xd4   :  { %2289 = vmatprep.subr.bf16.mxu0 %v3029_v15  ;;  %v2196_v15 = vrot.slane %v2187_v13, %v2195_v12 }
  0xd7   :  { %2290 = vmatpush1.bf16.msra.mxu0 %v3027_v16 }
  0xd8   :  { %2291 = vmatprep.subr.bf16.mxu0 %v3032_v17 }
  0xdb   :  { %2292 = vmatpush1.bf16.msra.mxu0 %v3030_v21 }
  0xe2   :  { %v2565_v35 = vpop.f32.mrf.mxu0 }
  0xe4   :  { %v2566_v37 = vpop.f32.mrf.mxu0  ;;  %v2587_v38 = vpop.f32.mrf.mxu1 }
  0xe5   :  { %v2567_v39 = vadd.f32 %v2566_v37, %v2565_v35 }
  0xe6   :  { %v2568_v40 = vpop.f32.mrf.mxu0  ;;  %v2588_v42 = vpop.f32.mrf.mxu1 }
  0xe7   :  { %v1651_v43 = vadd.f32 %v2567_v39, %v2346_v36  ;;  %v2589_v44 = vadd.f32 %v2588_v42, %v2587_v38 }
  0xe8   :  { %v2569_v45 = vpop.f32.mrf.mxu0  ;;  %v2590_v46 = vpop.f32.mrf.mxu1 }
  0xe9   :  { %v1691_v47 = vadd.f32 %v2589_v44, %v1651_v43 }
  0xea   :  { %v2591_v48 = vpop.f32.mrf.mxu1 }
 0x102   :  { %v2609_v55 = vpop.f32.mrf.mxu0 }
 0x104   :  { %v2610_v56 = vpop.f32.mrf.mxu0  ;;  %v2631_v57 = vpop.f32.mrf.mxu1 }
 0x105   :  { %v2611_v59 = vadd.f32 %v2610_v56, %v2609_v55 }
 0x106   :  { %v2612_v60 = vpop.f32.mrf.mxu0  ;;  %v2632_v61 = vpop.f32.mrf.mxu1 }
 0x107   :  { %v1731_v62 = vadd.f32 %v2611_v59, %v1691_v47  ;;  %v2633_v63 = vadd.f32 %v2632_v61, %v2631_v57 }
 0x108   :  { %v2613_v0 = vpop.f32.mrf.mxu0  ;;  %v2634_v1 = vpop.f32.mrf.mxu1 }
 0x109   :  { %v1771_v3 = vadd.f32 %v2633_v63, %v1731_v62  ;;  %v3035_v0 = vld [vmem:[%s3764_s5 + $0x4] ss:$8 sps:$4 sm:$0xff]   ;;  %v3033_v1 = vld [vmem:[%s3764_s5] ss:$8 sps:$4 sm:$0xff]  }
 0x10a   :  { %v2635_v4 = vpop.f32.mrf.mxu1  ;;  %2293 = vmatprep.subr.bf16.mxu0 %v3035_v0 }
 0x10b   :  { %2294 = vmatpush1.bf16.msra.mxu0 %v3033_v1 }
 0x122   :  { %v2653_v18 = vpop.f32.mrf.mxu0 }
 0x124   :  { %v2654_v19 = vpop.f32.mrf.mxu0  ;;  %v2675_v20 = vpop.f32.mrf.mxu1 }
 0x125   :  { %v2655_v22 = vadd.f32 %v2654_v19, %v2653_v18 }
 0x126   :  { %v2656_v23 = vpop.f32.mrf.mxu0  ;;  %v2676_v24 = vpop.f32.mrf.mxu1 }
 0x127   :  { %v1811_v25 = vadd.f32 %v2655_v22, %v1771_v3  ;;  %v2677_v26 = vadd.f32 %v2676_v24, %v2675_v20  ;;  %v2523_v3 = vld [vmem:[%s3763_s4] ss:$0 sm:$0xff]  ;;  %s3062_s4 = smov [#allocation2]  }
 0x128   :  { %v2657_v27 = vpop.f32.mrf.mxu0  ;;  %v2678_v28 = vpop.f32.mrf.mxu1  ;;  %s2338_s11 = sshll.u32 %s3062_s4, 4  ;;  %s2339_s11 = int_to_ptr.vmem [resolvable:$true] %s2338_s11 }
 0x129   :  { %v1851_v29 = vadd.f32 %v2677_v26, %v1811_v25  ;;  %s3036_s12 = scalar_lea.vmem %s2339_s11, 64  ;;  %p3041_p1 = scmp.lt.s32.totalorder %s2339_s11, %s2339_s11 }
 0x12a   :  { %v2679_v30 = vpop.f32.mrf.mxu1  ;;  %p3037_p0 = scmp.ne.s32.totalorder %s2339_s11, %s3036_s12  ;;  %p3042_p2 = scmp.lt.s32.totalorder %s3036_s12, %s3036_s12 }
 0x12c   :  { %p3043_p3 = por %p3042_p2, %p3041_p1 }
 0x12e   :  { %p3044_p4 = pnand %p3043_p3, %p3037_p0 }
 0x142   :  { %v2697_v31 = vpop.f32.mrf.mxu0 }
 0x144   :  { %v2698_v33 = vpop.f32.mrf.mxu0  ;;  %v2719_v34 = vpop.f32.mrf.mxu1 }
 0x145   :  { %v2699_v48 = vadd.f32 %v2698_v33, %v2697_v31 }
 0x146   :  { %v2700_v35 = vpop.f32.mrf.mxu0  ;;  %v2720_v36 = vpop.f32.mrf.mxu1 }
 0x147   :  { %v1891_v49 = vadd.f32 %v2699_v48, %v1851_v29  ;;  %v2721_v50 = vadd.f32 %v2720_v36, %v2719_v34 }
 0x148   :  { %v2701_v37 = vpop.f32.mrf.mxu0  ;;  %v2722_v38 = vpop.f32.mrf.mxu1 }
 0x149   :  { %v1931_v52 = vadd.f32 %v2721_v50, %v1891_v49 }
 0x14a   :  { %v2723_v39 = vpop.f32.mrf.mxu1 }
 0x162   :  { %v2741_v40 = vpop.f32.mrf.mxu0 }
 0x164   :  { %v2742_v42 = vpop.f32.mrf.mxu0  ;;  %v2763_v43 = vpop.f32.mrf.mxu1 }
 0x165   :  { %v2743_v51 = vadd.f32 %v2742_v42, %v2741_v40 }
 0x166   :  { %v2744_v44 = vpop.f32.mrf.mxu0  ;;  %v2764_v45 = vpop.f32.mrf.mxu1 }
 0x167   :  { %v1971_v53 = vadd.f32 %v2743_v51, %v1931_v52  ;;  %v2765_v54 = vadd.f32 %v2764_v45, %v2763_v43 }
 0x168   :  { %v2745_v46 = vpop.f32.mrf.mxu0  ;;  %v2766_v47 = vpop.f32.mrf.mxu1 }
 0x169   :  { %v2011_v57 = vadd.f32 %v2765_v54, %v1971_v53 }
 0x16a   :  { %v2767_v41 = vpop.f32.mrf.mxu1 }
 0x182   :  { %v2785_v55 = vpop.f32.mrf.mxu0 }
 0x184   :  { %v2786_v56 = vpop.f32.mrf.mxu0 }
 0x185   :  { %v2787_v58 = vadd.f32 %v2786_v56, %v2785_v55 }
 0x186   :  { %v2788_v59 = vpop.f32.mrf.mxu0 }
 0x187   :  { %v2051_v60 = vadd.f32 %v2787_v58, %v2011_v57 }
 0x188   :  { %v2789_v61 = vpop.f32.mrf.mxu0 }
 0x189   :  { %v2056_v62 = vmax.f32 %v2051_v60, 0.0 }
 0x18b   :  { %v2057_v63 = vpack.c.bf16 %v2056_v62, %v2056_v62 }
 0x18d   :  { %2817 = vmatmul.mubr.bf16.vlgmr.msra.gmra.mxu1 %v2057_v63 }
 0x24d   :  { %v2163_v4 = vpop.f32.mrf.mxu1 }
 0x24e   :  { %v2164_v5 = vadd.f32 %v2523_v3, %v2163_v4 }
 0x24f   :  { %v2818_v6 = vpop.f32.mrf.mxu1 }
 0x250   :  { %v2169_v7 = vmax.f32 %v2164_v5, 0.0 }
 0x251   :  { %v2166_v8 = vpop.f32.mrf.mxu1 }
 0x252   :  { %v2170_v9 = vpack.c.bf16 %v2169_v7, %v2169_v7 }
 0x253   :  { %v2819_v10 = vpop.f32.mrf.mxu1 }
 0x254   :  { %2312 = vmatmul.mubr.bf16.vlgmr.msra.gmra.mxu0 %v2170_v9 }
 0x314   :  { %v2313_v16 = vpop.f32.mrf.mxu0 }
 0x315   :  { %v2314_v18 = vadd.f32 %v2313_v16, %v2192_v14 }
 0x316   :  { %v2315_v17 = vpop.f32.mrf.mxu0 }
 0x317   :  { %v2316_v19 = vadd.f32 %v2315_v17, %v2196_v15 }
 0x318   :  { %v2317_v20 = vpop.f32.mrf.mxu0 }
 0x319   :  { %v2322_v21 = vcombine.low %v2314_v18, %v2316_v19 }
 0x31a   :  { %v2318_v22 = vpop.f32.mrf.mxu0 }
 0x31b   :  { %2548 = vst.sshfl [vmem:[#allocation2] sm:$0x33 pattern:$0x76325410] %v2322_v21 }
 0x31c   :  { %3047 = shalt.err (!%p3044_p4)
}
 0x31d   :  { %2341 = dma.vmem_to_hbm [thread:$0]  %s2339_s11, 64, %s3766_s7, [#allocation3]  }
 0x31e   :  { %3056 = dma.done.wait [#allocation3], 64  }
 0x31f   :  { %3057 = vsyncadd [#allocation3], 4294967232 }
 0x320   :  { %2345 = vsyncpa [#allocation3], 1 }

</bundles_post_ra>
